<compile_context>
chip_gen: v7x
topology: tpu7x:2x2x1
jax: 0.10.0
libtpu: 0.0.40
codegen_flags: <defaults>
</compile_context>

<pallas_src>
import functools

import jax
import jax.numpy as jnp
from jax.experimental import pallas as pl
from jax.experimental.pallas import tpu as pltpu

# ----------------------------- configuration --------------------------------
B = 2                    # batch
IN_CH = 3                # image channels
PATCH = 16               # patch_size asserted to be (16, 16) in the module
IMG1, IMG2 = 32, 64      # branch1 (big model / small image), branch2 (small model / big image)
DIM1, DIM2 = 64, 32      # embed dims, dim1 >= dim2 (both divisible by 32 for GroupNorm(32, .))
HEADS1, HEADS2 = 2, 2    # self-attention heads per branch
INTER_HEADS = 2          # heads for the 'normal' cross-attention interaction
DEPTH1, DEPTH2 = 4, 2
IDX1 = [[0, 1], [2, 3]]  # branch1_interaction_indexes
IDX2 = [[0, 0], [1, 1]]  # branch2_interaction_indexes
NUM_CLASSES = 10
GN_GROUPS = 32

_VMEM = pl.BlockSpec(memory_space=pltpu.MemorySpace.VMEM)
_SMEM = pl.BlockSpec(memory_space=pltpu.MemorySpace.SMEM)
_PARALLEL = pltpu.CompilerParams(dimension_semantics=("parallel",))


# --------------------------- in-kernel helper math ---------------------------


def _ln(x, g, b, eps=1e-6):
    """LayerNorm over the last axis; x f32 (N, D), g/b (1, D)."""
    mu = jnp.mean(x, axis=-1, keepdims=True)
    var = jnp.mean(jnp.square(x - mu), axis=-1, keepdims=True)
    return (x - mu) * jax.lax.rsqrt(var + eps) * g + b


def _gelu(y):
    # TODO(synk): tanh-approx GELU; PyTorch nn.GELU defaults to exact erf (small numeric drift).
    c = 0.7978845608028654
    return 0.5 * y * (1.0 + jnp.tanh(c * (y + 0.044715 * y * y * y)))


def _mha(q, k, v, heads):
    """Multi-head attention on packed (tokens, D) q/k/v; static Python loop over heads."""
    D = q.shape[-1]
    dh = D // heads
    scale = dh ** -0.5
    outs = []
    for h in range(heads):
        qh = q[:, h * dh:(h + 1) * dh]
        kh = k[:, h * dh:(h + 1) * dh]
        vh = v[:, h * dh:(h + 1) * dh]
        s = jax.lax.dot_general(qh, kh, (((1,), (1,)), ((), ())),
                                preferred_element_type=jnp.float32) * scale
        s = s - jnp.max(s, axis=-1, keepdims=True)
        p = jnp.exp(s)
        p = p * pl.reciprocal(jnp.sum(p, axis=-1, keepdims=True), approx=True)
        outs.append(jnp.dot(p, vh, preferred_element_type=jnp.float32))
    return outs[0] if heads == 1 else jnp.concatenate(outs, axis=-1)


def _gn2d(x, g, b, pool, eps):
    """nn.GroupNorm on token layout: x f32 (tokens, C), g/b (1, C), pool (C, C) group-avg matrix."""
    mu_c = jnp.mean(x, axis=0, keepdims=True)                                 # per-channel mean
    mu = jnp.dot(mu_c, pool, preferred_element_type=jnp.float32)              # per-group mean
    d = x - mu
    var_c = jnp.mean(d * d, axis=0, keepdims=True)
    var = jnp.dot(var_c, pool, preferred_element_type=jnp.float32)            # per-group variance
    return d * jax.lax.rsqrt(var + eps) * g + b


def _group_pool_matrix(C, groups):
    """(C, C) matrix averaging channels within each contiguous GroupNorm group."""
    cg = C // groups
    gid = jnp.arange(C, dtype=jnp.int32) // cg
    return (gid[:, None] == gid[None, :]).astype(jnp.float32) / cg


# ------------------------------- Pallas kernels ------------------------------


def _patch_embed_kernel(p_ref, w_ref, b_ref, pos_ref, o_ref):
    y = jnp.dot(p_ref[...].astype(jnp.float32), w_ref[...],
                preferred_element_type=jnp.float32)
    o_ref[...] = (y + b_ref[...] + pos_ref[...]).astype(o_ref.dtype)


def _vit_block_kernel(x_ref, ln1_g, ln1_b, qkv_w, qkv_b, proj_w, proj_b,
                      ln2_g, ln2_b, fc1_w, fc1_b, fc2_w, fc2_b, o_ref, *, heads):
    x = x_ref[...].astype(jnp.float32)                       # (N, D)
    D = x.shape[-1]
    # ---- attention ----
    h = _ln(x, ln1_g[...], ln1_b[...])
    qkv = jnp.dot(h, qkv_w[...], preferred_element_type=jnp.float32) + qkv_b[...]
    q = qkv[:, 0:D]
    k = qkv[:, D:2 * D]
    v = qkv[:, 2 * D:3 * D]
    o = _mha(q, k, v, heads)
    o = jnp.dot(o, proj_w[...], preferred_element_type=jnp.float32) + proj_b[...]
    x = x + o
    # ---- MLP ----
    h = _ln(x, ln2_g[...], ln2_b[...])
    h = jnp.dot(h, fc1_w[...], preferred_element_type=jnp.float32) + fc1_b[...]
    h = _gelu(h)
    h = jnp.dot(h, fc2_w[...], preferred_element_type=jnp.float32) + fc2_b[...]
    x = x + h
    o_ref[...] = x.astype(o_ref.dtype)


def _cross_attn_kernel(xq_ref, xsrc_ref, proj_w, proj_b,
                       qln_g, qln_b, kvln_g, kvln_b,
                       q_w, q_b, k_w, k_b, v_w, v_b, o_w, o_b,
                       gamma_ref, o_ref, *, heads):
    """xq_new = xq + gamma * Attn(LN_q(xq), LN_kv(xsrc @ proj + b))."""
    xq = xq_ref[...].astype(jnp.float32)                     # (Nq, Dq)
    xs = xsrc_ref[...].astype(jnp.float32)                   # (Nk, Ds)
    y = jnp.dot(xs, proj_w[...], preferred_element_type=jnp.float32) + proj_b[...]
    qn = _ln(xq, qln_g[...], qln_b[...])
    kn = _ln(y, kvln_g[...], kvln_b[...])
    q = jnp.dot(qn, q_w[...], preferred_element_type=jnp.float32) + q_b[...]
    k = jnp.dot(kn, k_w[...], preferred_element_type=jnp.float32) + k_b[...]
    v = jnp.dot(kn, v_w[...], preferred_element_type=jnp.float32) + v_b[...]
    o = _mha(q, k, v, heads)
    o = jnp.dot(o, o_w[...], preferred_element_type=jnp.float32) + o_b[...]
    o_ref[...] = (xq + gamma_ref[...] * o).astype(o_ref.dtype)


def _gn_tokens_kernel(x_ref, pool_ref, g_ref, b_ref, o_ref, *, eps):
    x = x_ref[...].astype(jnp.float32)
    o_ref[...] = _gn2d(x, g_ref[...], b_ref[...], pool_ref[...], eps).astype(o_ref.dtype)


def _merge2_kernel(x_ref, pool2_ref, ga_ref, ba_ref, w_ref, b_ref,
                   pool1_ref, gb_ref, bb_ref, o_ref, *, eps):
    """merge_branch2: GN(32,dim2) -> Linear(dim2,dim1) -> GN(32,dim1), all in token layout."""
    x = x_ref[...].astype(jnp.float32)                       # (N2, D2)
    xn = _gn2d(x, ga_ref[...], ba_ref[...], pool2_ref[...], eps)
    y = jnp.dot(xn, w_ref[...], preferred_element_type=jnp.float32) + b_ref[...]
    yn = _gn2d(y, gb_ref[...], bb_ref[...], pool1_ref[...], eps)
    o_ref[...] = yn.astype(o_ref.dtype)


def _tail_kernel(f1_ref, f2_ref, w1_ref, w2_ref, g_ref, b_ref,
                 pool_ref, hw_ref, hb_ref, o_ref, *, eps):
    """out = head(mean_tokens(LN(w1*f1 + w2*f2)));  f*: (B*N, D) flattened tokens."""
    w1 = w1_ref[0]
    w2 = w2_ref[0]
    x = f1_ref[...].astype(jnp.float32) * w1 + f2_ref[...].astype(jnp.float32) * w2
    xn = _ln(x, g_ref[...], b_ref[...], eps)
    pooled = jnp.dot(pool_ref[...], xn, preferred_element_type=jnp.float32)   # (B, D) token mean
    y = jnp.dot(pooled, hw_ref[...], preferred_element_type=jnp.float32) + hb_ref[...]
    o_ref[...] = y.astype(o_ref.dtype)


# --------------------------- pallas_call wrappers -----------------------------


def patch_embed(x, bp):
    """Conv2d(in, dim, 16, stride 16) + bias + pos_embed as one fused kernel per batch element."""
    Bx, C, H, W = x.shape
    nh, nw = H // PATCH, W // PATCH
    n = nh * nw
    CPP = C * PATCH * PATCH
    D = bp["patch_w"].shape[1]
    patches = x.reshape(Bx, C, nh, PATCH, nw, PATCH)
    patches = patches.transpose(0, 2, 4, 1, 3, 5).reshape(Bx, n, CPP)
    return pl.pallas_call(
        _patch_embed_kernel,
        grid=(Bx,),
        in_specs=[
            pl.BlockSpec((None, n, CPP), lambda b: (b, 0, 0)),
            pl.BlockSpec((CPP, D), lambda b: (0, 0)),
            pl.BlockSpec((1, D), lambda b: (0, 0)),
            pl.BlockSpec((n, D), lambda b: (0, 0)),
        ],
        out_specs=pl.BlockSpec((None, n, D), lambda b: (b, 0, 0)),
        out_shape=jax.ShapeDtypeStruct((Bx, n, D), x.dtype),
        compiler_params=_PARALLEL,
    )(patches, bp["patch_w"], bp["patch_b"].reshape(1, D), bp["pos_embed"].reshape(n, D))


def vit_block(x, p, num_heads):
    Bx, N, D = x.shape

    def full(shape):
        return pl.BlockSpec(shape, lambda b: (0,) * len(shape))

    return pl.pallas_call(
        functools.partial(_vit_block_kernel, heads=num_heads),
        grid=(Bx,),
        in_specs=[
            pl.BlockSpec((None, N, D), lambda b: (b, 0, 0)),
            full((1, D)), full((1, D)),
            full((D, 3 * D)), full((1, 3 * D)),
            full((D, D)), full((1, D)),
            full((1, D)), full((1, D)),
            full((D, 4 * D)), full((1, 4 * D)),
            full((4 * D, D)), full((1, D)),
        ],
        out_specs=pl.BlockSpec((None, N, D), lambda b: (b, 0, 0)),
        out_shape=jax.ShapeDtypeStruct((Bx, N, D), x.dtype),
        compiler_params=_PARALLEL,
    )(x,
      p["ln1_g"].reshape(1, D), p["ln1_b"].reshape(1, D),
      p["qkv_w"], p["qkv_b"].reshape(1, 3 * D),
      p["proj_w"], p["proj_b"].reshape(1, D),
      p["ln2_g"].reshape(1, D), p["ln2_b"].reshape(1, D),
      p["fc1_w"], p["fc1_b"].reshape(1, 4 * D),
      p["fc2_w"], p["fc2_b"].reshape(1, D))


def cross_interact(xq, xsrc, proj_w, proj_b, gamma, cp, num_heads):
    Bx, Nq, Dq = xq.shape
    Nk, Ds = xsrc.shape[1], xsrc.shape[2]

    def full(r, c):
        return pl.BlockSpec((r, c), lambda b: (0, 0))

    return pl.pallas_call(
        functools.partial(_cross_attn_kernel, heads=num_heads),
        grid=(Bx,),
        in_specs=[
            pl.BlockSpec((None, Nq, Dq), lambda b: (b, 0, 0)),
            pl.BlockSpec((None, Nk, Ds), lambda b: (b, 0, 0)),
            full(Ds, Dq), full(1, Dq),
            full(1, Dq), full(1, Dq), full(1, Dq), full(1, Dq),
            full(Dq, Dq), full(1, Dq),
            full(Dq, Dq), full(1, Dq),
            full(Dq, Dq), full(1, Dq),
            full(Dq, Dq), full(1, Dq),
            full(1, Dq),
        ],
        out_specs=pl.BlockSpec((None, Nq, Dq), lambda b: (b, 0, 0)),
        out_shape=jax.ShapeDtypeStruct((Bx, Nq, Dq), xq.dtype),
        compiler_params=_PARALLEL,
    )(xq, xsrc, proj_w, proj_b.reshape(1, Dq),
      cp["q_ln_g"].reshape(1, Dq), cp["q_ln_b"].reshape(1, Dq),
      cp["kv_ln_g"].reshape(1, Dq), cp["kv_ln_b"].reshape(1, Dq),
      cp["q_w"], cp["q_b"].reshape(1, Dq),
      cp["k_w"], cp["k_b"].reshape(1, Dq),
      cp["v_w"], cp["v_b"].reshape(1, Dq),
      cp["o_w"], cp["o_b"].reshape(1, Dq),
      gamma.reshape(1, Dq))


def interaction(x1, x2, p, num_heads):
    """Bidirectional interaction (with_proj=True, with_cffn=False, drop_path=identity)."""
    # TODO(synk): 'deform' attention (MSDeformAttn) variant not implemented; 'normal' attn only.
    x1 = cross_interact(x1, x2, p["proj_2to1_w"], p["proj_2to1_b"],
                        p["gamma1"], p["attn_2to1"], num_heads)
    x2 = cross_interact(x2, x1, p["proj_1to2_w"], p["proj_1to2_b"],
                        p["gamma2"], p["attn_1to2"], num_heads)
    return x1, x2


def group_norm_tokens(x, gamma, beta, groups=GN_GROUPS, eps=1e-5):
    """nn.GroupNorm(groups, C) applied to tokens (B, N, C) (equivalent to NCHW GroupNorm)."""
    Bx, N, C = x.shape
    pool = _group_pool_matrix(C, groups)
    return pl.pallas_call(
        functools.partial(_gn_tokens_kernel, eps=eps),
        grid=(Bx,),
        in_specs=[
            pl.BlockSpec((None, N, C), lambda b: (b, 0, 0)),
            pl.BlockSpec((C, C), lambda b: (0, 0)),
            pl.BlockSpec((1, C), lambda b: (0, 0)),
            pl.BlockSpec((1, C), lambda b: (0, 0)),
        ],
        out_specs=pl.BlockSpec((None, N, C), lambda b: (b, 0, 0)),
        out_shape=jax.ShapeDtypeStruct(x.shape, x.dtype),
        compiler_params=_PARALLEL,
    )(x, pool, gamma.reshape(1, C), beta.reshape(1, C))


def merge_branch2(t2, params, eps=1e-5):
    Bx, N2, D2 = t2.shape
    D1 = params["merge2_lin_w"].shape[1]
    pool2 = _group_pool_matrix(D2, GN_GROUPS)
    pool1 = _group_pool_matrix(D1, GN_GROUPS)
    return pl.pallas_call(
        functools.partial(_merge2_kernel, eps=eps),
        grid=(Bx,),
        in_specs=[
            pl.BlockSpec((None, N2, D2), lambda b: (b, 0, 0)),
            pl.BlockSpec((D2, D2), lambda b: (0, 0)),
            pl.BlockSpec((1, D2), lambda b: (0, 0)),
            pl.BlockSpec((1, D2), lambda b: (0, 0)),
            pl.BlockSpec((D2, D1), lambda b: (0, 0)),
            pl.BlockSpec((1, D1), lambda b: (0, 0)),
            pl.BlockSpec((D1, D1), lambda b: (0, 0)),
            pl.BlockSpec((1, D1), lambda b: (0, 0)),
            pl.BlockSpec((1, D1), lambda b: (0, 0)),
        ],
        out_specs=pl.BlockSpec((None, N2, D1), lambda b: (b, 0, 0)),
        out_shape=jax.ShapeDtypeStruct((Bx, N2, D1), t2.dtype),
        compiler_params=_PARALLEL,
    )(t2, pool2,
      params["merge2_gn_a_g"].reshape(1, D2), params["merge2_gn_a_b"].reshape(1, D2),
      params["merge2_lin_w"], params["merge2_lin_b"].reshape(1, D1),
      pool1,
      params["merge2_gn_b_g"].reshape(1, D1), params["merge2_gn_b_b"].reshape(1, D1))


def merge_cls_head(f1_tok, f2_tok, params, eps=1e-6):
    """out = cls_head(mean_tokens(cls_norm(w1*f1 + w2*f2))) — one fused kernel."""
    Bx, N, D = f1_tok.shape
    NC = params["cls_head_w"].shape[1]
    f1 = f1_tok.reshape(Bx * N, D)
    f2 = f2_tok.reshape(Bx * N, D)
    rows = jnp.arange(Bx, dtype=jnp.int32)[:, None]
    cols = jnp.arange(Bx * N, dtype=jnp.int32)[None, :]
    pool = jnp.where(cols // N == rows, 1.0 / N, 0.0).astype(jnp.float32)     # (B, B*N)
    return pl.pallas_call(
        functools.partial(_tail_kernel, eps=eps),
        out_shape=jax.ShapeDtypeStruct((Bx, NC), f1_tok.dtype),
        in_specs=[_VMEM, _VMEM, _SMEM, _SMEM, _VMEM, _VMEM, _VMEM, _VMEM, _VMEM],
        out_specs=_VMEM,
    )(f1, f2,
      params["w1"].reshape(1), params["w2"].reshape(1),
      params["cls_norm_g"].reshape(1, D), params["cls_norm_b"].reshape(1, D),
      pool, params["cls_head_w"], params["cls_head_b"].reshape(1, NC))


# ------------------------------- full forward --------------------------------


def piip_forward(params, x):
    bs = x.shape[0]
    scale_1to2 = IMG1 / IMG2
    if scale_1to2 < 1:
        x1 = jax.image.resize(x, (bs, IN_CH, IMG1, IMG1), method="bilinear", antialias=False)
    else:
        x1 = x
    x2 = x

    # forward_embedding (deit path, cls_token=None for both branches); pos-add fused in kernel
    t1 = patch_embed(x1, params["branch1"])
    t2 = patch_embed(x2, params["branch2"])
    H1 = W1 = IMG1 // PATCH
    H2 = W2 = IMG2 // PATCH

    # interleaved branch blocks + interactions
    for i in range(len(IDX1)):
        i1, i2 = IDX1[i], IDX2[i]
        for blk in params["branch1"]["blocks"][i1[0]:i1[-1] + 1]:
            t1 = vit_block(t1, blk, HEADS1)
        for blk in params["branch2"]["blocks"][i2[0]:i2[-1] + 1]:
            t2 = vit_block(t2, blk, HEADS2)
        t1, t2 = interaction(t1, t2, params["interactions"][i], INTER_HEADS)

    # merge_branch1: GroupNorm(32, dim1) in token layout, then bilinear resize to branch2 grid
    f1 = group_norm_tokens(t1, params["merge1_g"], params["merge1_b"])
    f1 = f1.reshape(bs, H1, W1, DIM1)
    f1 = jax.image.resize(f1, (bs, H2, W2, DIM1), method="bilinear", antialias=False)
    f1 = f1.reshape(bs, H2 * W2, DIM1)

    # merge_branch2: GN(32, dim2) -> Linear(dim2, dim1) -> GN(32, dim1), fused (token layout)
    f2 = merge_branch2(t2, params)

    # weighted merge + cls LayerNorm + token mean-pool + classification head, fused
    return merge_cls_head(f1, f2, params)


# --------------------------- deterministic parameter init --------------------


def init_params(seed: int = 0):
    keys = iter(jax.random.split(jax.random.PRNGKey(seed), 512))

    def w(shape, std=0.02):
        return jax.random.normal(next(keys), shape, jnp.float32) * std

    def zeros(shape):
        return jnp.zeros(shape, jnp.float32)

    def ones(shape):
        return jnp.ones(shape, jnp.float32)

    def init_block(dim):
        return dict(
            ln1_g=ones((dim,)), ln1_b=zeros((dim,)),
            qkv_w=w((dim, 3 * dim)), qkv_b=zeros((3 * dim,)),
            proj_w=w((dim, dim)), proj_b=zeros((dim,)),
            ln2_g=ones((dim,)), ln2_b=zeros((dim,)),
            fc1_w=w((dim, 4 * dim)), fc1_b=zeros((4 * dim,)),
            fc2_w=w((4 * dim, dim)), fc2_b=zeros((dim,)),
        )

    def init_cross(dim):
        return dict(
            q_ln_g=ones((dim,)), q_ln_b=zeros((dim,)),
            kv_ln_g=ones((dim,)), kv_ln_b=zeros((dim,)),
            q_w=w((dim, dim)), q_b=zeros((dim,)),
            k_w=w((dim, dim)), k_b=zeros((dim,)),
            v_w=w((dim, dim)), v_b=zeros((dim,)),
            o_w=w((dim, dim)), o_b=zeros((dim,)),
        )

    def init_interaction(d1, d2):
        return dict(
            proj_2to1_w=w((d2, d1)), proj_2to1_b=zeros((d1,)),
            proj_1to2_w=w((d1, d2)), proj_1to2_b=zeros((d2,)),
            gamma1=ones((d1,)), gamma2=ones((d2,)),
            attn_2to1=init_cross(d1), attn_1to2=init_cross(d2),
        )

    def init_branch(img, dim, depth):
        n = (img // PATCH) ** 2
        return dict(
            patch_w=w((IN_CH * PATCH * PATCH, dim)),
            patch_b=zeros((dim,)),
            pos_embed=w((1, n, dim)),
            blocks=[init_block(dim) for _ in range(depth)],
        )

    return dict(
        branch1=init_branch(IMG1, DIM1, DEPTH1),
        branch2=init_branch(IMG2, DIM2, DEPTH2),
        interactions=[init_interaction(DIM1, DIM2) for _ in range(len(IDX1))],
        merge1_g=ones((DIM1,)), merge1_b=zeros((DIM1,)),
        merge2_gn_a_g=ones((DIM2,)), merge2_gn_a_b=zeros((DIM2,)),
        merge2_lin_w=w((DIM2, DIM1)), merge2_lin_b=zeros((DIM1,)),
        merge2_gn_b_g=ones((DIM1,)), merge2_gn_b_b=zeros((DIM1,)),
        w1=jnp.array(1.0, jnp.float32),
        w2=jnp.array(1.0, jnp.float32),
        cls_norm_g=ones((DIM1,)), cls_norm_b=zeros((DIM1,)),
        cls_head_w=w((DIM1, NUM_CLASSES)), cls_head_b=zeros((NUM_CLASSES,)),
    )


# ----------------------------------- main ------------------------------------

if __name__ == "__main__":
    params = init_params(0)
    x = jax.random.normal(jax.random.PRNGKey(0), (B, IN_CH, IMG2, IMG2), jnp.float32)

    fwd = jax.jit(piip_forward)
    out = fwd(params, x)
    out = jax.block_until_ready(out)

    assert out.shape == (B, NUM_CLASSES), out.shape
    assert bool(jnp.all(jnp.isfinite(out)))
    print("KERNEL_OK")
</pallas_src>

<mosaic_0001>
module attributes {stable_mosaic.version = 11 : i64} {
  func.func @_patch_embed_kernel(%arg0: i32, %arg1: memref<1x4x768xf32, #tpu.memory_space<vmem>>, %arg2: memref<768x64xf32, #tpu.memory_space<vmem>>, %arg3: memref<1x64xf32, #tpu.memory_space<vmem>>, %arg4: memref<4x64xf32, #tpu.memory_space<vmem>>, %arg5: memref<1x4x64xf32, #tpu.memory_space<vmem>>) attributes {dimension_semantics = [#tpu.dimension_semantics<parallel>], iteration_bounds = array<i64: 2>, scalar_prefetch = 0 : i64, scratch_operands = 0 : i64, tpu.core_type = #tpu.core_type<tc>, window_params = [{transform_indices = @transform_0, window_bounds = array<i64: 1, 4, 768>}, {pipeline_mode = #tpu.pipeline_mode<synchronous>, transform_indices = @transform_1, window_bounds = array<i64: 768, 64>}, {pipeline_mode = #tpu.pipeline_mode<synchronous>, transform_indices = @transform_2, window_bounds = array<i64: 1, 64>}, {pipeline_mode = #tpu.pipeline_mode<synchronous>, transform_indices = @transform_3, window_bounds = array<i64: 4, 64>}, {transform_indices = @transform_4, window_bounds = array<i64: 1, 4, 64>}]} {
    %c0 = arith.constant 0 : index
    %c0_0 = arith.constant 0 : index
    %c0_1 = arith.constant 0 : index
    %0 = vector.load %arg1[%c0, %c0_0, %c0_1] : memref<1x4x768xf32, #tpu.memory_space<vmem>>, vector<1x4x768xf32>
    %1 = vector.shape_cast %0 : vector<1x4x768xf32> to vector<4x768xf32>
    %c0_2 = arith.constant 0 : index
    %c0_3 = arith.constant 0 : index
    %2 = vector.load %arg2[%c0_2, %c0_3] : memref<768x64xf32, #tpu.memory_space<vmem>>, vector<768x64xf32>
    %cst = arith.constant dense<0.000000e+00> : vector<4x64xf32>
    %3 = tpu.matmul %1, %2, %cst {dimension_numbers = #tpu.dot_dimension_numbers<[1], [0], [0], [1], [0, 0, 1, 1], [], []>} : vector<4x768xf32>, vector<768x64xf32>, vector<4x64xf32> -> vector<4x64xf32>
    %c0_4 = arith.constant 0 : index
    %c0_5 = arith.constant 0 : index
    %4 = vector.load %arg3[%c0_4, %c0_5] : memref<1x64xf32, #tpu.memory_space<vmem>>, vector<1x64xf32>
    %5 = vector.broadcast %4 : vector<1x64xf32> to vector<4x64xf32>
    %6 = arith.addf %3, %5 : vector<4x64xf32>
    %c0_6 = arith.constant 0 : index
    %c0_7 = arith.constant 0 : index
    %7 = vector.load %arg4[%c0_6, %c0_7] : memref<4x64xf32, #tpu.memory_space<vmem>>, vector<4x64xf32>
    %8 = arith.addf %6, %7 : vector<4x64xf32>
    %c0_8 = arith.constant 0 : index
    %c0_9 = arith.constant 0 : index
    %c0_10 = arith.constant 0 : index
    %9 = vector.load %arg5[%c0_8, %c0_9, %c0_10] : memref<1x4x64xf32, #tpu.memory_space<vmem>>, vector<1x4x64xf32>
    %10 = vector.shape_cast %9 : vector<1x4x64xf32> to vector<4x64xf32>
    %11 = vector.shape_cast %8 : vector<4x64xf32> to vector<1x4x64xf32>
    tpu.vector_store %arg5[%c0_8, %c0_9, %c0_10], %11 {strides = array<i32>} : memref<1x4x64xf32, #tpu.memory_space<vmem>>, vector<1x4x64xf32>,
    return
  }
  func.func @transform_0(%arg0: i32) -> (i32, i32, i32) {
    %c0_i32 = arith.constant 0 : i32
    %c0_i32_0 = arith.constant 0 : i32
    %c0_i32_1 = arith.constant 0 : i32
    return %arg0, %c0_i32, %c0_i32_0 : i32, i32, i32
  }
  func.func @transform_1(%arg0: i32) -> (i32, i32) {
    %c0_i32 = arith.constant 0 : i32
    %c0_i32_0 = arith.constant 0 : i32
    %c0_i32_1 = arith.constant 0 : i32
    return %c0_i32, %c0_i32_0 : i32, i32
  }
  func.func @transform_2(%arg0: i32) -> (i32, i32) {
    %c0_i32 = arith.constant 0 : i32
    %c0_i32_0 = arith.constant 0 : i32
    %c0_i32_1 = arith.constant 0 : i32
    return %c0_i32, %c0_i32_0 : i32, i32
  }
  func.func @transform_3(%arg0: i32) -> (i32, i32) {
    %c0_i32 = arith.constant 0 : i32
    %c0_i32_0 = arith.constant 0 : i32
    %c0_i32_1 = arith.constant 0 : i32
    return %c0_i32, %c0_i32_0 : i32, i32
  }
  func.func @transform_4(%arg0: i32) -> (i32, i32, i32) {
    %c0_i32 = arith.constant 0 : i32
    %c0_i32_0 = arith.constant 0 : i32
    %c0_i32_1 = arith.constant 0 : i32
    return %arg0, %c0_i32, %c0_i32_0 : i32, i32, i32
  }
}

module attributes {stable_mosaic.version = 11 : i64} {
  func.func @_vit_block_kernel(%arg0: i32, %arg1: memref<1x4x64xf32, #tpu.memory_space<vmem>>, %arg2: memref<1x64xf32, #tpu.memory_space<vmem>>, %arg3: memref<1x64xf32, #tpu.memory_space<vmem>>, %arg4: memref<64x192xf32, #tpu.memory_space<vmem>>, %arg5: memref<1x192xf32, #tpu.memory_space<vmem>>, %arg6: memref<64x64xf32, #tpu.memory_space<vmem>>, %arg7: memref<1x64xf32, #tpu.memory_space<vmem>>, %arg8: memref<1x64xf32, #tpu.memory_space<vmem>>, %arg9: memref<1x64xf32, #tpu.memory_space<vmem>>, %arg10: memref<64x256xf32, #tpu.memory_space<vmem>>, %arg11: memref<1x256xf32, #tpu.memory_space<vmem>>, %arg12: memref<256x64xf32, #tpu.memory_space<vmem>>, %arg13: memref<1x64xf32, #tpu.memory_space<vmem>>, %arg14: memref<1x4x64xf32, #tpu.memory_space<vmem>>) attributes {dimension_semantics = [#tpu.dimension_semantics<parallel>], iteration_bounds = array<i64: 2>, scalar_prefetch = 0 : i64, scratch_operands = 0 : i64, tpu.core_type = #tpu.core_type<tc>, window_params = [{transform_indices = @transform_0, window_bounds = array<i64: 1, 4, 64>}, {pipeline_mode = #tpu.pipeline_mode<synchronous>, transform_indices = @transform_1, window_bounds = array<i64: 1, 64>}, {pipeline_mode = #tpu.pipeline_mode<synchronous>, transform_indices = @transform_2, window_bounds = array<i64: 1, 64>}, {pipeline_mode = #tpu.pipeline_mode<synchronous>, transform_indices = @transform_3, window_bounds = array<i64: 64, 192>}, {pipeline_mode = #tpu.pipeline_mode<synchronous>, transform_indices = @transform_4, window_bounds = array<i64: 1, 192>}, {pipeline_mode = #tpu.pipeline_mode<synchronous>, transform_indices = @transform_5, window_bounds = array<i64: 64, 64>}, {pipeline_mode = #tpu.pipeline_mode<synchronous>, transform_indices = @transform_6, window_bounds = array<i64: 1, 64>}, {pipeline_mode = #tpu.pipeline_mode<synchronous>, transform_indices = @transform_7, window_bounds = array<i64: 1, 64>}, {pipeline_mode = #tpu.pipeline_mode<synchronous>, transform_indices = @transform_8, window_bounds = array<i64: 1, 64>}, {pipeline_mode = #tpu.pipeline_mode<synchronous>, transform_indices = @transform_9, window_bounds = array<i64: 64, 256>}, {pipeline_mode = #tpu.pipeline_mode<synchronous>, transform_indices = @transform_10, window_bounds = array<i64: 1, 256>}, {pipeline_mode = #tpu.pipeline_mode<synchronous>, transform_indices = @transform_11, window_bounds = array<i64: 256, 64>}, {pipeline_mode = #tpu.pipeline_mode<synchronous>, transform_indices = @transform_12, window_bounds = array<i64: 1, 64>}, {transform_indices = @transform_13, window_bounds = array<i64: 1, 4, 64>}]} {
    %c0 = arith.constant 0 : index
    %c0_0 = arith.constant 0 : index
    %c0_1 = arith.constant 0 : index
    %0 = vector.load %arg1[%c0, %c0_0, %c0_1] : memref<1x4x64xf32, #tpu.memory_space<vmem>>, vector<1x4x64xf32>
    %1 = vector.shape_cast %0 : vector<1x4x64xf32> to vector<4x64xf32>
    %c0_2 = arith.constant 0 : index
    %c0_3 = arith.constant 0 : index
    %2 = vector.load %arg2[%c0_2, %c0_3] : memref<1x64xf32, #tpu.memory_space<vmem>>, vector<1x64xf32>
    %c0_4 = arith.constant 0 : index
    %c0_5 = arith.constant 0 : index
    %3 = vector.load %arg3[%c0_4, %c0_5] : memref<1x64xf32, #tpu.memory_space<vmem>>, vector<1x64xf32>
    %cst = arith.constant dense<0.000000e+00> : vector<4xf32>
    %4 = vector.multi_reduction <add>, %1, %cst [1] : vector<4x64xf32> to vector<4xf32>
    %5 = vector.shape_cast %4 : vector<4xf32> to vector<4x1xf32>
    %cst_6 = arith.constant 6.400000e+01 : f32
    %6 = vector.broadcast %cst_6 : f32 to vector<4x1xf32>
    %7 = arith.divf %5, %6 : vector<4x1xf32>
    %8 = vector.broadcast %7 : vector<4x1xf32> to vector<4x64xf32>
    %9 = arith.subf %1, %8 : vector<4x64xf32>
    %10 = arith.mulf %9, %9 : vector<4x64xf32>
    %cst_7 = arith.constant dense<0.000000e+00> : vector<4xf32>
    %11 = vector.multi_reduction <add>, %10, %cst_7 [1] : vector<4x64xf32> to vector<4xf32>
    %12 = vector.shape_cast %11 : vector<4xf32> to vector<4x1xf32>
    %cst_8 = arith.constant 6.400000e+01 : f32
    %13 = vector.broadcast %cst_8 : f32 to vector<4x1xf32>
    %14 = arith.divf %12, %13 : vector<4x1xf32>
    %15 = vector.broadcast %7 : vector<4x1xf32> to vector<4x64xf32>
    %16 = arith.subf %1, %15 : vector<4x64xf32>
    %cst_9 = arith.constant 9.99999997E-7 : f32
    %17 = vector.broadcast %cst_9 : f32 to vector<4x1xf32>
    %18 = arith.addf %14, %17 : vector<4x1xf32>
    %19 = math.rsqrt %18 : vector<4x1xf32>
    %20 = vector.broadcast %19 : vector<4x1xf32> to vector<4x64xf32>
    %21 = arith.mulf %16, %20 : vector<4x64xf32>
    %22 = vector.broadcast %2 : vector<1x64xf32> to vector<4x64xf32>
    %23 = arith.mulf %21, %22 : vector<4x64xf32>
    %24 = vector.broadcast %3 : vector<1x64xf32> to vector<4x64xf32>
    %25 = arith.addf %23, %24 : vector<4x64xf32>
    %c0_10 = arith.constant 0 : index
    %c0_11 = arith.constant 0 : index
    %26 = vector.load %arg4[%c0_10, %c0_11] : memref<64x192xf32, #tpu.memory_space<vmem>>, vector<64x192xf32>
    %cst_12 = arith.constant dense<0.000000e+00> : vector<4x192xf32>
    %27 = tpu.matmul %25, %26, %cst_12 {dimension_numbers = #tpu.dot_dimension_numbers<[1], [0], [0], [1], [0, 0, 1, 1], [], []>} : vector<4x64xf32>, vector<64x192xf32>, vector<4x192xf32> -> vector<4x192xf32>
    %c0_13 = arith.constant 0 : index
    %c0_14 = arith.constant 0 : index
    %28 = vector.load %arg5[%c0_13, %c0_14] : memref<1x192xf32, #tpu.memory_space<vmem>>, vector<1x192xf32>
    %29 = vector.broadcast %28 : vector<1x192xf32> to vector<4x192xf32>
    %30 = arith.addf %27, %29 : vector<4x192xf32>
    %31 = vector.extract_strided_slice %30 {offsets = [0, 0], sizes = [4, 64], strides = [1, 1]} : vector<4x192xf32> to vector<4x64xf32>
    %32 = vector.extract_strided_slice %30 {offsets = [0, 64], sizes = [4, 64], strides = [1, 1]} : vector<4x192xf32> to vector<4x64xf32>
    %33 = vector.extract_strided_slice %30 {offsets = [0, 128], sizes = [4, 64], strides = [1, 1]} : vector<4x192xf32> to vector<4x64xf32>
    %34 = vector.extract_strided_slice %31 {offsets = [0, 0], sizes = [4, 32], strides = [1, 1]} : vector<4x64xf32> to vector<4x32xf32>
    %35 = vector.extract_strided_slice %32 {offsets = [0, 0], sizes = [4, 32], strides = [1, 1]} : vector<4x64xf32> to vector<4x32xf32>
    %36 = vector.extract_strided_slice %33 {offsets = [0, 0], sizes = [4, 32], strides = [1, 1]} : vector<4x64xf32> to vector<4x32xf32>
    %cst_15 = arith.constant dense<0.000000e+00> : vector<4x4xf32>
    %37 = tpu.matmul %34, %35, %cst_15 {dimension_numbers = #tpu.dot_dimension_numbers<[1], [1], [0], [0], [0, 0, 1, 0], [], []>} : vector<4x32xf32>, vector<4x32xf32>, vector<4x4xf32> -> vector<4x4xf32>
    %cst_16 = arith.constant 0.176776692 : f32
    %38 = vector.broadcast %cst_16 : f32 to vector<4x4xf32>
    %39 = arith.mulf %37, %38 : vector<4x4xf32>
    %cst_17 = arith.constant dense<0xFF800000> : vector<4xf32>
    %40 = vector.multi_reduction <maximumf>, %39, %cst_17 [1] : vector<4x4xf32> to vector<4xf32>
    %41 = vector.shape_cast %40 : vector<4xf32> to vector<4x1xf32>
    %42 = vector.broadcast %41 : vector<4x1xf32> to vector<4x4xf32>
    %43 = arith.subf %39, %42 : vector<4x4xf32>
    %44 = math.exp %43 : vector<4x4xf32>
    %cst_18 = arith.constant dense<0.000000e+00> : vector<4xf32>
    %45 = vector.multi_reduction <add>, %44, %cst_18 [1] : vector<4x4xf32> to vector<4xf32>
    %46 = vector.shape_cast %45 : vector<4xf32> to vector<4x1xf32>
    %47 = tpu.reciprocal %46 {approx = true} : vector<4x1xf32> -> vector<4x1xf32>
    %48 = vector.broadcast %47 : vector<4x1xf32> to vector<4x4xf32>
    %49 = arith.mulf %44, %48 : vector<4x4xf32>
    %cst_19 = arith.constant dense<0.000000e+00> : vector<4x32xf32>
    %50 = tpu.matmul %49, %36, %cst_19 {dimension_numbers = #tpu.dot_dimension_numbers<[1], [0], [0], [1], [0, 0, 1, 1], [], []>} : vector<4x4xf32>, vector<4x32xf32>, vector<4x32xf32> -> vector<4x32xf32>
    %51 = vector.extract_strided_slice %31 {offsets = [0, 32], sizes = [4, 32], strides = [1, 1]} : vector<4x64xf32> to vector<4x32xf32>
    %52 = vector.extract_strided_slice %32 {offsets = [0, 32], sizes = [4, 32], strides = [1, 1]} : vector<4x64xf32> to vector<4x32xf32>
    %53 = vector.extract_strided_slice %33 {offsets = [0, 32], sizes = [4, 32], strides = [1, 1]} : vector<4x64xf32> to vector<4x32xf32>
    %cst_20 = arith.constant dense<0.000000e+00> : vector<4x4xf32>
    %54 = tpu.matmul %51, %52, %cst_20 {dimension_numbers = #tpu.dot_dimension_numbers<[1], [1], [0], [0], [0, 0, 1, 0], [], []>} : vector<4x32xf32>, vector<4x32xf32>, vector<4x4xf32> -> vector<4x4xf32>
    %cst_21 = arith.constant 0.176776692 : f32
    %55 = vector.broadcast %cst_21 : f32 to vector<4x4xf32>
    %56 = arith.mulf %54, %55 : vector<4x4xf32>
    %cst_22 = arith.constant dense<0xFF800000> : vector<4xf32>
    %57 = vector.multi_reduction <maximumf>, %56, %cst_22 [1] : vector<4x4xf32> to vector<4xf32>
    %58 = vector.shape_cast %57 : vector<4xf32> to vector<4x1xf32>
    %59 = vector.broadcast %58 : vector<4x1xf32> to vector<4x4xf32>
    %60 = arith.subf %56, %59 : vector<4x4xf32>
    %61 = math.exp %60 : vector<4x4xf32>
    %cst_23 = arith.constant dense<0.000000e+00> : vector<4xf32>
    %62 = vector.multi_reduction <add>, %61, %cst_23 [1] : vector<4x4xf32> to vector<4xf32>
    %63 = vector.shape_cast %62 : vector<4xf32> to vector<4x1xf32>
    %64 = tpu.reciprocal %63 {approx = true} : vector<4x1xf32> -> vector<4x1xf32>
    %65 = vector.broadcast %64 : vector<4x1xf32> to vector<4x4xf32>
    %66 = arith.mulf %61, %65 : vector<4x4xf32>
    %cst_24 = arith.constant dense<0.000000e+00> : vector<4x32xf32>
    %67 = tpu.matmul %66, %53, %cst_24 {dimension_numbers = #tpu.dot_dimension_numbers<[1], [0], [0], [1], [0, 0, 1, 1], [], []>} : vector<4x4xf32>, vector<4x32xf32>, vector<4x32xf32> -> vector<4x32xf32>
    %68 = tpu.concatenate %50, %67 in 1 : vector<4x32xf32>, vector<4x32xf32> -> vector<4x64xf32>
    %c0_25 = arith.constant 0 : index
    %c0_26 = arith.constant 0 : index
    %69 = vector.load %arg6[%c0_25, %c0_26] : memref<64x64xf32, #tpu.memory_space<vmem>>, vector<64x64xf32>
    %cst_27 = arith.constant dense<0.000000e+00> : vector<4x64xf32>
    %70 = tpu.matmul %68, %69, %cst_27 {dimension_numbers = #tpu.dot_dimension_numbers<[1], [0], [0], [1], [0, 0, 1, 1], [], []>} : vector<4x64xf32>, vector<64x64xf32>, vector<4x64xf32> -> vector<4x64xf32>
    %c0_28 = arith.constant 0 : index
    %c0_29 = arith.constant 0 : index
    %71 = vector.load %arg7[%c0_28, %c0_29] : memref<1x64xf32, #tpu.memory_space<vmem>>, vector<1x64xf32>
    %72 = vector.broadcast %71 : vector<1x64xf32> to vector<4x64xf32>
    %73 = arith.addf %70, %72 : vector<4x64xf32>
    %74 = arith.addf %1, %73 : vector<4x64xf32>
    %c0_30 = arith.constant 0 : index
    %c0_31 = arith.constant 0 : index
    %75 = vector.load %arg8[%c0_30, %c0_31] : memref<1x64xf32, #tpu.memory_space<vmem>>, vector<1x64xf32>
    %c0_32 = arith.constant 0 : index
    %c0_33 = arith.constant 0 : index
    %76 = vector.load %arg9[%c0_32, %c0_33] : memref<1x64xf32, #tpu.memory_space<vmem>>, vector<1x64xf32>
    %cst_34 = arith.constant dense<0.000000e+00> : vector<4xf32>
    %77 = vector.multi_reduction <add>, %74, %cst_34 [1] : vector<4x64xf32> to vector<4xf32>
    %78 = vector.shape_cast %77 : vector<4xf32> to vector<4x1xf32>
    %cst_35 = arith.constant 6.400000e+01 : f32
    %79 = vector.broadcast %cst_35 : f32 to vector<4x1xf32>
    %80 = arith.divf %78, %79 : vector<4x1xf32>
    %81 = vector.broadcast %80 : vector<4x1xf32> to vector<4x64xf32>
    %82 = arith.subf %74, %81 : vector<4x64xf32>
    %83 = arith.mulf %82, %82 : vector<4x64xf32>
    %cst_36 = arith.constant dense<0.000000e+00> : vector<4xf32>
    %84 = vector.multi_reduction <add>, %83, %cst_36 [1] : vector<4x64xf32> to vector<4xf32>
    %85 = vector.shape_cast %84 : vector<4xf32> to vector<4x1xf32>
    %cst_37 = arith.constant 6.400000e+01 : f32
    %86 = vector.broadcast %cst_37 : f32 to vector<4x1xf32>
    %87 = arith.divf %85, %86 : vector<4x1xf32>
    %88 = vector.broadcast %80 : vector<4x1xf32> to vector<4x64xf32>
    %89 = arith.subf %74, %88 : vector<4x64xf32>
    %cst_38 = arith.constant 9.99999997E-7 : f32
    %90 = vector.broadcast %cst_38 : f32 to vector<4x1xf32>
    %91 = arith.addf %87, %90 : vector<4x1xf32>
    %92 = math.rsqrt %91 : vector<4x1xf32>
    %93 = vector.broadcast %92 : vector<4x1xf32> to vector<4x64xf32>
    %94 = arith.mulf %89, %93 : vector<4x64xf32>
    %95 = vector.broadcast %75 : vector<1x64xf32> to vector<4x64xf32>
    %96 = arith.mulf %94, %95 : vector<4x64xf32>
    %97 = vector.broadcast %76 : vector<1x64xf32> to vector<4x64xf32>
    %98 = arith.addf %96, %97 : vector<4x64xf32>
    %c0_39 = arith.constant 0 : index
    %c0_40 = arith.constant 0 : index
    %99 = vector.load %arg10[%c0_39, %c0_40] : memref<64x256xf32, #tpu.memory_space<vmem>>, vector<64x256xf32>
    %cst_41 = arith.constant dense<0.000000e+00> : vector<4x256xf32>
    %100 = tpu.matmul %98, %99, %cst_41 {dimension_numbers = #tpu.dot_dimension_numbers<[1], [0], [0], [1], [0, 0, 1, 1], [], []>} : vector<4x64xf32>, vector<64x256xf32>, vector<4x256xf32> -> vector<4x256xf32>
    %c0_42 = arith.constant 0 : index
    %c0_43 = arith.constant 0 : index
    %101 = vector.load %arg11[%c0_42, %c0_43] : memref<1x256xf32, #tpu.memory_space<vmem>>, vector<1x256xf32>
    %102 = vector.broadcast %101 : vector<1x256xf32> to vector<4x256xf32>
    %103 = arith.addf %100, %102 : vector<4x256xf32>
    %cst_44 = arith.constant 5.000000e-01 : f32
    %104 = vector.broadcast %cst_44 : f32 to vector<4x256xf32>
    %105 = arith.mulf %104, %103 : vector<4x256xf32>
    %cst_45 = arith.constant 4.471500e-02 : f32
    %106 = vector.broadcast %cst_45 : f32 to vector<4x256xf32>
    %107 = arith.mulf %106, %103 : vector<4x256xf32>
    %108 = arith.mulf %107, %103 : vector<4x256xf32>
    %109 = arith.mulf %108, %103 : vector<4x256xf32>
    %110 = arith.addf %103, %109 : vector<4x256xf32>
    %cst_46 = arith.constant 0.797884583 : f32
    %111 = vector.broadcast %cst_46 : f32 to vector<4x256xf32>
    %112 = arith.mulf %111, %110 : vector<4x256xf32>
    %113 = math.tanh %112 : vector<4x256xf32>
    %cst_47 = arith.constant 1.000000e+00 : f32
    %114 = vector.broadcast %cst_47 : f32 to vector<4x256xf32>
    %115 = arith.addf %114, %113 : vector<4x256xf32>
    %116 = arith.mulf %105, %115 : vector<4x256xf32>
    %c0_48 = arith.constant 0 : index
    %c0_49 = arith.constant 0 : index
    %117 = vector.load %arg12[%c0_48, %c0_49] : memref<256x64xf32, #tpu.memory_space<vmem>>, vector<256x64xf32>
    %cst_50 = arith.constant dense<0.000000e+00> : vector<4x64xf32>
    %118 = tpu.matmul %116, %117, %cst_50 {dimension_numbers = #tpu.dot_dimension_numbers<[1], [0], [0], [1], [0, 0, 1, 1], [], []>} : vector<4x256xf32>, vector<256x64xf32>, vector<4x64xf32> -> vector<4x64xf32>
    %c0_51 = arith.constant 0 : index
    %c0_52 = arith.constant 0 : index
    %119 = vector.load %arg13[%c0_51, %c0_52] : memref<1x64xf32, #tpu.memory_space<vmem>>, vector<1x64xf32>
    %120 = vector.broadcast %119 : vector<1x64xf32> to vector<4x64xf32>
    %121 = arith.addf %118, %120 : vector<4x64xf32>
    %122 = arith.addf %74, %121 : vector<4x64xf32>
    %c0_53 = arith.constant 0 : index
    %c0_54 = arith.constant 0 : index
    %c0_55 = arith.constant 0 : index
    %123 = vector.load %arg14[%c0_53, %c0_54, %c0_55] : memref<1x4x64xf32, #tpu.memory_space<vmem>>, vector<1x4x64xf32>
    %124 = vector.shape_cast %123 : vector<1x4x64xf32> to vector<4x64xf32>
    %125 = vector.shape_cast %122 : vector<4x64xf32> to vector<1x4x64xf32>
    tpu.vector_store %arg14[%c0_53, %c0_54, %c0_55], %125 {strides = array<i32>} : memref<1x4x64xf32, #tpu.memory_space<vmem>>, vector<1x4x64xf32>,
    return
  }
  func.func @transform_0(%arg0: i32) -> (i32, i32, i32) {
    %c0_i32 = arith.constant 0 : i32
    %c0_i32_0 = arith.constant 0 : i32
    %c0_i32_1 = arith.constant 0 : i32
    return %arg0, %c0_i32, %c0_i32_0 : i32, i32, i32
  }
  func.func @transform_1(%arg0: i32) -> (i32, i32) {
    %c0_i32 = arith.constant 0 : i32
    %c0_i32_0 = arith.constant 0 : i32
    %c0_i32_1 = arith.constant 0 : i32
    return %c0_i32, %c0_i32_0 : i32, i32
  }
  func.func @transform_2(%arg0: i32) -> (i32, i32) {
    %c0_i32 = arith.constant 0 : i32
    %c0_i32_0 = arith.constant 0 : i32
    %c0_i32_1 = arith.constant 0 : i32
    return %c0_i32, %c0_i32_0 : i32, i32
  }
  func.func @transform_3(%arg0: i32) -> (i32, i32) {
    %c0_i32 = arith.constant 0 : i32
    %c0_i32_0 = arith.constant 0 : i32
    %c0_i32_1 = arith.constant 0 : i32
    return %c0_i32, %c0_i32_0 : i32, i32
  }
  func.func @transform_4(%arg0: i32) -> (i32, i32) {
    %c0_i32 = arith.constant 0 : i32
    %c0_i32_0 = arith.constant 0 : i32
    %c0_i32_1 = arith.constant 0 : i32
    return %c0_i32, %c0_i32_0 : i32, i32
  }
  func.func @transform_5(%arg0: i32) -> (i32, i32) {
    %c0_i32 = arith.constant 0 : i32
    %c0_i32_0 = arith.constant 0 : i32
    %c0_i32_1 = arith.constant 0 : i32
    return %c0_i32, %c0_i32_0 : i32, i32
  }
  func.func @transform_6(%arg0: i32) -> (i32, i32) {
    %c0_i32 = arith.constant 0 : i32
    %c0_i32_0 = arith.constant 0 : i32
    %c0_i32_1 = arith.constant 0 : i32
    return %c0_i32, %c0_i32_0 : i32, i32
  }
  func.func @transform_7(%arg0: i32) -> (i32, i32) {
    %c0_i32 = arith.constant 0 : i32
    %c0_i32_0 = arith.constant 0 : i32
    %c0_i32_1 = arith.constant 0 : i32
    return %c0_i32, %c0_i32_0 : i32, i32
  }
  func.func @transform_8(%arg0: i32) -> (i32, i32) {
    %c0_i32 = arith.constant 0 : i32
    %c0_i32_0 = arith.constant 0 : i32
    %c0_i32_1 = arith.constant 0 : i32
    return %c0_i32, %c0_i32_0 : i32, i32
  }
  func.func @transform_9(%arg0: i32) -> (i32, i32) {
    %c0_i32 = arith.constant 0 : i32
    %c0_i32_0 = arith.constant 0 : i32
    %c0_i32_1 = arith.constant 0 : i32
    return %c0_i32, %c0_i32_0 : i32, i32
  }
  func.func @transform_10(%arg0: i32) -> (i32, i32) {
    %c0_i32 = arith.constant 0 : i32
    %c0_i32_0 = arith.constant 0 : i32
    %c0_i32_1 = arith.constant 0 : i32
    return %c0_i32, %c0_i32_0 : i32, i32
  }
  func.func @transform_11(%arg0: i32) -> (i32, i32) {
    %c0_i32 = arith.constant 0 : i32
    %c0_i32_0 = arith.constant 0 : i32
    %c0_i32_1 = arith.constant 0 : i32
    return %c0_i32, %c0_i32_0 : i32, i32
  }
  func.func @transform_12(%arg0: i32) -> (i32, i32) {
    %c0_i32 = arith.constant 0 : i32
    %c0_i32_0 = arith.constant 0 : i32
    %c0_i32_1 = arith.constant 0 : i32
    return %c0_i32, %c0_i32_0 : i32, i32
  }
  func.func @transform_13(%arg0: i32) -> (i32, i32, i32) {
    %c0_i32 = arith.constant 0 : i32
    %c0_i32_0 = arith.constant 0 : i32
    %c0_i32_1 = arith.constant 0 : i32
    return %arg0, %c0_i32, %c0_i32_0 : i32, i32, i32
  }
}

module attributes {stable_mosaic.version = 11 : i64} {
  func.func @_patch_embed_kernel(%arg0: i32, %arg1: memref<1x16x768xf32, #tpu.memory_space<vmem>>, %arg2: memref<768x32xf32, #tpu.memory_space<vmem>>, %arg3: memref<1x32xf32, #tpu.memory_space<vmem>>, %arg4: memref<16x32xf32, #tpu.memory_space<vmem>>, %arg5: memref<1x16x32xf32, #tpu.memory_space<vmem>>) attributes {dimension_semantics = [#tpu.dimension_semantics<parallel>], iteration_bounds = array<i64: 2>, scalar_prefetch = 0 : i64, scratch_operands = 0 : i64, tpu.core_type = #tpu.core_type<tc>, window_params = [{transform_indices = @transform_0, window_bounds = array<i64: 1, 16, 768>}, {pipeline_mode = #tpu.pipeline_mode<synchronous>, transform_indices = @transform_1, window_bounds = array<i64: 768, 32>}, {pipeline_mode = #tpu.pipeline_mode<synchronous>, transform_indices = @transform_2, window_bounds = array<i64: 1, 32>}, {pipeline_mode = #tpu.pipeline_mode<synchronous>, transform_indices = @transform_3, window_bounds = array<i64: 16, 32>}, {transform_indices = @transform_4, window_bounds = array<i64: 1, 16, 32>}]} {
    %c0 = arith.constant 0 : index
    %c0_0 = arith.constant 0 : index
    %c0_1 = arith.constant 0 : index
    %0 = vector.load %arg1[%c0, %c0_0, %c0_1] : memref<1x16x768xf32, #tpu.memory_space<vmem>>, vector<1x16x768xf32>
    %1 = vector.shape_cast %0 : vector<1x16x768xf32> to vector<16x768xf32>
    %c0_2 = arith.constant 0 : index
    %c0_3 = arith.constant 0 : index
    %2 = vector.load %arg2[%c0_2, %c0_3] : memref<768x32xf32, #tpu.memory_space<vmem>>, vector<768x32xf32>
    %cst = arith.constant dense<0.000000e+00> : vector<16x32xf32>
    %3 = tpu.matmul %1, %2, %cst {dimension_numbers = #tpu.dot_dimension_numbers<[1], [0], [0], [1], [0, 0, 1, 1], [], []>} : vector<16x768xf32>, vector<768x32xf32>, vector<16x32xf32> -> vector<16x32xf32>
    %c0_4 = arith.constant 0 : index
    %c0_5 = arith.constant 0 : index
    %4 = vector.load %arg3[%c0_4, %c0_5] : memref<1x32xf32, #tpu.memory_space<vmem>>, vector<1x32xf32>
    %5 = vector.broadcast %4 : vector<1x32xf32> to vector<16x32xf32>
    %6 = arith.addf %3, %5 : vector<16x32xf32>
    %c0_6 = arith.constant 0 : index
    %c0_7 = arith.constant 0 : index
    %7 = vector.load %arg4[%c0_6, %c0_7] : memref<16x32xf32, #tpu.memory_space<vmem>>, vector<16x32xf32>
    %8 = arith.addf %6, %7 : vector<16x32xf32>
    %c0_8 = arith.constant 0 : index
    %c0_9 = arith.constant 0 : index
    %c0_10 = arith.constant 0 : index
    %9 = vector.load %arg5[%c0_8, %c0_9, %c0_10] : memref<1x16x32xf32, #tpu.memory_space<vmem>>, vector<1x16x32xf32>
    %10 = vector.shape_cast %9 : vector<1x16x32xf32> to vector<16x32xf32>
    %11 = vector.shape_cast %8 : vector<16x32xf32> to vector<1x16x32xf32>
    tpu.vector_store %arg5[%c0_8, %c0_9, %c0_10], %11 {strides = array<i32>} : memref<1x16x32xf32, #tpu.memory_space<vmem>>, vector<1x16x32xf32>,
    return
  }
  func.func @transform_0(%arg0: i32) -> (i32, i32, i32) {
    %c0_i32 = arith.constant 0 : i32
    %c0_i32_0 = arith.constant 0 : i32
    %c0_i32_1 = arith.constant 0 : i32
    return %arg0, %c0_i32, %c0_i32_0 : i32, i32, i32
  }
  func.func @transform_1(%arg0: i32) -> (i32, i32) {
    %c0_i32 = arith.constant 0 : i32
    %c0_i32_0 = arith.constant 0 : i32
    %c0_i32_1 = arith.constant 0 : i32
    return %c0_i32, %c0_i32_0 : i32, i32
  }
  func.func @transform_2(%arg0: i32) -> (i32, i32) {
    %c0_i32 = arith.constant 0 : i32
    %c0_i32_0 = arith.constant 0 : i32
    %c0_i32_1 = arith.constant 0 : i32
    return %c0_i32, %c0_i32_0 : i32, i32
  }
  func.func @transform_3(%arg0: i32) -> (i32, i32) {
    %c0_i32 = arith.constant 0 : i32
    %c0_i32_0 = arith.constant 0 : i32
    %c0_i32_1 = arith.constant 0 : i32
    return %c0_i32, %c0_i32_0 : i32, i32
  }
  func.func @transform_4(%arg0: i32) -> (i32, i32, i32) {
    %c0_i32 = arith.constant 0 : i32
    %c0_i32_0 = arith.constant 0 : i32
    %c0_i32_1 = arith.constant 0 : i32
    return %arg0, %c0_i32, %c0_i32_0 : i32, i32, i32
  }
}

module attributes {stable_mosaic.version = 11 : i64} {
  func.func @_cross_attn_kernel(%arg0: i32, %arg1: memref<1x4x64xf32, #tpu.memory_space<vmem>>, %arg2: memref<1x16x32xf32, #tpu.memory_space<vmem>>, %arg3: memref<32x64xf32, #tpu.memory_space<vmem>>, %arg4: memref<1x64xf32, #tpu.memory_space<vmem>>, %arg5: memref<1x64xf32, #tpu.memory_space<vmem>>, %arg6: memref<1x64xf32, #tpu.memory_space<vmem>>, %arg7: memref<1x64xf32, #tpu.memory_space<vmem>>, %arg8: memref<1x64xf32, #tpu.memory_space<vmem>>, %arg9: memref<64x64xf32, #tpu.memory_space<vmem>>, %arg10: memref<1x64xf32, #tpu.memory_space<vmem>>, %arg11: memref<64x64xf32, #tpu.memory_space<vmem>>, %arg12: memref<1x64xf32, #tpu.memory_space<vmem>>, %arg13: memref<64x64xf32, #tpu.memory_space<vmem>>, %arg14: memref<1x64xf32, #tpu.memory_space<vmem>>, %arg15: memref<64x64xf32, #tpu.memory_space<vmem>>, %arg16: memref<1x64xf32, #tpu.memory_space<vmem>>, %arg17: memref<1x64xf32, #tpu.memory_space<vmem>>, %arg18: memref<1x4x64xf32, #tpu.memory_space<vmem>>) attributes {dimension_semantics = [#tpu.dimension_semantics<parallel>], iteration_bounds = array<i64: 2>, scalar_prefetch = 0 : i64, scratch_operands = 0 : i64, tpu.core_type = #tpu.core_type<tc>, window_params = [{transform_indices = @transform_0, window_bounds = array<i64: 1, 4, 64>}, {transform_indices = @transform_1, window_bounds = array<i64: 1, 16, 32>}, {pipeline_mode = #tpu.pipeline_mode<synchronous>, transform_indices = @transform_2, window_bounds = array<i64: 32, 64>}, {pipeline_mode = #tpu.pipeline_mode<synchronous>, transform_indices = @transform_3, window_bounds = array<i64: 1, 64>}, {pipeline_mode = #tpu.pipeline_mode<synchronous>, transform_indices = @transform_4, window_bounds = array<i64: 1, 64>}, {pipeline_mode = #tpu.pipeline_mode<synchronous>, transform_indices = @transform_5, window_bounds = array<i64: 1, 64>}, {pipeline_mode = #tpu.pipeline_mode<synchronous>, transform_indices = @transform_6, window_bounds = array<i64: 1, 64>}, {pipeline_mode = #tpu.pipeline_mode<synchronous>, transform_indices = @transform_7, window_bounds = array<i64: 1, 64>}, {pipeline_mode = #tpu.pipeline_mode<synchronous>, transform_indices = @transform_8, window_bounds = array<i64: 64, 64>}, {pipeline_mode = #tpu.pipeline_mode<synchronous>, transform_indices = @transform_9, window_bounds = array<i64: 1, 64>}, {pipeline_mode = #tpu.pipeline_mode<synchronous>, transform_indices = @transform_10, window_bounds = array<i64: 64, 64>}, {pipeline_mode = #tpu.pipeline_mode<synchronous>, transform_indices = @transform_11, window_bounds = array<i64: 1, 64>}, {pipeline_mode = #tpu.pipeline_mode<synchronous>, transform_indices = @transform_12, window_bounds = array<i64: 64, 64>}, {pipeline_mode = #tpu.pipeline_mode<synchronous>, transform_indices = @transform_13, window_bounds = array<i64: 1, 64>}, {pipeline_mode = #tpu.pipeline_mode<synchronous>, transform_indices = @transform_14, window_bounds = array<i64: 64, 64>}, {pipeline_mode = #tpu.pipeline_mode<synchronous>, transform_indices = @transform_15, window_bounds = array<i64: 1, 64>}, {pipeline_mode = #tpu.pipeline_mode<synchronous>, transform_indices = @transform_16, window_bounds = array<i64: 1, 64>}, {transform_indices = @transform_17, window_bounds = array<i64: 1, 4, 64>}]} {
    %c0 = arith.constant 0 : index
    %c0_0 = arith.constant 0 : index
    %c0_1 = arith.constant 0 : index
    %0 = vector.load %arg1[%c0, %c0_0, %c0_1] : memref<1x4x64xf32, #tpu.memory_space<vmem>>, vector<1x4x64xf32>
    %1 = vector.shape_cast %0 : vector<1x4x64xf32> to vector<4x64xf32>
    %c0_2 = arith.constant 0 : index
    %c0_3 = arith.constant 0 : index
    %c0_4 = arith.constant 0 : index
    %2 = vector.load %arg2[%c0_2, %c0_3, %c0_4] : memref<1x16x32xf32, #tpu.memory_space<vmem>>, vector<1x16x32xf32>
    %3 = vector.shape_cast %2 : vector<1x16x32xf32> to vector<16x32xf32>
    %c0_5 = arith.constant 0 : index
    %c0_6 = arith.constant 0 : index
    %4 = vector.load %arg3[%c0_5, %c0_6] : memref<32x64xf32, #tpu.memory_space<vmem>>, vector<32x64xf32>
    %cst = arith.constant dense<0.000000e+00> : vector<16x64xf32>
    %5 = tpu.matmul %3, %4, %cst {dimension_numbers = #tpu.dot_dimension_numbers<[1], [0], [0], [1], [0, 0, 1, 1], [], []>} : vector<16x32xf32>, vector<32x64xf32>, vector<16x64xf32> -> vector<16x64xf32>
    %c0_7 = arith.constant 0 : index
    %c0_8 = arith.constant 0 : index
    %6 = vector.load %arg4[%c0_7, %c0_8] : memref<1x64xf32, #tpu.memory_space<vmem>>, vector<1x64xf32>
    %7 = vector.broadcast %6 : vector<1x64xf32> to vector<16x64xf32>
    %8 = arith.addf %5, %7 : vector<16x64xf32>
    %c0_9 = arith.constant 0 : index
    %c0_10 = arith.constant 0 : index
    %9 = vector.load %arg5[%c0_9, %c0_10] : memref<1x64xf32, #tpu.memory_space<vmem>>, vector<1x64xf32>
    %c0_11 = arith.constant 0 : index
    %c0_12 = arith.constant 0 : index
    %10 = vector.load %arg6[%c0_11, %c0_12] : memref<1x64xf32, #tpu.memory_space<vmem>>, vector<1x64xf32>
    %cst_13 = arith.constant dense<0.000000e+00> : vector<4xf32>
    %11 = vector.multi_reduction <add>, %1, %cst_13 [1] : vector<4x64xf32> to vector<4xf32>
    %12 = vector.shape_cast %11 : vector<4xf32> to vector<4x1xf32>
    %cst_14 = arith.constant 6.400000e+01 : f32
    %13 = vector.broadcast %cst_14 : f32 to vector<4x1xf32>
    %14 = arith.divf %12, %13 : vector<4x1xf32>
    %15 = vector.broadcast %14 : vector<4x1xf32> to vector<4x64xf32>
    %16 = arith.subf %1, %15 : vector<4x64xf32>
    %17 = arith.mulf %16, %16 : vector<4x64xf32>
    %cst_15 = arith.constant dense<0.000000e+00> : vector<4xf32>
    %18 = vector.multi_reduction <add>, %17, %cst_15 [1] : vector<4x64xf32> to vector<4xf32>
    %19 = vector.shape_cast %18 : vector<4xf32> to vector<4x1xf32>
    %cst_16 = arith.constant 6.400000e+01 : f32
    %20 = vector.broadcast %cst_16 : f32 to vector<4x1xf32>
    %21 = arith.divf %19, %20 : vector<4x1xf32>
    %22 = vector.broadcast %14 : vector<4x1xf32> to vector<4x64xf32>
    %23 = arith.subf %1, %22 : vector<4x64xf32>
    %cst_17 = arith.constant 9.99999997E-7 : f32
    %24 = vector.broadcast %cst_17 : f32 to vector<4x1xf32>
    %25 = arith.addf %21, %24 : vector<4x1xf32>
    %26 = math.rsqrt %25 : vector<4x1xf32>
    %27 = vector.broadcast %26 : vector<4x1xf32> to vector<4x64xf32>
    %28 = arith.mulf %23, %27 : vector<4x64xf32>
    %29 = vector.broadcast %9 : vector<1x64xf32> to vector<4x64xf32>
    %30 = arith.mulf %28, %29 : vector<4x64xf32>
    %31 = vector.broadcast %10 : vector<1x64xf32> to vector<4x64xf32>
    %32 = arith.addf %30, %31 : vector<4x64xf32>
    %c0_18 = arith.constant 0 : index
    %c0_19 = arith.constant 0 : index
    %33 = vector.load %arg7[%c0_18, %c0_19] : memref<1x64xf32, #tpu.memory_space<vmem>>, vector<1x64xf32>
    %c0_20 = arith.constant 0 : index
    %c0_21 = arith.constant 0 : index
    %34 = vector.load %arg8[%c0_20, %c0_21] : memref<1x64xf32, #tpu.memory_space<vmem>>, vector<1x64xf32>
    %cst_22 = arith.constant dense<0.000000e+00> : vector<16xf32>
    %35 = vector.multi_reduction <add>, %8, %cst_22 [1] : vector<16x64xf32> to vector<16xf32>
    %36 = vector.shape_cast %35 : vector<16xf32> to vector<16x1xf32>
    %cst_23 = arith.constant 6.400000e+01 : f32
    %37 = vector.broadcast %cst_23 : f32 to vector<16x1xf32>
    %38 = arith.divf %36, %37 : vector<16x1xf32>
    %39 = vector.broadcast %38 : vector<16x1xf32> to vector<16x64xf32>
    %40 = arith.subf %8, %39 : vector<16x64xf32>
    %41 = arith.mulf %40, %40 : vector<16x64xf32>
    %cst_24 = arith.constant dense<0.000000e+00> : vector<16xf32>
    %42 = vector.multi_reduction <add>, %41, %cst_24 [1] : vector<16x64xf32> to vector<16xf32>
    %43 = vector.shape_cast %42 : vector<16xf32> to vector<16x1xf32>
    %cst_25 = arith.constant 6.400000e+01 : f32
    %44 = vector.broadcast %cst_25 : f32 to vector<16x1xf32>
    %45 = arith.divf %43, %44 : vector<16x1xf32>
    %46 = vector.broadcast %38 : vector<16x1xf32> to vector<16x64xf32>
    %47 = arith.subf %8, %46 : vector<16x64xf32>
    %cst_26 = arith.constant 9.99999997E-7 : f32
    %48 = vector.broadcast %cst_26 : f32 to vector<16x1xf32>
    %49 = arith.addf %45, %48 : vector<16x1xf32>
    %50 = math.rsqrt %49 : vector<16x1xf32>
    %51 = vector.broadcast %50 : vector<16x1xf32> to vector<16x64xf32>
    %52 = arith.mulf %47, %51 : vector<16x64xf32>
    %53 = vector.broadcast %33 : vector<1x64xf32> to vector<16x64xf32>
    %54 = arith.mulf %52, %53 : vector<16x64xf32>
    %55 = vector.broadcast %34 : vector<1x64xf32> to vector<16x64xf32>
    %56 = arith.addf %54, %55 : vector<16x64xf32>
    %c0_27 = arith.constant 0 : index
    %c0_28 = arith.constant 0 : index
    %57 = vector.load %arg9[%c0_27, %c0_28] : memref<64x64xf32, #tpu.memory_space<vmem>>, vector<64x64xf32>
    %cst_29 = arith.constant dense<0.000000e+00> : vector<4x64xf32>
    %58 = tpu.matmul %32, %57, %cst_29 {dimension_numbers = #tpu.dot_dimension_numbers<[1], [0], [0], [1], [0, 0, 1, 1], [], []>} : vector<4x64xf32>, vector<64x64xf32>, vector<4x64xf32> -> vector<4x64xf32>
    %c0_30 = arith.constant 0 : index
    %c0_31 = arith.constant 0 : index
    %59 = vector.load %arg10[%c0_30, %c0_31] : memref<1x64xf32, #tpu.memory_space<vmem>>, vector<1x64xf32>
    %60 = vector.broadcast %59 : vector<1x64xf32> to vector<4x64xf32>
    %61 = arith.addf %58, %60 : vector<4x64xf32>
    %c0_32 = arith.constant 0 : index
    %c0_33 = arith.constant 0 : index
    %62 = vector.load %arg11[%c0_32, %c0_33] : memref<64x64xf32, #tpu.memory_space<vmem>>, vector<64x64xf32>
    %cst_34 = arith.constant dense<0.000000e+00> : vector<16x64xf32>
    %63 = tpu.matmul %56, %62, %cst_34 {dimension_numbers = #tpu.dot_dimension_numbers<[1], [0], [0], [1], [0, 0, 1, 1], [], []>} : vector<16x64xf32>, vector<64x64xf32>, vector<16x64xf32> -> vector<16x64xf32>
    %c0_35 = arith.constant 0 : index
    %c0_36 = arith.constant 0 : index
    %64 = vector.load %arg12[%c0_35, %c0_36] : memref<1x64xf32, #tpu.memory_space<vmem>>, vector<1x64xf32>
    %65 = vector.broadcast %64 : vector<1x64xf32> to vector<16x64xf32>
    %66 = arith.addf %63, %65 : vector<16x64xf32>
    %c0_37 = arith.constant 0 : index
    %c0_38 = arith.constant 0 : index
    %67 = vector.load %arg13[%c0_37, %c0_38] : memref<64x64xf32, #tpu.memory_space<vmem>>, vector<64x64xf32>
    %cst_39 = arith.constant dense<0.000000e+00> : vector<16x64xf32>
    %68 = tpu.matmul %56, %67, %cst_39 {dimension_numbers = #tpu.dot_dimension_numbers<[1], [0], [0], [1], [0, 0, 1, 1], [], []>} : vector<16x64xf32>, vector<64x64xf32>, vector<16x64xf32> -> vector<16x64xf32>
    %c0_40 = arith.constant 0 : index
    %c0_41 = arith.constant 0 : index
    %69 = vector.load %arg14[%c0_40, %c0_41] : memref<1x64xf32, #tpu.memory_space<vmem>>, vector<1x64xf32>
    %70 = vector.broadcast %69 : vector<1x64xf32> to vector<16x64xf32>
    %71 = arith.addf %68, %70 : vector<16x64xf32>
    %72 = vector.extract_strided_slice %61 {offsets = [0, 0], sizes = [4, 32], strides = [1, 1]} : vector<4x64xf32> to vector<4x32xf32>
    %73 = vector.extract_strided_slice %66 {offsets = [0, 0], sizes = [16, 32], strides = [1, 1]} : vector<16x64xf32> to vector<16x32xf32>
    %74 = vector.extract_strided_slice %71 {offsets = [0, 0], sizes = [16, 32], strides = [1, 1]} : vector<16x64xf32> to vector<16x32xf32>
    %cst_42 = arith.constant dense<0.000000e+00> : vector<4x16xf32>
    %75 = tpu.matmul %72, %73, %cst_42 {dimension_numbers = #tpu.dot_dimension_numbers<[1], [1], [0], [0], [0, 0, 1, 0], [], []>} : vector<4x32xf32>, vector<16x32xf32>, vector<4x16xf32> -> vector<4x16xf32>
    %cst_43 = arith.constant 0.176776692 : f32
    %76 = vector.broadcast %cst_43 : f32 to vector<4x16xf32>
    %77 = arith.mulf %75, %76 : vector<4x16xf32>
    %cst_44 = arith.constant dense<0xFF800000> : vector<4xf32>
    %78 = vector.multi_reduction <maximumf>, %77, %cst_44 [1] : vector<4x16xf32> to vector<4xf32>
    %79 = vector.shape_cast %78 : vector<4xf32> to vector<4x1xf32>
    %80 = vector.broadcast %79 : vector<4x1xf32> to vector<4x16xf32>
    %81 = arith.subf %77, %80 : vector<4x16xf32>
    %82 = math.exp %81 : vector<4x16xf32>
    %cst_45 = arith.constant dense<0.000000e+00> : vector<4xf32>
    %83 = vector.multi_reduction <add>, %82, %cst_45 [1] : vector<4x16xf32> to vector<4xf32>
    %84 = vector.shape_cast %83 : vector<4xf32> to vector<4x1xf32>
    %85 = tpu.reciprocal %84 {approx = true} : vector<4x1xf32> -> vector<4x1xf32>
    %86 = vector.broadcast %85 : vector<4x1xf32> to vector<4x16xf32>
    %87 = arith.mulf %82, %86 : vector<4x16xf32>
    %cst_46 = arith.constant dense<0.000000e+00> : vector<4x32xf32>
    %88 = tpu.matmul %87, %74, %cst_46 {dimension_numbers = #tpu.dot_dimension_numbers<[1], [0], [0], [1], [0, 0, 1, 1], [], []>} : vector<4x16xf32>, vector<16x32xf32>, vector<4x32xf32> -> vector<4x32xf32>
    %89 = vector.extract_strided_slice %61 {offsets = [0, 32], sizes = [4, 32], strides = [1, 1]} : vector<4x64xf32> to vector<4x32xf32>
    %90 = vector.extract_strided_slice %66 {offsets = [0, 32], sizes = [16, 32], strides = [1, 1]} : vector<16x64xf32> to vector<16x32xf32>
    %91 = vector.extract_strided_slice %71 {offsets = [0, 32], sizes = [16, 32], strides = [1, 1]} : vector<16x64xf32> to vector<16x32xf32>
    %cst_47 = arith.constant dense<0.000000e+00> : vector<4x16xf32>
    %92 = tpu.matmul %89, %90, %cst_47 {dimension_numbers = #tpu.dot_dimension_numbers<[1], [1], [0], [0], [0, 0, 1, 0], [], []>} : vector<4x32xf32>, vector<16x32xf32>, vector<4x16xf32> -> vector<4x16xf32>
    %cst_48 = arith.constant 0.176776692 : f32
    %93 = vector.broadcast %cst_48 : f32 to vector<4x16xf32>
    %94 = arith.mulf %92, %93 : vector<4x16xf32>
    %cst_49 = arith.constant dense<0xFF800000> : vector<4xf32>
    %95 = vector.multi_reduction <maximumf>, %94, %cst_49 [1] : vector<4x16xf32> to vector<4xf32>
    %96 = vector.shape_cast %95 : vector<4xf32> to vector<4x1xf32>
    %97 = vector.broadcast %96 : vector<4x1xf32> to vector<4x16xf32>
    %98 = arith.subf %94, %97 : vector<4x16xf32>
    %99 = math.exp %98 : vector<4x16xf32>
    %cst_50 = arith.constant dense<0.000000e+00> : vector<4xf32>
    %100 = vector.multi_reduction <add>, %99, %cst_50 [1] : vector<4x16xf32> to vector<4xf32>
    %101 = vector.shape_cast %100 : vector<4xf32> to vector<4x1xf32>
    %102 = tpu.reciprocal %101 {approx = true} : vector<4x1xf32> -> vector<4x1xf32>
    %103 = vector.broadcast %102 : vector<4x1xf32> to vector<4x16xf32>
    %104 = arith.mulf %99, %103 : vector<4x16xf32>
    %cst_51 = arith.constant dense<0.000000e+00> : vector<4x32xf32>
    %105 = tpu.matmul %104, %91, %cst_51 {dimension_numbers = #tpu.dot_dimension_numbers<[1], [0], [0], [1], [0, 0, 1, 1], [], []>} : vector<4x16xf32>, vector<16x32xf32>, vector<4x32xf32> -> vector<4x32xf32>
    %106 = tpu.concatenate %88, %105 in 1 : vector<4x32xf32>, vector<4x32xf32> -> vector<4x64xf32>
    %c0_52 = arith.constant 0 : index
    %c0_53 = arith.constant 0 : index
    %107 = vector.load %arg15[%c0_52, %c0_53] : memref<64x64xf32, #tpu.memory_space<vmem>>, vector<64x64xf32>
    %cst_54 = arith.constant dense<0.000000e+00> : vector<4x64xf32>
    %108 = tpu.matmul %106, %107, %cst_54 {dimension_numbers = #tpu.dot_dimension_numbers<[1], [0], [0], [1], [0, 0, 1, 1], [], []>} : vector<4x64xf32>, vector<64x64xf32>, vector<4x64xf32> -> vector<4x64xf32>
    %c0_55 = arith.constant 0 : index
    %c0_56 = arith.constant 0 : index
    %109 = vector.load %arg16[%c0_55, %c0_56] : memref<1x64xf32, #tpu.memory_space<vmem>>, vector<1x64xf32>
    %110 = vector.broadcast %109 : vector<1x64xf32> to vector<4x64xf32>
    %111 = arith.addf %108, %110 : vector<4x64xf32>
    %c0_57 = arith.constant 0 : index
    %c0_58 = arith.constant 0 : index
    %112 = vector.load %arg17[%c0_57, %c0_58] : memref<1x64xf32, #tpu.memory_space<vmem>>, vector<1x64xf32>
    %113 = vector.broadcast %112 : vector<1x64xf32> to vector<4x64xf32>
    %114 = arith.mulf %113, %111 : vector<4x64xf32>
    %115 = arith.addf %1, %114 : vector<4x64xf32>
    %c0_59 = arith.constant 0 : index
    %c0_60 = arith.constant 0 : index
    %c0_61 = arith.constant 0 : index
    %116 = vector.load %arg18[%c0_59, %c0_60, %c0_61] : memref<1x4x64xf32, #tpu.memory_space<vmem>>, vector<1x4x64xf32>
    %117 = vector.shape_cast %116 : vector<1x4x64xf32> to vector<4x64xf32>
    %118 = vector.shape_cast %115 : vector<4x64xf32> to vector<1x4x64xf32>
    tpu.vector_store %arg18[%c0_59, %c0_60, %c0_61], %118 {strides = array<i32>} : memref<1x4x64xf32, #tpu.memory_space<vmem>>, vector<1x4x64xf32>,
    return
  }
  func.func @transform_0(%arg0: i32) -> (i32, i32, i32) {
    %c0_i32 = arith.constant 0 : i32
    %c0_i32_0 = arith.constant 0 : i32
    %c0_i32_1 = arith.constant 0 : i32
    return %arg0, %c0_i32, %c0_i32_0 : i32, i32, i32
  }
  func.func @transform_1(%arg0: i32) -> (i32, i32, i32) {
    %c0_i32 = arith.constant 0 : i32
    %c0_i32_0 = arith.constant 0 : i32
    %c0_i32_1 = arith.constant 0 : i32
    return %arg0, %c0_i32, %c0_i32_0 : i32, i32, i32
  }
  func.func @transform_2(%arg0: i32) -> (i32, i32) {
    %c0_i32 = arith.constant 0 : i32
    %c0_i32_0 = arith.constant 0 : i32
    %c0_i32_1 = arith.constant 0 : i32
    return %c0_i32, %c0_i32_0 : i32, i32
  }
  func.func @transform_3(%arg0: i32) -> (i32, i32) {
    %c0_i32 = arith.constant 0 : i32
    %c0_i32_0 = arith.constant 0 : i32
    %c0_i32_1 = arith.constant 0 : i32
    return %c0_i32, %c0_i32_0 : i32, i32
  }
  func.func @transform_4(%arg0: i32) -> (i32, i32) {
    %c0_i32 = arith.constant 0 : i32
    %c0_i32_0 = arith.constant 0 : i32
    %c0_i32_1 = arith.constant 0 : i32
    return %c0_i32, %c0_i32_0 : i32, i32
  }
  func.func @transform_5(%arg0: i32) -> (i32, i32) {
    %c0_i32 = arith.constant 0 : i32
    %c0_i32_0 = arith.constant 0 : i32
    %c0_i32_1 = arith.constant 0 : i32
    return %c0_i32, %c0_i32_0 : i32, i32
  }
  func.func @transform_6(%arg0: i32) -> (i32, i32) {
    %c0_i32 = arith.constant 0 : i32
    %c0_i32_0 = arith.constant 0 : i32
    %c0_i32_1 = arith.constant 0 : i32
    return %c0_i32, %c0_i32_0 : i32, i32
  }
  func.func @transform_7(%arg0: i32) -> (i32, i32) {
    %c0_i32 = arith.constant 0 : i32
    %c0_i32_0 = arith.constant 0 : i32
    %c0_i32_1 = arith.constant 0 : i32
    return %c0_i32, %c0_i32_0 : i32, i32
  }
  func.func @transform_8(%arg0: i32) -> (i32, i32) {
    %c0_i32 = arith.constant 0 : i32
    %c0_i32_0 = arith.constant 0 : i32
    %c0_i32_1 = arith.constant 0 : i32
    return %c0_i32, %c0_i32_0 : i32, i32
  }
  func.func @transform_9(%arg0: i32) -> (i32, i32) {
    %c0_i32 = arith.constant 0 : i32
    %c0_i32_0 = arith.constant 0 : i32
    %c0_i32_1 = arith.constant 0 : i32
    return %c0_i32, %c0_i32_0 : i32, i32
  }
  func.func @transform_10(%arg0: i32) -> (i32, i32) {
    %c0_i32 = arith.constant 0 : i32
    %c0_i32_0 = arith.constant 0 : i32
    %c0_i32_1 = arith.constant 0 : i32
    return %c0_i32, %c0_i32_0 : i32, i32
  }
  func.func @transform_11(%arg0: i32) -> (i32, i32) {
    %c0_i32 = arith.constant 0 : i32
    %c0_i32_0 = arith.constant 0 : i32
    %c0_i32_1 = arith.constant 0 : i32
    return %c0_i32, %c0_i32_0 : i32, i32
  }
  func.func @transform_12(%arg0: i32) -> (i32, i32) {
    %c0_i32 = arith.constant 0 : i32
    %c0_i32_0 = arith.constant 0 : i32
    %c0_i32_1 = arith.constant 0 : i32
    return %c0_i32, %c0_i32_0 : i32, i32
  }
  func.func @transform_13(%arg0: i32) -> (i32, i32) {
    %c0_i32 = arith.constant 0 : i32
    %c0_i32_0 = arith.constant 0 : i32
    %c0_i32_1 = arith.constant 0 : i32
    return %c0_i32, %c0_i32_0 : i32, i32
  }
  func.func @transform_14(%arg0: i32) -> (i32, i32) {
    %c0_i32 = arith.constant 0 : i32
    %c0_i32_0 = arith.constant 0 : i32
    %c0_i32_1 = arith.constant 0 : i32
    return %c0_i32, %c0_i32_0 : i32, i32
  }
  func.func @transform_15(%arg0: i32) -> (i32, i32) {
    %c0_i32 = arith.constant 0 : i32
    %c0_i32_0 = arith.constant 0 : i32
    %c0_i32_1 = arith.constant 0 : i32
    return %c0_i32, %c0_i32_0 : i32, i32
  }
  func.func @transform_16(%arg0: i32) -> (i32, i32) {
    %c0_i32 = arith.constant 0 : i32
    %c0_i32_0 = arith.constant 0 : i32
    %c0_i32_1 = arith.constant 0 : i32
    return %c0_i32, %c0_i32_0 : i32, i32
  }
  func.func @transform_17(%arg0: i32) -> (i32, i32, i32) {
    %c0_i32 = arith.constant 0 : i32
    %c0_i32_0 = arith.constant 0 : i32
    %c0_i32_1 = arith.constant 0 : i32
    return %arg0, %c0_i32, %c0_i32_0 : i32, i32, i32
  }
}

module attributes {stable_mosaic.version = 11 : i64} {
  func.func @_vit_block_kernel(%arg0: i32, %arg1: memref<1x16x32xf32, #tpu.memory_space<vmem>>, %arg2: memref<1x32xf32, #tpu.memory_space<vmem>>, %arg3: memref<1x32xf32, #tpu.memory_space<vmem>>, %arg4: memref<32x96xf32, #tpu.memory_space<vmem>>, %arg5: memref<1x96xf32, #tpu.memory_space<vmem>>, %arg6: memref<32x32xf32, #tpu.memory_space<vmem>>, %arg7: memref<1x32xf32, #tpu.memory_space<vmem>>, %arg8: memref<1x32xf32, #tpu.memory_space<vmem>>, %arg9: memref<1x32xf32, #tpu.memory_space<vmem>>, %arg10: memref<32x128xf32, #tpu.memory_space<vmem>>, %arg11: memref<1x128xf32, #tpu.memory_space<vmem>>, %arg12: memref<128x32xf32, #tpu.memory_space<vmem>>, %arg13: memref<1x32xf32, #tpu.memory_space<vmem>>, %arg14: memref<1x16x32xf32, #tpu.memory_space<vmem>>) attributes {dimension_semantics = [#tpu.dimension_semantics<parallel>], iteration_bounds = array<i64: 2>, scalar_prefetch = 0 : i64, scratch_operands = 0 : i64, tpu.core_type = #tpu.core_type<tc>, window_params = [{transform_indices = @transform_0, window_bounds = array<i64: 1, 16, 32>}, {pipeline_mode = #tpu.pipeline_mode<synchronous>, transform_indices = @transform_1, window_bounds = array<i64: 1, 32>}, {pipeline_mode = #tpu.pipeline_mode<synchronous>, transform_indices = @transform_2, window_bounds = array<i64: 1, 32>}, {pipeline_mode = #tpu.pipeline_mode<synchronous>, transform_indices = @transform_3, window_bounds = array<i64: 32, 96>}, {pipeline_mode = #tpu.pipeline_mode<synchronous>, transform_indices = @transform_4, window_bounds = array<i64: 1, 96>}, {pipeline_mode = #tpu.pipeline_mode<synchronous>, transform_indices = @transform_5, window_bounds = array<i64: 32, 32>}, {pipeline_mode = #tpu.pipeline_mode<synchronous>, transform_indices = @transform_6, window_bounds = array<i64: 1, 32>}, {pipeline_mode = #tpu.pipeline_mode<synchronous>, transform_indices = @transform_7, window_bounds = array<i64: 1, 32>}, {pipeline_mode = #tpu.pipeline_mode<synchronous>, transform_indices = @transform_8, window_bounds = array<i64: 1, 32>}, {pipeline_mode = #tpu.pipeline_mode<synchronous>, transform_indices = @transform_9, window_bounds = array<i64: 32, 128>}, {pipeline_mode = #tpu.pipeline_mode<synchronous>, transform_indices = @transform_10, window_bounds = array<i64: 1, 128>}, {pipeline_mode = #tpu.pipeline_mode<synchronous>, transform_indices = @transform_11, window_bounds = array<i64: 128, 32>}, {pipeline_mode = #tpu.pipeline_mode<synchronous>, transform_indices = @transform_12, window_bounds = array<i64: 1, 32>}, {transform_indices = @transform_13, window_bounds = array<i64: 1, 16, 32>}]} {
    %c0 = arith.constant 0 : index
    %c0_0 = arith.constant 0 : index
    %c0_1 = arith.constant 0 : index
    %0 = vector.load %arg1[%c0, %c0_0, %c0_1] : memref<1x16x32xf32, #tpu.memory_space<vmem>>, vector<1x16x32xf32>
    %1 = vector.shape_cast %0 : vector<1x16x32xf32> to vector<16x32xf32>
    %c0_2 = arith.constant 0 : index
    %c0_3 = arith.constant 0 : index
    %2 = vector.load %arg2[%c0_2, %c0_3] : memref<1x32xf32, #tpu.memory_space<vmem>>, vector<1x32xf32>
    %c0_4 = arith.constant 0 : index
    %c0_5 = arith.constant 0 : index
    %3 = vector.load %arg3[%c0_4, %c0_5] : memref<1x32xf32, #tpu.memory_space<vmem>>, vector<1x32xf32>
    %cst = arith.constant dense<0.000000e+00> : vector<16xf32>
    %4 = vector.multi_reduction <add>, %1, %cst [1] : vector<16x32xf32> to vector<16xf32>
    %5 = vector.shape_cast %4 : vector<16xf32> to vector<16x1xf32>
    %cst_6 = arith.constant 3.200000e+01 : f32
    %6 = vector.broadcast %cst_6 : f32 to vector<16x1xf32>
    %7 = arith.divf %5, %6 : vector<16x1xf32>
    %8 = vector.broadcast %7 : vector<16x1xf32> to vector<16x32xf32>
    %9 = arith.subf %1, %8 : vector<16x32xf32>
    %10 = arith.mulf %9, %9 : vector<16x32xf32>
    %cst_7 = arith.constant dense<0.000000e+00> : vector<16xf32>
    %11 = vector.multi_reduction <add>, %10, %cst_7 [1] : vector<16x32xf32> to vector<16xf32>
    %12 = vector.shape_cast %11 : vector<16xf32> to vector<16x1xf32>
    %cst_8 = arith.constant 3.200000e+01 : f32
    %13 = vector.broadcast %cst_8 : f32 to vector<16x1xf32>
    %14 = arith.divf %12, %13 : vector<16x1xf32>
    %15 = vector.broadcast %7 : vector<16x1xf32> to vector<16x32xf32>
    %16 = arith.subf %1, %15 : vector<16x32xf32>
    %cst_9 = arith.constant 9.99999997E-7 : f32
    %17 = vector.broadcast %cst_9 : f32 to vector<16x1xf32>
    %18 = arith.addf %14, %17 : vector<16x1xf32>
    %19 = math.rsqrt %18 : vector<16x1xf32>
    %20 = vector.broadcast %19 : vector<16x1xf32> to vector<16x32xf32>
    %21 = arith.mulf %16, %20 : vector<16x32xf32>
    %22 = vector.broadcast %2 : vector<1x32xf32> to vector<16x32xf32>
    %23 = arith.mulf %21, %22 : vector<16x32xf32>
    %24 = vector.broadcast %3 : vector<1x32xf32> to vector<16x32xf32>
    %25 = arith.addf %23, %24 : vector<16x32xf32>
    %c0_10 = arith.constant 0 : index
    %c0_11 = arith.constant 0 : index
    %26 = vector.load %arg4[%c0_10, %c0_11] : memref<32x96xf32, #tpu.memory_space<vmem>>, vector<32x96xf32>
    %cst_12 = arith.constant dense<0.000000e+00> : vector<16x96xf32>
    %27 = tpu.matmul %25, %26, %cst_12 {dimension_numbers = #tpu.dot_dimension_numbers<[1], [0], [0], [1], [0, 0, 1, 1], [], []>} : vector<16x32xf32>, vector<32x96xf32>, vector<16x96xf32> -> vector<16x96xf32>
    %c0_13 = arith.constant 0 : index
    %c0_14 = arith.constant 0 : index
    %28 = vector.load %arg5[%c0_13, %c0_14] : memref<1x96xf32, #tpu.memory_space<vmem>>, vector<1x96xf32>
    %29 = vector.broadcast %28 : vector<1x96xf32> to vector<16x96xf32>
    %30 = arith.addf %27, %29 : vector<16x96xf32>
    %31 = vector.extract_strided_slice %30 {offsets = [0, 0], sizes = [16, 32], strides = [1, 1]} : vector<16x96xf32> to vector<16x32xf32>
    %32 = vector.extract_strided_slice %30 {offsets = [0, 32], sizes = [16, 32], strides = [1, 1]} : vector<16x96xf32> to vector<16x32xf32>
    %33 = vector.extract_strided_slice %30 {offsets = [0, 64], sizes = [16, 32], strides = [1, 1]} : vector<16x96xf32> to vector<16x32xf32>
    %34 = vector.extract_strided_slice %31 {offsets = [0, 0], sizes = [16, 16], strides = [1, 1]} : vector<16x32xf32> to vector<16x16xf32>
    %35 = vector.extract_strided_slice %32 {offsets = [0, 0], sizes = [16, 16], strides = [1, 1]} : vector<16x32xf32> to vector<16x16xf32>
    %36 = vector.extract_strided_slice %33 {offsets = [0, 0], sizes = [16, 16], strides = [1, 1]} : vector<16x32xf32> to vector<16x16xf32>
    %cst_15 = arith.constant dense<0.000000e+00> : vector<16x16xf32>
    %37 = tpu.matmul %34, %35, %cst_15 {dimension_numbers = #tpu.dot_dimension_numbers<[1], [1], [0], [0], [0, 0, 1, 0], [], []>} : vector<16x16xf32>, vector<16x16xf32>, vector<16x16xf32> -> vector<16x16xf32>
    %cst_16 = arith.constant 2.500000e-01 : f32
    %38 = vector.broadcast %cst_16 : f32 to vector<16x16xf32>
    %39 = arith.mulf %37, %38 : vector<16x16xf32>
    %cst_17 = arith.constant dense<0xFF800000> : vector<16xf32>
    %40 = vector.multi_reduction <maximumf>, %39, %cst_17 [1] : vector<16x16xf32> to vector<16xf32>
    %41 = vector.shape_cast %40 : vector<16xf32> to vector<16x1xf32>
    %42 = vector.broadcast %41 : vector<16x1xf32> to vector<16x16xf32>
    %43 = arith.subf %39, %42 : vector<16x16xf32>
    %44 = math.exp %43 : vector<16x16xf32>
    %cst_18 = arith.constant dense<0.000000e+00> : vector<16xf32>
    %45 = vector.multi_reduction <add>, %44, %cst_18 [1] : vector<16x16xf32> to vector<16xf32>
    %46 = vector.shape_cast %45 : vector<16xf32> to vector<16x1xf32>
    %47 = tpu.reciprocal %46 {approx = true} : vector<16x1xf32> -> vector<16x1xf32>
    %48 = vector.broadcast %47 : vector<16x1xf32> to vector<16x16xf32>
    %49 = arith.mulf %44, %48 : vector<16x16xf32>
    %cst_19 = arith.constant dense<0.000000e+00> : vector<16x16xf32>
    %50 = tpu.matmul %49, %36, %cst_19 {dimension_numbers = #tpu.dot_dimension_numbers<[1], [0], [0], [1], [0, 0, 1, 1], [], []>} : vector<16x16xf32>, vector<16x16xf32>, vector<16x16xf32> -> vector<16x16xf32>
    %51 = vector.extract_strided_slice %31 {offsets = [0, 16], sizes = [16, 16], strides = [1, 1]} : vector<16x32xf32> to vector<16x16xf32>
    %52 = vector.extract_strided_slice %32 {offsets = [0, 16], sizes = [16, 16], strides = [1, 1]} : vector<16x32xf32> to vector<16x16xf32>
    %53 = vector.extract_strided_slice %33 {offsets = [0, 16], sizes = [16, 16], strides = [1, 1]} : vector<16x32xf32> to vector<16x16xf32>
    %cst_20 = arith.constant dense<0.000000e+00> : vector<16x16xf32>
    %54 = tpu.matmul %51, %52, %cst_20 {dimension_numbers = #tpu.dot_dimension_numbers<[1], [1], [0], [0], [0, 0, 1, 0], [], []>} : vector<16x16xf32>, vector<16x16xf32>, vector<16x16xf32> -> vector<16x16xf32>
    %cst_21 = arith.constant 2.500000e-01 : f32
    %55 = vector.broadcast %cst_21 : f32 to vector<16x16xf32>
    %56 = arith.mulf %54, %55 : vector<16x16xf32>
    %cst_22 = arith.constant dense<0xFF800000> : vector<16xf32>
    %57 = vector.multi_reduction <maximumf>, %56, %cst_22 [1] : vector<16x16xf32> to vector<16xf32>
    %58 = vector.shape_cast %57 : vector<16xf32> to vector<16x1xf32>
    %59 = vector.broadcast %58 : vector<16x1xf32> to vector<16x16xf32>
    %60 = arith.subf %56, %59 : vector<16x16xf32>
    %61 = math.exp %60 : vector<16x16xf32>
    %cst_23 = arith.constant dense<0.000000e+00> : vector<16xf32>
    %62 = vector.multi_reduction <add>, %61, %cst_23 [1] : vector<16x16xf32> to vector<16xf32>
    %63 = vector.shape_cast %62 : vector<16xf32> to vector<16x1xf32>
    %64 = tpu.reciprocal %63 {approx = true} : vector<16x1xf32> -> vector<16x1xf32>
    %65 = vector.broadcast %64 : vector<16x1xf32> to vector<16x16xf32>
    %66 = arith.mulf %61, %65 : vector<16x16xf32>
    %cst_24 = arith.constant dense<0.000000e+00> : vector<16x16xf32>
    %67 = tpu.matmul %66, %53, %cst_24 {dimension_numbers = #tpu.dot_dimension_numbers<[1], [0], [0], [1], [0, 0, 1, 1], [], []>} : vector<16x16xf32>, vector<16x16xf32>, vector<16x16xf32> -> vector<16x16xf32>
    %68 = tpu.concatenate %50, %67 in 1 : vector<16x16xf32>, vector<16x16xf32> -> vector<16x32xf32>
    %c0_25 = arith.constant 0 : index
    %c0_26 = arith.constant 0 : index
    %69 = vector.load %arg6[%c0_25, %c0_26] : memref<32x32xf32, #tpu.memory_space<vmem>>, vector<32x32xf32>
    %cst_27 = arith.constant dense<0.000000e+00> : vector<16x32xf32>
    %70 = tpu.matmul %68, %69, %cst_27 {dimension_numbers = #tpu.dot_dimension_numbers<[1], [0], [0], [1], [0, 0, 1, 1], [], []>} : vector<16x32xf32>, vector<32x32xf32>, vector<16x32xf32> -> vector<16x32xf32>
    %c0_28 = arith.constant 0 : index
    %c0_29 = arith.constant 0 : index
    %71 = vector.load %arg7[%c0_28, %c0_29] : memref<1x32xf32, #tpu.memory_space<vmem>>, vector<1x32xf32>
    %72 = vector.broadcast %71 : vector<1x32xf32> to vector<16x32xf32>
    %73 = arith.addf %70, %72 : vector<16x32xf32>
    %74 = arith.addf %1, %73 : vector<16x32xf32>
    %c0_30 = arith.constant 0 : index
    %c0_31 = arith.constant 0 : index
    %75 = vector.load %arg8[%c0_30, %c0_31] : memref<1x32xf32, #tpu.memory_space<vmem>>, vector<1x32xf32>
    %c0_32 = arith.constant 0 : index
    %c0_33 = arith.constant 0 : index
    %76 = vector.load %arg9[%c0_32, %c0_33] : memref<1x32xf32, #tpu.memory_space<vmem>>, vector<1x32xf32>
    %cst_34 = arith.constant dense<0.000000e+00> : vector<16xf32>
    %77 = vector.multi_reduction <add>, %74, %cst_34 [1] : vector<16x32xf32> to vector<16xf32>
    %78 = vector.shape_cast %77 : vector<16xf32> to vector<16x1xf32>
    %cst_35 = arith.constant 3.200000e+01 : f32
    %79 = vector.broadcast %cst_35 : f32 to vector<16x1xf32>
    %80 = arith.divf %78, %79 : vector<16x1xf32>
    %81 = vector.broadcast %80 : vector<16x1xf32> to vector<16x32xf32>
    %82 = arith.subf %74, %81 : vector<16x32xf32>
    %83 = arith.mulf %82, %82 : vector<16x32xf32>
    %cst_36 = arith.constant dense<0.000000e+00> : vector<16xf32>
    %84 = vector.multi_reduction <add>, %83, %cst_36 [1] : vector<16x32xf32> to vector<16xf32>
    %85 = vector.shape_cast %84 : vector<16xf32> to vector<16x1xf32>
    %cst_37 = arith.constant 3.200000e+01 : f32
    %86 = vector.broadcast %cst_37 : f32 to vector<16x1xf32>
    %87 = arith.divf %85, %86 : vector<16x1xf32>
    %88 = vector.broadcast %80 : vector<16x1xf32> to vector<16x32xf32>
    %89 = arith.subf %74, %88 : vector<16x32xf32>
    %cst_38 = arith.constant 9.99999997E-7 : f32
    %90 = vector.broadcast %cst_38 : f32 to vector<16x1xf32>
    %91 = arith.addf %87, %90 : vector<16x1xf32>
    %92 = math.rsqrt %91 : vector<16x1xf32>
    %93 = vector.broadcast %92 : vector<16x1xf32> to vector<16x32xf32>
    %94 = arith.mulf %89, %93 : vector<16x32xf32>
    %95 = vector.broadcast %75 : vector<1x32xf32> to vector<16x32xf32>
    %96 = arith.mulf %94, %95 : vector<16x32xf32>
    %97 = vector.broadcast %76 : vector<1x32xf32> to vector<16x32xf32>
    %98 = arith.addf %96, %97 : vector<16x32xf32>
    %c0_39 = arith.constant 0 : index
    %c0_40 = arith.constant 0 : index
    %99 = vector.load %arg10[%c0_39, %c0_40] : memref<32x128xf32, #tpu.memory_space<vmem>>, vector<32x128xf32>
    %cst_41 = arith.constant dense<0.000000e+00> : vector<16x128xf32>
    %100 = tpu.matmul %98, %99, %cst_41 {dimension_numbers = #tpu.dot_dimension_numbers<[1], [0], [0], [1], [0, 0, 1, 1], [], []>} : vector<16x32xf32>, vector<32x128xf32>, vector<16x128xf32> -> vector<16x128xf32>
    %c0_42 = arith.constant 0 : index
    %c0_43 = arith.constant 0 : index
    %101 = vector.load %arg11[%c0_42, %c0_43] : memref<1x128xf32, #tpu.memory_space<vmem>>, vector<1x128xf32>
    %102 = vector.broadcast %101 : vector<1x128xf32> to vector<16x128xf32>
    %103 = arith.addf %100, %102 : vector<16x128xf32>
    %cst_44 = arith.constant 5.000000e-01 : f32
    %104 = vector.broadcast %cst_44 : f32 to vector<16x128xf32>
    %105 = arith.mulf %104, %103 : vector<16x128xf32>
    %cst_45 = arith.constant 4.471500e-02 : f32
    %106 = vector.broadcast %cst_45 : f32 to vector<16x128xf32>
    %107 = arith.mulf %106, %103 : vector<16x128xf32>
    %108 = arith.mulf %107, %103 : vector<16x128xf32>
    %109 = arith.mulf %108, %103 : vector<16x128xf32>
    %110 = arith.addf %103, %109 : vector<16x128xf32>
    %cst_46 = arith.constant 0.797884583 : f32
    %111 = vector.broadcast %cst_46 : f32 to vector<16x128xf32>
    %112 = arith.mulf %111, %110 : vector<16x128xf32>
    %113 = math.tanh %112 : vector<16x128xf32>
    %cst_47 = arith.constant 1.000000e+00 : f32
    %114 = vector.broadcast %cst_47 : f32 to vector<16x128xf32>
    %115 = arith.addf %114, %113 : vector<16x128xf32>
    %116 = arith.mulf %105, %115 : vector<16x128xf32>
    %c0_48 = arith.constant 0 : index
    %c0_49 = arith.constant 0 : index
    %117 = vector.load %arg12[%c0_48, %c0_49] : memref<128x32xf32, #tpu.memory_space<vmem>>, vector<128x32xf32>
    %cst_50 = arith.constant dense<0.000000e+00> : vector<16x32xf32>
    %118 = tpu.matmul %116, %117, %cst_50 {dimension_numbers = #tpu.dot_dimension_numbers<[1], [0], [0], [1], [0, 0, 1, 1], [], []>} : vector<16x128xf32>, vector<128x32xf32>, vector<16x32xf32> -> vector<16x32xf32>
    %c0_51 = arith.constant 0 : index
    %c0_52 = arith.constant 0 : index
    %119 = vector.load %arg13[%c0_51, %c0_52] : memref<1x32xf32, #tpu.memory_space<vmem>>, vector<1x32xf32>
    %120 = vector.broadcast %119 : vector<1x32xf32> to vector<16x32xf32>
    %121 = arith.addf %118, %120 : vector<16x32xf32>
    %122 = arith.addf %74, %121 : vector<16x32xf32>
    %c0_53 = arith.constant 0 : index
    %c0_54 = arith.constant 0 : index
    %c0_55 = arith.constant 0 : index
    %123 = vector.load %arg14[%c0_53, %c0_54, %c0_55] : memref<1x16x32xf32, #tpu.memory_space<vmem>>, vector<1x16x32xf32>
    %124 = vector.shape_cast %123 : vector<1x16x32xf32> to vector<16x32xf32>
    %125 = vector.shape_cast %122 : vector<16x32xf32> to vector<1x16x32xf32>
    tpu.vector_store %arg14[%c0_53, %c0_54, %c0_55], %125 {strides = array<i32>} : memref<1x16x32xf32, #tpu.memory_space<vmem>>, vector<1x16x32xf32>,
    return
  }
  func.func @transform_0(%arg0: i32) -> (i32, i32, i32) {
    %c0_i32 = arith.constant 0 : i32
    %c0_i32_0 = arith.constant 0 : i32
    %c0_i32_1 = arith.constant 0 : i32
    return %arg0, %c0_i32, %c0_i32_0 : i32, i32, i32
  }
  func.func @transform_1(%arg0: i32) -> (i32, i32) {
    %c0_i32 = arith.constant 0 : i32
    %c0_i32_0 = arith.constant 0 : i32
    %c0_i32_1 = arith.constant 0 : i32
    return %c0_i32, %c0_i32_0 : i32, i32
  }
  func.func @transform_2(%arg0: i32) -> (i32, i32) {
    %c0_i32 = arith.constant 0 : i32
    %c0_i32_0 = arith.constant 0 : i32
    %c0_i32_1 = arith.constant 0 : i32
    return %c0_i32, %c0_i32_0 : i32, i32
  }
  func.func @transform_3(%arg0: i32) -> (i32, i32) {
    %c0_i32 = arith.constant 0 : i32
    %c0_i32_0 = arith.constant 0 : i32
    %c0_i32_1 = arith.constant 0 : i32
    return %c0_i32, %c0_i32_0 : i32, i32
  }
  func.func @transform_4(%arg0: i32) -> (i32, i32) {
    %c0_i32 = arith.constant 0 : i32
    %c0_i32_0 = arith.constant 0 : i32
    %c0_i32_1 = arith.constant 0 : i32
    return %c0_i32, %c0_i32_0 : i32, i32
  }
  func.func @transform_5(%arg0: i32) -> (i32, i32) {
    %c0_i32 = arith.constant 0 : i32
    %c0_i32_0 = arith.constant 0 : i32
    %c0_i32_1 = arith.constant 0 : i32
    return %c0_i32, %c0_i32_0 : i32, i32
  }
  func.func @transform_6(%arg0: i32) -> (i32, i32) {
    %c0_i32 = arith.constant 0 : i32
    %c0_i32_0 = arith.constant 0 : i32
    %c0_i32_1 = arith.constant 0 : i32
    return %c0_i32, %c0_i32_0 : i32, i32
  }
  func.func @transform_7(%arg0: i32) -> (i32, i32) {
    %c0_i32 = arith.constant 0 : i32
    %c0_i32_0 = arith.constant 0 : i32
    %c0_i32_1 = arith.constant 0 : i32
    return %c0_i32, %c0_i32_0 : i32, i32
  }
  func.func @transform_8(%arg0: i32) -> (i32, i32) {
    %c0_i32 = arith.constant 0 : i32
    %c0_i32_0 = arith.constant 0 : i32
    %c0_i32_1 = arith.constant 0 : i32
    return %c0_i32, %c0_i32_0 : i32, i32
  }
  func.func @transform_9(%arg0: i32) -> (i32, i32) {
    %c0_i32 = arith.constant 0 : i32
    %c0_i32_0 = arith.constant 0 : i32
    %c0_i32_1 = arith.constant 0 : i32
    return %c0_i32, %c0_i32_0 : i32, i32
  }
  func.func @transform_10(%arg0: i32) -> (i32, i32) {
    %c0_i32 = arith.constant 0 : i32
    %c0_i32_0 = arith.constant 0 : i32
    %c0_i32_1 = arith.constant 0 : i32
    return %c0_i32, %c0_i32_0 : i32, i32
  }
  func.func @transform_11(%arg0: i32) -> (i32, i32) {
    %c0_i32 = arith.constant 0 : i32
    %c0_i32_0 = arith.constant 0 : i32
    %c0_i32_1 = arith.constant 0 : i32
    return %c0_i32, %c0_i32_0 : i32, i32
  }
  func.func @transform_12(%arg0: i32) -> (i32, i32) {
    %c0_i32 = arith.constant 0 : i32
    %c0_i32_0 = arith.constant 0 : i32
    %c0_i32_1 = arith.constant 0 : i32
    return %c0_i32, %c0_i32_0 : i32, i32
  }
  func.func @transform_13(%arg0: i32) -> (i32, i32, i32) {
    %c0_i32 = arith.constant 0 : i32
    %c0_i32_0 = arith.constant 0 : i32
    %c0_i32_1 = arith.constant 0 : i32
    return %arg0, %c0_i32, %c0_i32_0 : i32, i32, i32
  }
}

module attributes {stable_mosaic.version = 11 : i64} {
  func.func @_merge2_kernel(%arg0: i32, %arg1: memref<1x16x32xf32, #tpu.memory_space<vmem>>, %arg2: memref<32x32xf32, #tpu.memory_space<vmem>>, %arg3: memref<1x32xf32, #tpu.memory_space<vmem>>, %arg4: memref<1x32xf32, #tpu.memory_space<vmem>>, %arg5: memref<32x64xf32, #tpu.memory_space<vmem>>, %arg6: memref<1x64xf32, #tpu.memory_space<vmem>>, %arg7: memref<64x64xf32, #tpu.memory_space<vmem>>, %arg8: memref<1x64xf32, #tpu.memory_space<vmem>>, %arg9: memref<1x64xf32, #tpu.memory_space<vmem>>, %arg10: memref<1x16x64xf32, #tpu.memory_space<vmem>>) attributes {dimension_semantics = [#tpu.dimension_semantics<parallel>], iteration_bounds = array<i64: 2>, scalar_prefetch = 0 : i64, scratch_operands = 0 : i64, tpu.core_type = #tpu.core_type<tc>, window_params = [{transform_indices = @transform_0, window_bounds = array<i64: 1, 16, 32>}, {pipeline_mode = #tpu.pipeline_mode<synchronous>, transform_indices = @transform_1, window_bounds = array<i64: 32, 32>}, {pipeline_mode = #tpu.pipeline_mode<synchronous>, transform_indices = @transform_2, window_bounds = array<i64: 1, 32>}, {pipeline_mode = #tpu.pipeline_mode<synchronous>, transform_indices = @transform_3, window_bounds = array<i64: 1, 32>}, {pipeline_mode = #tpu.pipeline_mode<synchronous>, transform_indices = @transform_4, window_bounds = array<i64: 32, 64>}, {pipeline_mode = #tpu.pipeline_mode<synchronous>, transform_indices = @transform_5, window_bounds = array<i64: 1, 64>}, {pipeline_mode = #tpu.pipeline_mode<synchronous>, transform_indices = @transform_6, window_bounds = array<i64: 64, 64>}, {pipeline_mode = #tpu.pipeline_mode<synchronous>, transform_indices = @transform_7, window_bounds = array<i64: 1, 64>}, {pipeline_mode = #tpu.pipeline_mode<synchronous>, transform_indices = @transform_8, window_bounds = array<i64: 1, 64>}, {transform_indices = @transform_9, window_bounds = array<i64: 1, 16, 64>}]} {
    %c0 = arith.constant 0 : index
    %c0_0 = arith.constant 0 : index
    %c0_1 = arith.constant 0 : index
    %0 = vector.load %arg1[%c0, %c0_0, %c0_1] : memref<1x16x32xf32, #tpu.memory_space<vmem>>, vector<1x16x32xf32>
    %1 = vector.shape_cast %0 : vector<1x16x32xf32> to vector<16x32xf32>
    %c0_2 = arith.constant 0 : index
    %c0_3 = arith.constant 0 : index
    %2 = vector.load %arg3[%c0_2, %c0_3] : memref<1x32xf32, #tpu.memory_space<vmem>>, vector<1x32xf32>
    %c0_4 = arith.constant 0 : index
    %c0_5 = arith.constant 0 : index
    %3 = vector.load %arg4[%c0_4, %c0_5] : memref<1x32xf32, #tpu.memory_space<vmem>>, vector<1x32xf32>
    %c0_6 = arith.constant 0 : index
    %c0_7 = arith.constant 0 : index
    %4 = vector.load %arg2[%c0_6, %c0_7] : memref<32x32xf32, #tpu.memory_space<vmem>>, vector<32x32xf32>
    %cst = arith.constant dense<0.000000e+00> : vector<32xf32>
    %5 = vector.multi_reduction <add>, %1, %cst [0] : vector<16x32xf32> to vector<32xf32>
    %6 = vector.shape_cast %5 : vector<32xf32> to vector<1x32xf32>
    %cst_8 = arith.constant 1.600000e+01 : f32
    %7 = vector.broadcast %cst_8 : f32 to vector<1x32xf32>
    %8 = arith.divf %6, %7 : vector<1x32xf32>
    %cst_9 = arith.constant dense<0.000000e+00> : vector<1x32xf32>
    %9 = tpu.matmul %8, %4, %cst_9 {dimension_numbers = #tpu.dot_dimension_numbers<[1], [0], [0], [1], [0, 0, 1, 1], [], []>} : vector<1x32xf32>, vector<32x32xf32>, vector<1x32xf32> -> vector<1x32xf32>
    %10 = vector.broadcast %9 : vector<1x32xf32> to vector<16x32xf32>
    %11 = arith.subf %1, %10 : vector<16x32xf32>
    %12 = arith.mulf %11, %11 : vector<16x32xf32>
    %cst_10 = arith.constant dense<0.000000e+00> : vector<32xf32>
    %13 = vector.multi_reduction <add>, %12, %cst_10 [0] : vector<16x32xf32> to vector<32xf32>
    %14 = vector.shape_cast %13 : vector<32xf32> to vector<1x32xf32>
    %cst_11 = arith.constant 1.600000e+01 : f32
    %15 = vector.broadcast %cst_11 : f32 to vector<1x32xf32>
    %16 = arith.divf %14, %15 : vector<1x32xf32>
    %cst_12 = arith.constant dense<0.000000e+00> : vector<1x32xf32>
    %17 = tpu.matmul %16, %4, %cst_12 {dimension_numbers = #tpu.dot_dimension_numbers<[1], [0], [0], [1], [0, 0, 1, 1], [], []>} : vector<1x32xf32>, vector<32x32xf32>, vector<1x32xf32> -> vector<1x32xf32>
    %cst_13 = arith.constant 9.99999974E-6 : f32
    %18 = vector.broadcast %cst_13 : f32 to vector<1x32xf32>
    %19 = arith.addf %17, %18 : vector<1x32xf32>
    %20 = math.rsqrt %19 : vector<1x32xf32>
    %21 = vector.broadcast %20 : vector<1x32xf32> to vector<16x32xf32>
    %22 = arith.mulf %11, %21 : vector<16x32xf32>
    %23 = vector.broadcast %2 : vector<1x32xf32> to vector<16x32xf32>
    %24 = arith.mulf %22, %23 : vector<16x32xf32>
    %25 = vector.broadcast %3 : vector<1x32xf32> to vector<16x32xf32>
    %26 = arith.addf %24, %25 : vector<16x32xf32>
    %c0_14 = arith.constant 0 : index
    %c0_15 = arith.constant 0 : index
    %27 = vector.load %arg5[%c0_14, %c0_15] : memref<32x64xf32, #tpu.memory_space<vmem>>, vector<32x64xf32>
    %cst_16 = arith.constant dense<0.000000e+00> : vector<16x64xf32>
    %28 = tpu.matmul %26, %27, %cst_16 {dimension_numbers = #tpu.dot_dimension_numbers<[1], [0], [0], [1], [0, 0, 1, 1], [], []>} : vector<16x32xf32>, vector<32x64xf32>, vector<16x64xf32> -> vector<16x64xf32>
    %c0_17 = arith.constant 0 : index
    %c0_18 = arith.constant 0 : index
    %29 = vector.load %arg6[%c0_17, %c0_18] : memref<1x64xf32, #tpu.memory_space<vmem>>, vector<1x64xf32>
    %30 = vector.broadcast %29 : vector<1x64xf32> to vector<16x64xf32>
    %31 = arith.addf %28, %30 : vector<16x64xf32>
    %c0_19 = arith.constant 0 : index
    %c0_20 = arith.constant 0 : index
    %32 = vector.load %arg8[%c0_19, %c0_20] : memref<1x64xf32, #tpu.memory_space<vmem>>, vector<1x64xf32>
    %c0_21 = arith.constant 0 : index
    %c0_22 = arith.constant 0 : index
    %33 = vector.load %arg9[%c0_21, %c0_22] : memref<1x64xf32, #tpu.memory_space<vmem>>, vector<1x64xf32>
    %c0_23 = arith.constant 0 : index
    %c0_24 = arith.constant 0 : index
    %34 = vector.load %arg7[%c0_23, %c0_24] : memref<64x64xf32, #tpu.memory_space<vmem>>, vector<64x64xf32>
    %cst_25 = arith.constant dense<0.000000e+00> : vector<64xf32>
    %35 = vector.multi_reduction <add>, %31, %cst_25 [0] : vector<16x64xf32> to vector<64xf32>
    %36 = vector.shape_cast %35 : vector<64xf32> to vector<1x64xf32>
    %cst_26 = arith.constant 1.600000e+01 : f32
    %37 = vector.broadcast %cst_26 : f32 to vector<1x64xf32>
    %38 = arith.divf %36, %37 : vector<1x64xf32>
    %cst_27 = arith.constant dense<0.000000e+00> : vector<1x64xf32>
    %39 = tpu.matmul %38, %34, %cst_27 {dimension_numbers = #tpu.dot_dimension_numbers<[1], [0], [0], [1], [0, 0, 1, 1], [], []>} : vector<1x64xf32>, vector<64x64xf32>, vector<1x64xf32> -> vector<1x64xf32>
    %40 = vector.broadcast %39 : vector<1x64xf32> to vector<16x64xf32>
    %41 = arith.subf %31, %40 : vector<16x64xf32>
    %42 = arith.mulf %41, %41 : vector<16x64xf32>
    %cst_28 = arith.constant dense<0.000000e+00> : vector<64xf32>
    %43 = vector.multi_reduction <add>, %42, %cst_28 [0] : vector<16x64xf32> to vector<64xf32>
    %44 = vector.shape_cast %43 : vector<64xf32> to vector<1x64xf32>
    %cst_29 = arith.constant 1.600000e+01 : f32
    %45 = vector.broadcast %cst_29 : f32 to vector<1x64xf32>
    %46 = arith.divf %44, %45 : vector<1x64xf32>
    %cst_30 = arith.constant dense<0.000000e+00> : vector<1x64xf32>
    %47 = tpu.matmul %46, %34, %cst_30 {dimension_numbers = #tpu.dot_dimension_numbers<[1], [0], [0], [1], [0, 0, 1, 1], [], []>} : vector<1x64xf32>, vector<64x64xf32>, vector<1x64xf32> -> vector<1x64xf32>
    %cst_31 = arith.constant 9.99999974E-6 : f32
    %48 = vector.broadcast %cst_31 : f32 to vector<1x64xf32>
    %49 = arith.addf %47, %48 : vector<1x64xf32>
    %50 = math.rsqrt %49 : vector<1x64xf32>
    %51 = vector.broadcast %50 : vector<1x64xf32> to vector<16x64xf32>
    %52 = arith.mulf %41, %51 : vector<16x64xf32>
    %53 = vector.broadcast %32 : vector<1x64xf32> to vector<16x64xf32>
    %54 = arith.mulf %52, %53 : vector<16x64xf32>
    %55 = vector.broadcast %33 : vector<1x64xf32> to vector<16x64xf32>
    %56 = arith.addf %54, %55 : vector<16x64xf32>
    %c0_32 = arith.constant 0 : index
    %c0_33 = arith.constant 0 : index
    %c0_34 = arith.constant 0 : index
    %57 = vector.load %arg10[%c0_32, %c0_33, %c0_34] : memref<1x16x64xf32, #tpu.memory_space<vmem>>, vector<1x16x64xf32>
    %58 = vector.shape_cast %57 : vector<1x16x64xf32> to vector<16x64xf32>
    %59 = vector.shape_cast %56 : vector<16x64xf32> to vector<1x16x64xf32>
    tpu.vector_store %arg10[%c0_32, %c0_33, %c0_34], %59 {strides = array<i32>} : memref<1x16x64xf32, #tpu.memory_space<vmem>>, vector<1x16x64xf32>,
    return
  }
  func.func @transform_0(%arg0: i32) -> (i32, i32, i32) {
    %c0_i32 = arith.constant 0 : i32
    %c0_i32_0 = arith.constant 0 : i32
    %c0_i32_1 = arith.constant 0 : i32
    return %arg0, %c0_i32, %c0_i32_0 : i32, i32, i32
  }
  func.func @transform_1(%arg0: i32) -> (i32, i32) {
    %c0_i32 = arith.constant 0 : i32
    %c0_i32_0 = arith.constant 0 : i32
    %c0_i32_1 = arith.constant 0 : i32
    return %c0_i32, %c0_i32_0 : i32, i32
  }
  func.func @transform_2(%arg0: i32) -> (i32, i32) {
    %c0_i32 = arith.constant 0 : i32
    %c0_i32_0 = arith.constant 0 : i32
    %c0_i32_1 = arith.constant 0 : i32
    return %c0_i32, %c0_i32_0 : i32, i32
  }
  func.func @transform_3(%arg0: i32) -> (i32, i32) {
    %c0_i32 = arith.constant 0 : i32
    %c0_i32_0 = arith.constant 0 : i32
    %c0_i32_1 = arith.constant 0 : i32
    return %c0_i32, %c0_i32_0 : i32, i32
  }
  func.func @transform_4(%arg0: i32) -> (i32, i32) {
    %c0_i32 = arith.constant 0 : i32
    %c0_i32_0 = arith.constant 0 : i32
    %c0_i32_1 = arith.constant 0 : i32
    return %c0_i32, %c0_i32_0 : i32, i32
  }
  func.func @transform_5(%arg0: i32) -> (i32, i32) {
    %c0_i32 = arith.constant 0 : i32
    %c0_i32_0 = arith.constant 0 : i32
    %c0_i32_1 = arith.constant 0 : i32
    return %c0_i32, %c0_i32_0 : i32, i32
  }
  func.func @transform_6(%arg0: i32) -> (i32, i32) {
    %c0_i32 = arith.constant 0 : i32
    %c0_i32_0 = arith.constant 0 : i32
    %c0_i32_1 = arith.constant 0 : i32
    return %c0_i32, %c0_i32_0 : i32, i32
  }
  func.func @transform_7(%arg0: i32) -> (i32, i32) {
    %c0_i32 = arith.constant 0 : i32
    %c0_i32_0 = arith.constant 0 : i32
    %c0_i32_1 = arith.constant 0 : i32
    return %c0_i32, %c0_i32_0 : i32, i32
  }
  func.func @transform_8(%arg0: i32) -> (i32, i32) {
    %c0_i32 = arith.constant 0 : i32
    %c0_i32_0 = arith.constant 0 : i32
    %c0_i32_1 = arith.constant 0 : i32
    return %c0_i32, %c0_i32_0 : i32, i32
  }
  func.func @transform_9(%arg0: i32) -> (i32, i32, i32) {
    %c0_i32 = arith.constant 0 : i32
    %c0_i32_0 = arith.constant 0 : i32
    %c0_i32_1 = arith.constant 0 : i32
    return %arg0, %c0_i32, %c0_i32_0 : i32, i32, i32
  }
}

module attributes {stable_mosaic.version = 11 : i64} {
  func.func @_cross_attn_kernel(%arg0: i32, %arg1: memref<1x16x32xf32, #tpu.memory_space<vmem>>, %arg2: memref<1x4x64xf32, #tpu.memory_space<vmem>>, %arg3: memref<64x32xf32, #tpu.memory_space<vmem>>, %arg4: memref<1x32xf32, #tpu.memory_space<vmem>>, %arg5: memref<1x32xf32, #tpu.memory_space<vmem>>, %arg6: memref<1x32xf32, #tpu.memory_space<vmem>>, %arg7: memref<1x32xf32, #tpu.memory_space<vmem>>, %arg8: memref<1x32xf32, #tpu.memory_space<vmem>>, %arg9: memref<32x32xf32, #tpu.memory_space<vmem>>, %arg10: memref<1x32xf32, #tpu.memory_space<vmem>>, %arg11: memref<32x32xf32, #tpu.memory_space<vmem>>, %arg12: memref<1x32xf32, #tpu.memory_space<vmem>>, %arg13: memref<32x32xf32, #tpu.memory_space<vmem>>, %arg14: memref<1x32xf32, #tpu.memory_space<vmem>>, %arg15: memref<32x32xf32, #tpu.memory_space<vmem>>, %arg16: memref<1x32xf32, #tpu.memory_space<vmem>>, %arg17: memref<1x32xf32, #tpu.memory_space<vmem>>, %arg18: memref<1x16x32xf32, #tpu.memory_space<vmem>>) attributes {dimension_semantics = [#tpu.dimension_semantics<parallel>], iteration_bounds = array<i64: 2>, scalar_prefetch = 0 : i64, scratch_operands = 0 : i64, tpu.core_type = #tpu.core_type<tc>, window_params = [{transform_indices = @transform_0, window_bounds = array<i64: 1, 16, 32>}, {transform_indices = @transform_1, window_bounds = array<i64: 1, 4, 64>}, {pipeline_mode = #tpu.pipeline_mode<synchronous>, transform_indices = @transform_2, window_bounds = array<i64: 64, 32>}, {pipeline_mode = #tpu.pipeline_mode<synchronous>, transform_indices = @transform_3, window_bounds = array<i64: 1, 32>}, {pipeline_mode = #tpu.pipeline_mode<synchronous>, transform_indices = @transform_4, window_bounds = array<i64: 1, 32>}, {pipeline_mode = #tpu.pipeline_mode<synchronous>, transform_indices = @transform_5, window_bounds = array<i64: 1, 32>}, {pipeline_mode = #tpu.pipeline_mode<synchronous>, transform_indices = @transform_6, window_bounds = array<i64: 1, 32>}, {pipeline_mode = #tpu.pipeline_mode<synchronous>, transform_indices = @transform_7, window_bounds = array<i64: 1, 32>}, {pipeline_mode = #tpu.pipeline_mode<synchronous>, transform_indices = @transform_8, window_bounds = array<i64: 32, 32>}, {pipeline_mode = #tpu.pipeline_mode<synchronous>, transform_indices = @transform_9, window_bounds = array<i64: 1, 32>}, {pipeline_mode = #tpu.pipeline_mode<synchronous>, transform_indices = @transform_10, window_bounds = array<i64: 32, 32>}, {pipeline_mode = #tpu.pipeline_mode<synchronous>, transform_indices = @transform_11, window_bounds = array<i64: 1, 32>}, {pipeline_mode = #tpu.pipeline_mode<synchronous>, transform_indices = @transform_12, window_bounds = array<i64: 32, 32>}, {pipeline_mode = #tpu.pipeline_mode<synchronous>, transform_indices = @transform_13, window_bounds = array<i64: 1, 32>}, {pipeline_mode = #tpu.pipeline_mode<synchronous>, transform_indices = @transform_14, window_bounds = array<i64: 32, 32>}, {pipeline_mode = #tpu.pipeline_mode<synchronous>, transform_indices = @transform_15, window_bounds = array<i64: 1, 32>}, {pipeline_mode = #tpu.pipeline_mode<synchronous>, transform_indices = @transform_16, window_bounds = array<i64: 1, 32>}, {transform_indices = @transform_17, window_bounds = array<i64: 1, 16, 32>}]} {
    %c0 = arith.constant 0 : index
    %c0_0 = arith.constant 0 : index
    %c0_1 = arith.constant 0 : index
    %0 = vector.load %arg1[%c0, %c0_0, %c0_1] : memref<1x16x32xf32, #tpu.memory_space<vmem>>, vector<1x16x32xf32>
    %1 = vector.shape_cast %0 : vector<1x16x32xf32> to vector<16x32xf32>
    %c0_2 = arith.constant 0 : index
    %c0_3 = arith.constant 0 : index
    %c0_4 = arith.constant 0 : index
    %2 = vector.load %arg2[%c0_2, %c0_3, %c0_4] : memref<1x4x64xf32, #tpu.memory_space<vmem>>, vector<1x4x64xf32>
    %3 = vector.shape_cast %2 : vector<1x4x64xf32> to vector<4x64xf32>
    %c0_5 = arith.constant 0 : index
    %c0_6 = arith.constant 0 : index
    %4 = vector.load %arg3[%c0_5, %c0_6] : memref<64x32xf32, #tpu.memory_space<vmem>>, vector<64x32xf32>
    %cst = arith.constant dense<0.000000e+00> : vector<4x32xf32>
    %5 = tpu.matmul %3, %4, %cst {dimension_numbers = #tpu.dot_dimension_numbers<[1], [0], [0], [1], [0, 0, 1, 1], [], []>} : vector<4x64xf32>, vector<64x32xf32>, vector<4x32xf32> -> vector<4x32xf32>
    %c0_7 = arith.constant 0 : index
    %c0_8 = arith.constant 0 : index
    %6 = vector.load %arg4[%c0_7, %c0_8] : memref<1x32xf32, #tpu.memory_space<vmem>>, vector<1x32xf32>
    %7 = vector.broadcast %6 : vector<1x32xf32> to vector<4x32xf32>
    %8 = arith.addf %5, %7 : vector<4x32xf32>
    %c0_9 = arith.constant 0 : index
    %c0_10 = arith.constant 0 : index
    %9 = vector.load %arg5[%c0_9, %c0_10] : memref<1x32xf32, #tpu.memory_space<vmem>>, vector<1x32xf32>
    %c0_11 = arith.constant 0 : index
    %c0_12 = arith.constant 0 : index
    %10 = vector.load %arg6[%c0_11, %c0_12] : memref<1x32xf32, #tpu.memory_space<vmem>>, vector<1x32xf32>
    %cst_13 = arith.constant dense<0.000000e+00> : vector<16xf32>
    %11 = vector.multi_reduction <add>, %1, %cst_13 [1] : vector<16x32xf32> to vector<16xf32>
    %12 = vector.shape_cast %11 : vector<16xf32> to vector<16x1xf32>
    %cst_14 = arith.constant 3.200000e+01 : f32
    %13 = vector.broadcast %cst_14 : f32 to vector<16x1xf32>
    %14 = arith.divf %12, %13 : vector<16x1xf32>
    %15 = vector.broadcast %14 : vector<16x1xf32> to vector<16x32xf32>
    %16 = arith.subf %1, %15 : vector<16x32xf32>
    %17 = arith.mulf %16, %16 : vector<16x32xf32>
    %cst_15 = arith.constant dense<0.000000e+00> : vector<16xf32>
    %18 = vector.multi_reduction <add>, %17, %cst_15 [1] : vector<16x32xf32> to vector<16xf32>
    %19 = vector.shape_cast %18 : vector<16xf32> to vector<16x1xf32>
    %cst_16 = arith.constant 3.200000e+01 : f32
    %20 = vector.broadcast %cst_16 : f32 to vector<16x1xf32>
    %21 = arith.divf %19, %20 : vector<16x1xf32>
    %22 = vector.broadcast %14 : vector<16x1xf32> to vector<16x32xf32>
    %23 = arith.subf %1, %22 : vector<16x32xf32>
    %cst_17 = arith.constant 9.99999997E-7 : f32
    %24 = vector.broadcast %cst_17 : f32 to vector<16x1xf32>
    %25 = arith.addf %21, %24 : vector<16x1xf32>
    %26 = math.rsqrt %25 : vector<16x1xf32>
    %27 = vector.broadcast %26 : vector<16x1xf32> to vector<16x32xf32>
    %28 = arith.mulf %23, %27 : vector<16x32xf32>
    %29 = vector.broadcast %9 : vector<1x32xf32> to vector<16x32xf32>
    %30 = arith.mulf %28, %29 : vector<16x32xf32>
    %31 = vector.broadcast %10 : vector<1x32xf32> to vector<16x32xf32>
    %32 = arith.addf %30, %31 : vector<16x32xf32>
    %c0_18 = arith.constant 0 : index
    %c0_19 = arith.constant 0 : index
    %33 = vector.load %arg7[%c0_18, %c0_19] : memref<1x32xf32, #tpu.memory_space<vmem>>, vector<1x32xf32>
    %c0_20 = arith.constant 0 : index
    %c0_21 = arith.constant 0 : index
    %34 = vector.load %arg8[%c0_20, %c0_21] : memref<1x32xf32, #tpu.memory_space<vmem>>, vector<1x32xf32>
    %cst_22 = arith.constant dense<0.000000e+00> : vector<4xf32>
    %35 = vector.multi_reduction <add>, %8, %cst_22 [1] : vector<4x32xf32> to vector<4xf32>
    %36 = vector.shape_cast %35 : vector<4xf32> to vector<4x1xf32>
    %cst_23 = arith.constant 3.200000e+01 : f32
    %37 = vector.broadcast %cst_23 : f32 to vector<4x1xf32>
    %38 = arith.divf %36, %37 : vector<4x1xf32>
    %39 = vector.broadcast %38 : vector<4x1xf32> to vector<4x32xf32>
    %40 = arith.subf %8, %39 : vector<4x32xf32>
    %41 = arith.mulf %40, %40 : vector<4x32xf32>
    %cst_24 = arith.constant dense<0.000000e+00> : vector<4xf32>
    %42 = vector.multi_reduction <add>, %41, %cst_24 [1] : vector<4x32xf32> to vector<4xf32>
    %43 = vector.shape_cast %42 : vector<4xf32> to vector<4x1xf32>
    %cst_25 = arith.constant 3.200000e+01 : f32
    %44 = vector.broadcast %cst_25 : f32 to vector<4x1xf32>
    %45 = arith.divf %43, %44 : vector<4x1xf32>
    %46 = vector.broadcast %38 : vector<4x1xf32> to vector<4x32xf32>
    %47 = arith.subf %8, %46 : vector<4x32xf32>
    %cst_26 = arith.constant 9.99999997E-7 : f32
    %48 = vector.broadcast %cst_26 : f32 to vector<4x1xf32>
    %49 = arith.addf %45, %48 : vector<4x1xf32>
    %50 = math.rsqrt %49 : vector<4x1xf32>
    %51 = vector.broadcast %50 : vector<4x1xf32> to vector<4x32xf32>
    %52 = arith.mulf %47, %51 : vector<4x32xf32>
    %53 = vector.broadcast %33 : vector<1x32xf32> to vector<4x32xf32>
    %54 = arith.mulf %52, %53 : vector<4x32xf32>
    %55 = vector.broadcast %34 : vector<1x32xf32> to vector<4x32xf32>
    %56 = arith.addf %54, %55 : vector<4x32xf32>
    %c0_27 = arith.constant 0 : index
    %c0_28 = arith.constant 0 : index
    %57 = vector.load %arg9[%c0_27, %c0_28] : memref<32x32xf32, #tpu.memory_space<vmem>>, vector<32x32xf32>
    %cst_29 = arith.constant dense<0.000000e+00> : vector<16x32xf32>
    %58 = tpu.matmul %32, %57, %cst_29 {dimension_numbers = #tpu.dot_dimension_numbers<[1], [0], [0], [1], [0, 0, 1, 1], [], []>} : vector<16x32xf32>, vector<32x32xf32>, vector<16x32xf32> -> vector<16x32xf32>
    %c0_30 = arith.constant 0 : index
    %c0_31 = arith.constant 0 : index
    %59 = vector.load %arg10[%c0_30, %c0_31] : memref<1x32xf32, #tpu.memory_space<vmem>>, vector<1x32xf32>
    %60 = vector.broadcast %59 : vector<1x32xf32> to vector<16x32xf32>
    %61 = arith.addf %58, %60 : vector<16x32xf32>
    %c0_32 = arith.constant 0 : index
    %c0_33 = arith.constant 0 : index
    %62 = vector.load %arg11[%c0_32, %c0_33] : memref<32x32xf32, #tpu.memory_space<vmem>>, vector<32x32xf32>
    %cst_34 = arith.constant dense<0.000000e+00> : vector<4x32xf32>
    %63 = tpu.matmul %56, %62, %cst_34 {dimension_numbers = #tpu.dot_dimension_numbers<[1], [0], [0], [1], [0, 0, 1, 1], [], []>} : vector<4x32xf32>, vector<32x32xf32>, vector<4x32xf32> -> vector<4x32xf32>
    %c0_35 = arith.constant 0 : index
    %c0_36 = arith.constant 0 : index
    %64 = vector.load %arg12[%c0_35, %c0_36] : memref<1x32xf32, #tpu.memory_space<vmem>>, vector<1x32xf32>
    %65 = vector.broadcast %64 : vector<1x32xf32> to vector<4x32xf32>
    %66 = arith.addf %63, %65 : vector<4x32xf32>
    %c0_37 = arith.constant 0 : index
    %c0_38 = arith.constant 0 : index
    %67 = vector.load %arg13[%c0_37, %c0_38] : memref<32x32xf32, #tpu.memory_space<vmem>>, vector<32x32xf32>
    %cst_39 = arith.constant dense<0.000000e+00> : vector<4x32xf32>
    %68 = tpu.matmul %56, %67, %cst_39 {dimension_numbers = #tpu.dot_dimension_numbers<[1], [0], [0], [1], [0, 0, 1, 1], [], []>} : vector<4x32xf32>, vector<32x32xf32>, vector<4x32xf32> -> vector<4x32xf32>
    %c0_40 = arith.constant 0 : index
    %c0_41 = arith.constant 0 : index
    %69 = vector.load %arg14[%c0_40, %c0_41] : memref<1x32xf32, #tpu.memory_space<vmem>>, vector<1x32xf32>
    %70 = vector.broadcast %69 : vector<1x32xf32> to vector<4x32xf32>
    %71 = arith.addf %68, %70 : vector<4x32xf32>
    %72 = vector.extract_strided_slice %61 {offsets = [0, 0], sizes = [16, 16], strides = [1, 1]} : vector<16x32xf32> to vector<16x16xf32>
    %73 = vector.extract_strided_slice %66 {offsets = [0, 0], sizes = [4, 16], strides = [1, 1]} : vector<4x32xf32> to vector<4x16xf32>
    %74 = vector.extract_strided_slice %71 {offsets = [0, 0], sizes = [4, 16], strides = [1, 1]} : vector<4x32xf32> to vector<4x16xf32>
    %cst_42 = arith.constant dense<0.000000e+00> : vector<16x4xf32>
    %75 = tpu.matmul %72, %73, %cst_42 {dimension_numbers = #tpu.dot_dimension_numbers<[1], [1], [0], [0], [0, 0, 1, 0], [], []>} : vector<16x16xf32>, vector<4x16xf32>, vector<16x4xf32> -> vector<16x4xf32>
    %cst_43 = arith.constant 2.500000e-01 : f32
    %76 = vector.broadcast %cst_43 : f32 to vector<16x4xf32>
    %77 = arith.mulf %75, %76 : vector<16x4xf32>
    %cst_44 = arith.constant dense<0xFF800000> : vector<16xf32>
    %78 = vector.multi_reduction <maximumf>, %77, %cst_44 [1] : vector<16x4xf32> to vector<16xf32>
    %79 = vector.shape_cast %78 : vector<16xf32> to vector<16x1xf32>
    %80 = vector.broadcast %79 : vector<16x1xf32> to vector<16x4xf32>
    %81 = arith.subf %77, %80 : vector<16x4xf32>
    %82 = math.exp %81 : vector<16x4xf32>
    %cst_45 = arith.constant dense<0.000000e+00> : vector<16xf32>
    %83 = vector.multi_reduction <add>, %82, %cst_45 [1] : vector<16x4xf32> to vector<16xf32>
    %84 = vector.shape_cast %83 : vector<16xf32> to vector<16x1xf32>
    %85 = tpu.reciprocal %84 {approx = true} : vector<16x1xf32> -> vector<16x1xf32>
    %86 = vector.broadcast %85 : vector<16x1xf32> to vector<16x4xf32>
    %87 = arith.mulf %82, %86 : vector<16x4xf32>
    %cst_46 = arith.constant dense<0.000000e+00> : vector<16x16xf32>
    %88 = tpu.matmul %87, %74, %cst_46 {dimension_numbers = #tpu.dot_dimension_numbers<[1], [0], [0], [1], [0, 0, 1, 1], [], []>} : vector<16x4xf32>, vector<4x16xf32>, vector<16x16xf32> -> vector<16x16xf32>
    %89 = vector.extract_strided_slice %61 {offsets = [0, 16], sizes = [16, 16], strides = [1, 1]} : vector<16x32xf32> to vector<16x16xf32>
    %90 = vector.extract_strided_slice %66 {offsets = [0, 16], sizes = [4, 16], strides = [1, 1]} : vector<4x32xf32> to vector<4x16xf32>
    %91 = vector.extract_strided_slice %71 {offsets = [0, 16], sizes = [4, 16], strides = [1, 1]} : vector<4x32xf32> to vector<4x16xf32>
    %cst_47 = arith.constant dense<0.000000e+00> : vector<16x4xf32>
    %92 = tpu.matmul %89, %90, %cst_47 {dimension_numbers = #tpu.dot_dimension_numbers<[1], [1], [0], [0], [0, 0, 1, 0], [], []>} : vector<16x16xf32>, vector<4x16xf32>, vector<16x4xf32> -> vector<16x4xf32>
    %cst_48 = arith.constant 2.500000e-01 : f32
    %93 = vector.broadcast %cst_48 : f32 to vector<16x4xf32>
    %94 = arith.mulf %92, %93 : vector<16x4xf32>
    %cst_49 = arith.constant dense<0xFF800000> : vector<16xf32>
    %95 = vector.multi_reduction <maximumf>, %94, %cst_49 [1] : vector<16x4xf32> to vector<16xf32>
    %96 = vector.shape_cast %95 : vector<16xf32> to vector<16x1xf32>
    %97 = vector.broadcast %96 : vector<16x1xf32> to vector<16x4xf32>
    %98 = arith.subf %94, %97 : vector<16x4xf32>
    %99 = math.exp %98 : vector<16x4xf32>
    %cst_50 = arith.constant dense<0.000000e+00> : vector<16xf32>
    %100 = vector.multi_reduction <add>, %99, %cst_50 [1] : vector<16x4xf32> to vector<16xf32>
    %101 = vector.shape_cast %100 : vector<16xf32> to vector<16x1xf32>
    %102 = tpu.reciprocal %101 {approx = true} : vector<16x1xf32> -> vector<16x1xf32>
    %103 = vector.broadcast %102 : vector<16x1xf32> to vector<16x4xf32>
    %104 = arith.mulf %99, %103 : vector<16x4xf32>
    %cst_51 = arith.constant dense<0.000000e+00> : vector<16x16xf32>
    %105 = tpu.matmul %104, %91, %cst_51 {dimension_numbers = #tpu.dot_dimension_numbers<[1], [0], [0], [1], [0, 0, 1, 1], [], []>} : vector<16x4xf32>, vector<4x16xf32>, vector<16x16xf32> -> vector<16x16xf32>
    %106 = tpu.concatenate %88, %105 in 1 : vector<16x16xf32>, vector<16x16xf32> -> vector<16x32xf32>
    %c0_52 = arith.constant 0 : index
    %c0_53 = arith.constant 0 : index
    %107 = vector.load %arg15[%c0_52, %c0_53] : memref<32x32xf32, #tpu.memory_space<vmem>>, vector<32x32xf32>
    %cst_54 = arith.constant dense<0.000000e+00> : vector<16x32xf32>
    %108 = tpu.matmul %106, %107, %cst_54 {dimension_numbers = #tpu.dot_dimension_numbers<[1], [0], [0], [1], [0, 0, 1, 1], [], []>} : vector<16x32xf32>, vector<32x32xf32>, vector<16x32xf32> -> vector<16x32xf32>
    %c0_55 = arith.constant 0 : index
    %c0_56 = arith.constant 0 : index
    %109 = vector.load %arg16[%c0_55, %c0_56] : memref<1x32xf32, #tpu.memory_space<vmem>>, vector<1x32xf32>
    %110 = vector.broadcast %109 : vector<1x32xf32> to vector<16x32xf32>
    %111 = arith.addf %108, %110 : vector<16x32xf32>
    %c0_57 = arith.constant 0 : index
    %c0_58 = arith.constant 0 : index
    %112 = vector.load %arg17[%c0_57, %c0_58] : memref<1x32xf32, #tpu.memory_space<vmem>>, vector<1x32xf32>
    %113 = vector.broadcast %112 : vector<1x32xf32> to vector<16x32xf32>
    %114 = arith.mulf %113, %111 : vector<16x32xf32>
    %115 = arith.addf %1, %114 : vector<16x32xf32>
    %c0_59 = arith.constant 0 : index
    %c0_60 = arith.constant 0 : index
    %c0_61 = arith.constant 0 : index
    %116 = vector.load %arg18[%c0_59, %c0_60, %c0_61] : memref<1x16x32xf32, #tpu.memory_space<vmem>>, vector<1x16x32xf32>
    %117 = vector.shape_cast %116 : vector<1x16x32xf32> to vector<16x32xf32>
    %118 = vector.shape_cast %115 : vector<16x32xf32> to vector<1x16x32xf32>
    tpu.vector_store %arg18[%c0_59, %c0_60, %c0_61], %118 {strides = array<i32>} : memref<1x16x32xf32, #tpu.memory_space<vmem>>, vector<1x16x32xf32>,
    return
  }
  func.func @transform_0(%arg0: i32) -> (i32, i32, i32) {
    %c0_i32 = arith.constant 0 : i32
    %c0_i32_0 = arith.constant 0 : i32
    %c0_i32_1 = arith.constant 0 : i32
    return %arg0, %c0_i32, %c0_i32_0 : i32, i32, i32
  }
  func.func @transform_1(%arg0: i32) -> (i32, i32, i32) {
    %c0_i32 = arith.constant 0 : i32
    %c0_i32_0 = arith.constant 0 : i32
    %c0_i32_1 = arith.constant 0 : i32
    return %arg0, %c0_i32, %c0_i32_0 : i32, i32, i32
  }
  func.func @transform_2(%arg0: i32) -> (i32, i32) {
    %c0_i32 = arith.constant 0 : i32
    %c0_i32_0 = arith.constant 0 : i32
    %c0_i32_1 = arith.constant 0 : i32
    return %c0_i32, %c0_i32_0 : i32, i32
  }
  func.func @transform_3(%arg0: i32) -> (i32, i32) {
    %c0_i32 = arith.constant 0 : i32
    %c0_i32_0 = arith.constant 0 : i32
    %c0_i32_1 = arith.constant 0 : i32
    return %c0_i32, %c0_i32_0 : i32, i32
  }
  func.func @transform_4(%arg0: i32) -> (i32, i32) {
    %c0_i32 = arith.constant 0 : i32
    %c0_i32_0 = arith.constant 0 : i32
    %c0_i32_1 = arith.constant 0 : i32
    return %c0_i32, %c0_i32_0 : i32, i32
  }
  func.func @transform_5(%arg0: i32) -> (i32, i32) {
    %c0_i32 = arith.constant 0 : i32
    %c0_i32_0 = arith.constant 0 : i32
    %c0_i32_1 = arith.constant 0 : i32
    return %c0_i32, %c0_i32_0 : i32, i32
  }
  func.func @transform_6(%arg0: i32) -> (i32, i32) {
    %c0_i32 = arith.constant 0 : i32
    %c0_i32_0 = arith.constant 0 : i32
    %c0_i32_1 = arith.constant 0 : i32
    return %c0_i32, %c0_i32_0 : i32, i32
  }
  func.func @transform_7(%arg0: i32) -> (i32, i32) {
    %c0_i32 = arith.constant 0 : i32
    %c0_i32_0 = arith.constant 0 : i32
    %c0_i32_1 = arith.constant 0 : i32
    return %c0_i32, %c0_i32_0 : i32, i32
  }
  func.func @transform_8(%arg0: i32) -> (i32, i32) {
    %c0_i32 = arith.constant 0 : i32
    %c0_i32_0 = arith.constant 0 : i32
    %c0_i32_1 = arith.constant 0 : i32
    return %c0_i32, %c0_i32_0 : i32, i32
  }
  func.func @transform_9(%arg0: i32) -> (i32, i32) {
    %c0_i32 = arith.constant 0 : i32
    %c0_i32_0 = arith.constant 0 : i32
    %c0_i32_1 = arith.constant 0 : i32
    return %c0_i32, %c0_i32_0 : i32, i32
  }
  func.func @transform_10(%arg0: i32) -> (i32, i32) {
    %c0_i32 = arith.constant 0 : i32
    %c0_i32_0 = arith.constant 0 : i32
    %c0_i32_1 = arith.constant 0 : i32
    return %c0_i32, %c0_i32_0 : i32, i32
  }
  func.func @transform_11(%arg0: i32) -> (i32, i32) {
    %c0_i32 = arith.constant 0 : i32
    %c0_i32_0 = arith.constant 0 : i32
    %c0_i32_1 = arith.constant 0 : i32
    return %c0_i32, %c0_i32_0 : i32, i32
  }
  func.func @transform_12(%arg0: i32) -> (i32, i32) {
    %c0_i32 = arith.constant 0 : i32
    %c0_i32_0 = arith.constant 0 : i32
    %c0_i32_1 = arith.constant 0 : i32
    return %c0_i32, %c0_i32_0 : i32, i32
  }
  func.func @transform_13(%arg0: i32) -> (i32, i32) {
    %c0_i32 = arith.constant 0 : i32
    %c0_i32_0 = arith.constant 0 : i32
    %c0_i32_1 = arith.constant 0 : i32
    return %c0_i32, %c0_i32_0 : i32, i32
  }
  func.func @transform_14(%arg0: i32) -> (i32, i32) {
    %c0_i32 = arith.constant 0 : i32
    %c0_i32_0 = arith.constant 0 : i32
    %c0_i32_1 = arith.constant 0 : i32
    return %c0_i32, %c0_i32_0 : i32, i32
  }
  func.func @transform_15(%arg0: i32) -> (i32, i32) {
    %c0_i32 = arith.constant 0 : i32
    %c0_i32_0 = arith.constant 0 : i32
    %c0_i32_1 = arith.constant 0 : i32
    return %c0_i32, %c0_i32_0 : i32, i32
  }
  func.func @transform_16(%arg0: i32) -> (i32, i32) {
    %c0_i32 = arith.constant 0 : i32
    %c0_i32_0 = arith.constant 0 : i32
    %c0_i32_1 = arith.constant 0 : i32
    return %c0_i32, %c0_i32_0 : i32, i32
  }
  func.func @transform_17(%arg0: i32) -> (i32, i32, i32) {
    %c0_i32 = arith.constant 0 : i32
    %c0_i32_0 = arith.constant 0 : i32
    %c0_i32_1 = arith.constant 0 : i32
    return %arg0, %c0_i32, %c0_i32_0 : i32, i32, i32
  }
}

module attributes {stable_mosaic.version = 11 : i64} {
  func.func @_gn_tokens_kernel(%arg0: i32, %arg1: memref<1x4x64xf32, #tpu.memory_space<vmem>>, %arg2: memref<64x64xf32, #tpu.memory_space<vmem>>, %arg3: memref<1x64xf32, #tpu.memory_space<vmem>>, %arg4: memref<1x64xf32, #tpu.memory_space<vmem>>, %arg5: memref<1x4x64xf32, #tpu.memory_space<vmem>>) attributes {dimension_semantics = [#tpu.dimension_semantics<parallel>], iteration_bounds = array<i64: 2>, scalar_prefetch = 0 : i64, scratch_operands = 0 : i64, tpu.core_type = #tpu.core_type<tc>, window_params = [{transform_indices = @transform_0, window_bounds = array<i64: 1, 4, 64>}, {pipeline_mode = #tpu.pipeline_mode<synchronous>, transform_indices = @transform_1, window_bounds = array<i64: 64, 64>}, {pipeline_mode = #tpu.pipeline_mode<synchronous>, transform_indices = @transform_2, window_bounds = array<i64: 1, 64>}, {pipeline_mode = #tpu.pipeline_mode<synchronous>, transform_indices = @transform_3, window_bounds = array<i64: 1, 64>}, {transform_indices = @transform_4, window_bounds = array<i64: 1, 4, 64>}]} {
    %c0 = arith.constant 0 : index
    %c0_0 = arith.constant 0 : index
    %c0_1 = arith.constant 0 : index
    %0 = vector.load %arg1[%c0, %c0_0, %c0_1] : memref<1x4x64xf32, #tpu.memory_space<vmem>>, vector<1x4x64xf32>
    %1 = vector.shape_cast %0 : vector<1x4x64xf32> to vector<4x64xf32>
    %c0_2 = arith.constant 0 : index
    %c0_3 = arith.constant 0 : index
    %2 = vector.load %arg3[%c0_2, %c0_3] : memref<1x64xf32, #tpu.memory_space<vmem>>, vector<1x64xf32>
    %c0_4 = arith.constant 0 : index
    %c0_5 = arith.constant 0 : index
    %3 = vector.load %arg4[%c0_4, %c0_5] : memref<1x64xf32, #tpu.memory_space<vmem>>, vector<1x64xf32>
    %c0_6 = arith.constant 0 : index
    %c0_7 = arith.constant 0 : index
    %4 = vector.load %arg2[%c0_6, %c0_7] : memref<64x64xf32, #tpu.memory_space<vmem>>, vector<64x64xf32>
    %cst = arith.constant dense<0.000000e+00> : vector<64xf32>
    %5 = vector.multi_reduction <add>, %1, %cst [0] : vector<4x64xf32> to vector<64xf32>
    %6 = vector.shape_cast %5 : vector<64xf32> to vector<1x64xf32>
    %cst_8 = arith.constant 4.000000e+00 : f32
    %7 = vector.broadcast %cst_8 : f32 to vector<1x64xf32>
    %8 = arith.divf %6, %7 : vector<1x64xf32>
    %cst_9 = arith.constant dense<0.000000e+00> : vector<1x64xf32>
    %9 = tpu.matmul %8, %4, %cst_9 {dimension_numbers = #tpu.dot_dimension_numbers<[1], [0], [0], [1], [0, 0, 1, 1], [], []>} : vector<1x64xf32>, vector<64x64xf32>, vector<1x64xf32> -> vector<1x64xf32>
    %10 = vector.broadcast %9 : vector<1x64xf32> to vector<4x64xf32>
    %11 = arith.subf %1, %10 : vector<4x64xf32>
    %12 = arith.mulf %11, %11 : vector<4x64xf32>
    %cst_10 = arith.constant dense<0.000000e+00> : vector<64xf32>
    %13 = vector.multi_reduction <add>, %12, %cst_10 [0] : vector<4x64xf32> to vector<64xf32>
    %14 = vector.shape_cast %13 : vector<64xf32> to vector<1x64xf32>
    %cst_11 = arith.constant 4.000000e+00 : f32
    %15 = vector.broadcast %cst_11 : f32 to vector<1x64xf32>
    %16 = arith.divf %14, %15 : vector<1x64xf32>
    %cst_12 = arith.constant dense<0.000000e+00> : vector<1x64xf32>
    %17 = tpu.matmul %16, %4, %cst_12 {dimension_numbers = #tpu.dot_dimension_numbers<[1], [0], [0], [1], [0, 0, 1, 1], [], []>} : vector<1x64xf32>, vector<64x64xf32>, vector<1x64xf32> -> vector<1x64xf32>
    %cst_13 = arith.constant 9.99999974E-6 : f32
    %18 = vector.broadcast %cst_13 : f32 to vector<1x64xf32>
    %19 = arith.addf %17, %18 : vector<1x64xf32>
    %20 = math.rsqrt %19 : vector<1x64xf32>
    %21 = vector.broadcast %20 : vector<1x64xf32> to vector<4x64xf32>
    %22 = arith.mulf %11, %21 : vector<4x64xf32>
    %23 = vector.broadcast %2 : vector<1x64xf32> to vector<4x64xf32>
    %24 = arith.mulf %22, %23 : vector<4x64xf32>
    %25 = vector.broadcast %3 : vector<1x64xf32> to vector<4x64xf32>
    %26 = arith.addf %24, %25 : vector<4x64xf32>
    %c0_14 = arith.constant 0 : index
    %c0_15 = arith.constant 0 : index
    %c0_16 = arith.constant 0 : index
    %27 = vector.load %arg5[%c0_14, %c0_15, %c0_16] : memref<1x4x64xf32, #tpu.memory_space<vmem>>, vector<1x4x64xf32>
    %28 = vector.shape_cast %27 : vector<1x4x64xf32> to vector<4x64xf32>
    %29 = vector.shape_cast %26 : vector<4x64xf32> to vector<1x4x64xf32>
    tpu.vector_store %arg5[%c0_14, %c0_15, %c0_16], %29 {strides = array<i32>} : memref<1x4x64xf32, #tpu.memory_space<vmem>>, vector<1x4x64xf32>,
    return
  }
  func.func @transform_0(%arg0: i32) -> (i32, i32, i32) {
    %c0_i32 = arith.constant 0 : i32
    %c0_i32_0 = arith.constant 0 : i32
    %c0_i32_1 = arith.constant 0 : i32
    return %arg0, %c0_i32, %c0_i32_0 : i32, i32, i32
  }
  func.func @transform_1(%arg0: i32) -> (i32, i32) {
    %c0_i32 = arith.constant 0 : i32
    %c0_i32_0 = arith.constant 0 : i32
    %c0_i32_1 = arith.constant 0 : i32
    return %c0_i32, %c0_i32_0 : i32, i32
  }
  func.func @transform_2(%arg0: i32) -> (i32, i32) {
    %c0_i32 = arith.constant 0 : i32
    %c0_i32_0 = arith.constant 0 : i32
    %c0_i32_1 = arith.constant 0 : i32
    return %c0_i32, %c0_i32_0 : i32, i32
  }
  func.func @transform_3(%arg0: i32) -> (i32, i32) {
    %c0_i32 = arith.constant 0 : i32
    %c0_i32_0 = arith.constant 0 : i32
    %c0_i32_1 = arith.constant 0 : i32
    return %c0_i32, %c0_i32_0 : i32, i32
  }
  func.func @transform_4(%arg0: i32) -> (i32, i32, i32) {
    %c0_i32 = arith.constant 0 : i32
    %c0_i32_0 = arith.constant 0 : i32
    %c0_i32_1 = arith.constant 0 : i32
    return %arg0, %c0_i32, %c0_i32_0 : i32, i32, i32
  }
}

module attributes {stable_mosaic.version = 11 : i64} {
  func.func @_tail_kernel(%arg0: memref<32x64xf32, #tpu.memory_space<vmem>>, %arg1: memref<32x64xf32, #tpu.memory_space<vmem>>, %arg2: memref<1xf32, #tpu.memory_space<smem>>, %arg3: memref<1xf32, #tpu.memory_space<smem>>, %arg4: memref<1x64xf32, #tpu.memory_space<vmem>>, %arg5: memref<1x64xf32, #tpu.memory_space<vmem>>, %arg6: memref<2x32xf32, #tpu.memory_space<vmem>>, %arg7: memref<64x10xf32, #tpu.memory_space<vmem>>, %arg8: memref<1x10xf32, #tpu.memory_space<vmem>>, %arg9: memref<2x10xf32, #tpu.memory_space<vmem>>) attributes {dimension_semantics = [], scalar_prefetch = 0 : i64, scratch_operands = 0 : i64, tpu.core_type = #tpu.core_type<tc>} {
    %c0 = arith.constant 0 : index
    %0 = memref.load %arg2[%c0] : memref<1xf32, #tpu.memory_space<smem>>
    %c0_0 = arith.constant 0 : index
    %1 = memref.load %arg3[%c0_0] : memref<1xf32, #tpu.memory_space<smem>>
    %c0_1 = arith.constant 0 : index
    %c0_2 = arith.constant 0 : index
    %2 = vector.load %arg0[%c0_1, %c0_2] : memref<32x64xf32, #tpu.memory_space<vmem>>, vector<32x64xf32>
    %3 = vector.broadcast %0 : f32 to vector<32x64xf32>
    %4 = arith.mulf %2, %3 : vector<32x64xf32>
    %c0_3 = arith.constant 0 : index
    %c0_4 = arith.constant 0 : index
    %5 = vector.load %arg1[%c0_3, %c0_4] : memref<32x64xf32, #tpu.memory_space<vmem>>, vector<32x64xf32>
    %6 = vector.broadcast %1 : f32 to vector<32x64xf32>
    %7 = arith.mulf %5, %6 : vector<32x64xf32>
    %8 = arith.addf %4, %7 : vector<32x64xf32>
    %c0_5 = arith.constant 0 : index
    %c0_6 = arith.constant 0 : index
    %9 = vector.load %arg4[%c0_5, %c0_6] : memref<1x64xf32, #tpu.memory_space<vmem>>, vector<1x64xf32>
    %c0_7 = arith.constant 0 : index
    %c0_8 = arith.constant 0 : index
    %10 = vector.load %arg5[%c0_7, %c0_8] : memref<1x64xf32, #tpu.memory_space<vmem>>, vector<1x64xf32>
    %cst = arith.constant dense<0.000000e+00> : vector<32xf32>
    %11 = vector.multi_reduction <add>, %8, %cst [1] : vector<32x64xf32> to vector<32xf32>
    %12 = vector.shape_cast %11 : vector<32xf32> to vector<32x1xf32>
    %cst_9 = arith.constant 6.400000e+01 : f32
    %13 = vector.broadcast %cst_9 : f32 to vector<32x1xf32>
    %14 = arith.divf %12, %13 : vector<32x1xf32>
    %15 = vector.broadcast %14 : vector<32x1xf32> to vector<32x64xf32>
    %16 = arith.subf %8, %15 : vector<32x64xf32>
    %17 = arith.mulf %16, %16 : vector<32x64xf32>
    %cst_10 = arith.constant dense<0.000000e+00> : vector<32xf32>
    %18 = vector.multi_reduction <add>, %17, %cst_10 [1] : vector<32x64xf32> to vector<32xf32>
    %19 = vector.shape_cast %18 : vector<32xf32> to vector<32x1xf32>
    %cst_11 = arith.constant 6.400000e+01 : f32
    %20 = vector.broadcast %cst_11 : f32 to vector<32x1xf32>
    %21 = arith.divf %19, %20 : vector<32x1xf32>
    %22 = vector.broadcast %14 : vector<32x1xf32> to vector<32x64xf32>
    %23 = arith.subf %8, %22 : vector<32x64xf32>
    %cst_12 = arith.constant 9.99999997E-7 : f32
    %24 = vector.broadcast %cst_12 : f32 to vector<32x1xf32>
    %25 = arith.addf %21, %24 : vector<32x1xf32>
    %26 = math.rsqrt %25 : vector<32x1xf32>
    %27 = vector.broadcast %26 : vector<32x1xf32> to vector<32x64xf32>
    %28 = arith.mulf %23, %27 : vector<32x64xf32>
    %29 = vector.broadcast %9 : vector<1x64xf32> to vector<32x64xf32>
    %30 = arith.mulf %28, %29 : vector<32x64xf32>
    %31 = vector.broadcast %10 : vector<1x64xf32> to vector<32x64xf32>
    %32 = arith.addf %30, %31 : vector<32x64xf32>
    %c0_13 = arith.constant 0 : index
    %c0_14 = arith.constant 0 : index
    %33 = vector.load %arg6[%c0_13, %c0_14] : memref<2x32xf32, #tpu.memory_space<vmem>>, vector<2x32xf32>
    %cst_15 = arith.constant dense<0.000000e+00> : vector<2x64xf32>
    %34 = tpu.matmul %33, %32, %cst_15 {dimension_numbers = #tpu.dot_dimension_numbers<[1], [0], [0], [1], [0, 0, 1, 1], [], []>} : vector<2x32xf32>, vector<32x64xf32>, vector<2x64xf32> -> vector<2x64xf32>
    %c0_16 = arith.constant 0 : index
    %c0_17 = arith.constant 0 : index
    %35 = vector.load %arg7[%c0_16, %c0_17] : memref<64x10xf32, #tpu.memory_space<vmem>>, vector<64x10xf32>
    %cst_18 = arith.constant dense<0.000000e+00> : vector<2x10xf32>
    %36 = tpu.matmul %34, %35, %cst_18 {dimension_numbers = #tpu.dot_dimension_numbers<[1], [0], [0], [1], [0, 0, 1, 1], [], []>} : vector<2x64xf32>, vector<64x10xf32>, vector<2x10xf32> -> vector<2x10xf32>
    %c0_19 = arith.constant 0 : index
    %c0_20 = arith.constant 0 : index
    %37 = vector.load %arg8[%c0_19, %c0_20] : memref<1x10xf32, #tpu.memory_space<vmem>>, vector<1x10xf32>
    %38 = vector.broadcast %37 : vector<1x10xf32> to vector<2x10xf32>
    %39 = arith.addf %36, %38 : vector<2x10xf32>
    %c0_21 = arith.constant 0 : index
    %c0_22 = arith.constant 0 : index
    %40 = vector.load %arg9[%c0_21, %c0_22] : memref<2x10xf32, #tpu.memory_space<vmem>>, vector<2x10xf32>
    tpu.vector_store %arg9[%c0_21, %c0_22], %39 {strides = array<i32>} : memref<2x10xf32, #tpu.memory_space<vmem>>, vector<2x10xf32>,
    return
  }
}

</mosaic_0001>

<bundles_post_ra>
// kernel: piip_forward.15
= control target key start
LH: loop header
LB: loop body
LE: loop exit
PB: predicated region body
PF: predicated region fallthrough
CT: control target
= control target key end

     0   :  { %s834_s15 = smov 0   ;;  %s1164_s0 = inlined_call_operand.vmem [shape: f32[2,4,768], index: 0, kind: input, shape index: {}]   ;;  %s1165_s1 = inlined_call_operand.vmem [shape: f32[768,64], index: 1, kind: input, shape index: {}]   ;;  %s1166_s2 = inlined_call_operand.vmem [shape: f32[1,64], index: 2, kind: input, shape index: {}]   ;;  %s1167_s3 = inlined_call_operand.vmem [shape: f32[4,64], index: 3, kind: input, shape index: {}]   ;;  %s1168_s4 = inlined_call_operand.vmem [shape: f32[2,4,64], index: 4, kind: output, shape index: {}]  }
   0x1 LB: > { %s578_s16 = sadd.s32 4294967295, %s807_s15   ;;  %p582_p0 = scmp.ge.s32.totalorder %s807_s15, 1  ;;  %s807_s15 = sphi %s834_s15, %s14_s15  }
   0x2   : > { %p162_p1 = scmp.lt.s32.totalorder %s807_s15, 3 }
   0x4   : > { %p163_p2 = pnand %p582_p0, %p162_p1 }
   0x5   : > { %v215_v0 = vld [vmem:[%s1165_s1 + $0x80] sm:$0xff] (!%p163_p2)  ;;  %v216_v1 = vld [vmem:[%s1165_s1 + $0x88] sm:$0xff] (!%p163_p2)  ;;  %v217_v11 = vld [vmem:[%s1165_s1 + $0x90] sm:$0xff] (!%p163_p2)  ;;  %p898_p3 = scmp.lt.s32.totalorder (!%p163_p2), %s578_s16, 1  ;;  %vm523_vm0 = vcmask (!%p163_p2), 519168  }
   0x6   : > { %166 = sbr.rel (%p163_p2) target bundleno = 292 (0x124), region = 36  ;;  %v199_v2 = vld [vmem:[%s1165_s1] sm:$0xff] (!%p163_p2)  ;;  %v693_v3 = vpack.c.bf16 (!%p163_p2), %v216_v1, %v215_v0  ;;  %v200_v4 = vld [vmem:[%s1165_s1 + $0x8] sm:$0xff] (!%p163_p2)  ;;  %v218_v13 = vld [vmem:[%s1165_s1 + $0x98] sm:$0xff] (!%p163_p2) }
   0x7   : > { %v247_v5 = vld [vmem:[%s1165_s1 + $0x180] sm:$0xff] (!%p163_p2)  ;;  %v248_v6 = vld [vmem:[%s1165_s1 + $0x188] sm:$0xff] (!%p163_p2)  ;;  %v695_v7 = vpack.c.bf16 (!%p163_p2), %v200_v4, %v199_v2  ;;  %v201_v14 = vld [vmem:[%s1165_s1 + $0x10] sm:$0xff] (!%p163_p2)  ;;  %v697_v16 = vpack.c.bf16 (!%p163_p2), %v218_v13, %v217_v11 }
   0x8   : > { %v725_v8 = vpack.c.bf16 (!%p163_p2), %v248_v6, %v247_v5  ;;  %v231_v9 = vld [vmem:[%s1165_s1 + $0x100] sm:$0xff] (!%p163_p2)  ;;  %v232_v10 = vld [vmem:[%s1165_s1 + $0x108] sm:$0xff] (!%p163_p2)  ;;  %694 = vmatprep.subr.bf16.mxu0 (!%p163_p2), %v693_v3  ;;  %v202_v15 = vld [vmem:[%s1165_s1 + $0x18] sm:$0xff] (!%p163_p2) }
   0x9   : > { %v727_v12 = vpack.c.bf16 (!%p163_p2), %v232_v10, %v231_v9  ;;  %696 = vmatpush3.bf16.msra.mxu0 (!%p163_p2), %v695_v7  ;;  %v699_v17 = vpack.c.bf16 (!%p163_p2), %v202_v15, %v201_v14  ;;  %v249_v18 = vld [vmem:[%s1165_s1 + $0x190] sm:$0xff] (!%p163_p2)  ;;  %v250_v19 = vld [vmem:[%s1165_s1 + $0x198] sm:$0xff] (!%p163_p2)  ;;  %v219_v23 = vld [vmem:[%s1165_s1 + $0xa0] sm:$0xff] (!%p163_p2) }
   0xa   : > { %726 = vmatprep.subr.bf16.mxu1 (!%p163_p2), %v725_v8  ;;  %v233_v20 = vld [vmem:[%s1165_s1 + $0x110] sm:$0xff] (!%p163_p2)  ;;  %v729_v21 = vpack.c.bf16 (!%p163_p2), %v250_v19, %v249_v18  ;;  %v234_v22 = vld [vmem:[%s1165_s1 + $0x118] sm:$0xff] (!%p163_p2)  ;;  %v220_v24 = vld [vmem:[%s1165_s1 + $0xa8] sm:$0xff] (!%p163_p2)  ;;  %698 = vmatprep.subr.bf16.mxu0 (!%p163_p2), %v697_v16 }
   0xb   : > { %728 = vmatpush3.bf16.msra.mxu1 (!%p163_p2), %v727_v12  ;;  %v731_v25 = vpack.c.bf16 (!%p163_p2), %v234_v22, %v233_v20  ;;  %v701_v26 = vpack.c.bf16 (!%p163_p2), %v220_v24, %v219_v23  ;;  %v203_v27 = vld [vmem:[%s1165_s1 + $0x20] sm:$0xff] (!%p163_p2)  ;;  %v204_v28 = vld [vmem:[%s1165_s1 + $0x28] sm:$0xff] (!%p163_p2)  ;;  %v221_v35 = vld [vmem:[%s1165_s1 + $0xb0] sm:$0xff] (!%p163_p2) }
   0xc   : > { %v251_v29 = vld [vmem:[%s1165_s1 + $0x1a0] sm:$0xff] (!%p163_p2)  ;;  %730 = vmatprep.subr.bf16.mxu1 (!%p163_p2), %v729_v21  ;;  %v252_v30 = vld [vmem:[%s1165_s1 + $0x1a8] sm:$0xff] (!%p163_p2)  ;;  %v703_v33 = vpack.c.bf16 (!%p163_p2), %v204_v28, %v203_v27  ;;  %v222_v36 = vld [vmem:[%s1165_s1 + $0xb8] sm:$0xff] (!%p163_p2) }
   0xd   : > { %v235_v31 = vld [vmem:[%s1165_s1 + $0x120] sm:$0xff]  ;;  %v236_v32 = vld [vmem:[%s1165_s1 + $0x128] sm:$0xff]  ;;  %700 = vmatpush3.bf16.msra.mxu0 %v699_v17  ;;  %v733_v34 = vpack.c.bf16 %v252_v30, %v251_v29  ;;  %v205_v37 = vld [vmem:[%s1165_s1 + $0x30] sm:$0xff]  ;;  %v705_v39 = vpack.c.bf16 %v222_v36, %v221_v35  ;;  %s1171_s16 = smov (!%p898_p3, %s578_s16), 1 }
   0xe   : > { %702 = vmatprep.subr.bf16.mxu0 %v701_v26  ;;  %v735_v38 = vpack.c.bf16 %v236_v32, %v235_v31  ;;  %v206_v40 = vld [vmem:[%s1165_s1 + $0x38] sm:$0xff]  ;;  %v253_v41 = vld [vmem:[%s1165_s1 + $0x1b0] sm:$0xff]  ;;  %v223_v46 = vld [vmem:[%s1165_s1 + $0xc0] sm:$0xff]  ;;  %s789_s24 = smul.u32 24, %s1171_s16  ;;  %s584_s27 = sshll.u32 %s1171_s16, 2 }
   0xf   : > { %732 = vmatpush3.bf16.msra.mxu1 %v731_v25  ;;  %v254_v42 = vld [vmem:[%s1165_s1 + $0x1b8] sm:$0xff]  ;;  %v237_v44 = vld [vmem:[%s1165_s1 + $0x130] sm:$0xff]  ;;  %v224_v47 = vld [vmem:[%s1165_s1 + $0xc8] sm:$0xff]  ;;  %v707_v48 = vpack.c.bf16 %v206_v40, %v205_v37  ;;  %s195_s5 = scalar_lea.vmem %s1168_s4, %s584_s27 }
  0x10   : > { %734 = vmatprep.subr.bf16.mxu1 %v733_v34  ;;  %v737_v43 = vpack.c.bf16 %v254_v42, %v253_v41  ;;  %v238_v45 = vld [vmem:[%s1165_s1 + $0x138] sm:$0xff]  ;;  %v255_v49 = vld [vmem:[%s1165_s1 + $0x1c0] sm:$0xff]  ;;  %v256_v50 = vld [vmem:[%s1165_s1 + $0x1c8] sm:$0xff]  ;;  %v709_v52 = vpack.c.bf16 %v224_v47, %v223_v46  ;;  %s999_s19 = scalar_lea.vmem %s1164_s0, %s789_s24 }
  0x11   : > { %704 = vmatpush3.bf16.msra.mxu0 %v703_v33  ;;  %v739_v51 = vpack.c.bf16 %v238_v45, %v237_v44  ;;  %v207_v53 = vld [vmem:[%s1165_s1 + $0x40] sm:$0xff]  ;;  %v208_v54 = vld [vmem:[%s1165_s1 + $0x48] sm:$0xff]  ;;  %v741_v56 = vpack.c.bf16 %v256_v50, %v255_v49  ;;  %v225_v58 = vld [vmem:[%s1165_s1 + $0xd0] sm:$0xff] }
  0x12   : > { %706 = vmatprep.subr.bf16.mxu0 %v705_v39  ;;  %v239_v55 = vld [vmem:[%s1165_s1 + $0x140] sm:$0xff]  ;;  %v240_v57 = vld [vmem:[%s1165_s1 + $0x148] sm:$0xff]  ;;  %v226_v59 = vld [vmem:[%s1165_s1 + $0xd8] sm:$0xff]  ;;  %v711_v62 = vpack.c.bf16 %v208_v54, %v207_v53 }
  0x13   : > { %736 = vmatpush3.bf16.msra.mxu1 %v735_v38  ;;  %v257_v60 = vld [vmem:[%s1165_s1 + $0x1d0] sm:$0xff]  ;;  %v258_v61 = vld [vmem:[%s1165_s1 + $0x1d8] sm:$0xff]  ;;  %v743_v63 = vpack.c.bf16 %v240_v57, %v239_v55  ;;  %v713_v0 = vpack.c.bf16 %v226_v59, %v225_v58  ;;  %v227_v6 = vld [vmem:[%s1165_s1 + $0xe0] sm:$0xff] }
  0x14   : > { %738 = vmatprep.subr.bf16.mxu1 %v737_v43  ;;  %v209_v1 = vld [vmem:[%s1165_s1 + $0x50] sm:$0xff]  ;;  %v210_v2 = vld [vmem:[%s1165_s1 + $0x58] sm:$0xff]  ;;  %v745_v4 = vpack.c.bf16 %v258_v61, %v257_v60  ;;  %v228_v7 = vld [vmem:[%s1165_s1 + $0xe8] sm:$0xff] }
  0x15   : > { %708 = vmatpush3.bf16.msra.mxu0 %v707_v48  ;;  %v241_v3 = vld [vmem:[%s1165_s1 + $0x150] sm:$0xff]  ;;  %v242_v5 = vld [vmem:[%s1165_s1 + $0x158] sm:$0xff]  ;;  %v259_v8 = vld [vmem:[%s1165_s1 + $0x1e0] sm:$0xff]  ;;  %v715_v10 = vpack.c.bf16 %v210_v2, %v209_v1  ;;  %v717_v14 = vpack.c.bf16 %v228_v7, %v227_v6 }
  0x16   : > { %710 = vmatprep.subr.bf16.mxu0 %v709_v52  ;;  %v260_v9 = vld [vmem:[%s1165_s1 + $0x1e8] sm:$0xff]  ;;  %v211_v11 = vld [vmem:[%s1165_s1 + $0x60] sm:$0xff]  ;;  %v747_v13 = vpack.c.bf16 %v242_v5, %v241_v3  ;;  %v229_v20 = vld [vmem:[%s1165_s1 + $0xf0] sm:$0xff] }
  0x17   : > { %740 = vmatpush3.bf16.msra.mxu1 %v739_v51  ;;  %v196_v12 = vld [vmem:[%s999_s19] sm:$0xff]  ;;  %v212_v15 = vld [vmem:[%s1165_s1 + $0x68] sm:$0xff]  ;;  %v749_v19 = vpack.c.bf16 %v260_v9, %v259_v8  ;;  %v230_v21 = vld [vmem:[%s1165_s1 + $0xf8] sm:$0xff] }
  0x18   : > { %742 = vmatprep.subr.bf16.mxu1 %v741_v56  ;;  %v243_v16 = vld [vmem:[%s1165_s1 + $0x160] sm:$0xff]  ;;  %v244_v17 = vld [vmem:[%s1165_s1 + $0x168] sm:$0xff]  ;;  %v305_v18 = vcombine.high %v196_v12, %v196_v12  ;;  %v261_v23 = vld [vmem:[%s1165_s1 + $0x1f0] sm:$0xff]  ;;  %v719_v26 = vpack.c.bf16 %v212_v15, %v211_v11  ;;  %v721_v28 = vpack.c.bf16 %v230_v21, %v229_v20 }
  0x19   : > { %712 = vmatpush3.bf16.msra.mxu0 %v711_v62  ;;  %v197_v22 = vld [vmem:[%s999_s19 + $0x8] sm:$0xff]  ;;  %v262_v24 = vld [vmem:[%s1165_s1 + $0x1f8] sm:$0xff]  ;;  %v751_v27 = vpack.c.bf16 %v244_v17, %v243_v16  ;;  %v213_v29 = vld [vmem:[%s1165_s1 + $0x70] sm:$0xff] }
  0x1a   : > { %714 = vmatprep.subr.bf16.mxu0 %v713_v0  ;;  %375 = vmatprep.mubr.f32.mxu0 %v305_v18  ;;  %v306_v25 = vcombine.high %v197_v22, %v197_v22  ;;  %v214_v30 = vld [vmem:[%s1165_s1 + $0x78] sm:$0xff]  ;;  %v245_v31 = vld [vmem:[%s1165_s1 + $0x170] sm:$0xff]  ;;  %v753_v32 = vpack.c.bf16 %v262_v24, %v261_v23  ;;  %v279_v34 = vld [vmem:[%s1165_s1 + $0x280] sm:$0xff] }
  0x1b   : > { %744 = vmatpush3.bf16.msra.mxu1 %v743_v63  ;;  %v246_v33 = vld [vmem:[%s1165_s1 + $0x178] sm:$0xff]  ;;  %v280_v35 = vld [vmem:[%s1165_s1 + $0x288] sm:$0xff]  ;;  %v723_v36 = vpack.c.bf16 %v214_v30, %v213_v29  ;;  %v263_v39 = vld [vmem:[%s1165_s1 + $0x200] sm:$0xff] }
  0x1c   : > { %746 = vmatprep.subr.bf16.mxu1 %v745_v4  ;;  %445 = vmatprep.mubr.f32.mxu1 %v306_v25  ;;  %v755_v37 = vpack.c.bf16 %v246_v33, %v245_v31  ;;  %v757_v38 = vpack.c.bf16 %v280_v35, %v279_v34  ;;  %v264_v40 = vld [vmem:[%s1165_s1 + $0x208] sm:$0xff]  ;;  %v281_v41 = vld [vmem:[%s1165_s1 + $0x290] sm:$0xff]  ;;  %v282_v42 = vld [vmem:[%s1165_s1 + $0x298] sm:$0xff] }
  0x1d   : > { %716 = vmatpush3.bf16.msra.mxu0 %v715_v10  ;;  %v759_v43 = vpack.c.bf16 %v264_v40, %v263_v39  ;;  %v198_v44 = vld [vmem:[%s999_s19 + $0x10] sm:$0xff]  ;;  %v761_v45 = vpack.c.bf16 %v282_v42, %v281_v41  ;;  %v266_v47 = vld [vmem:[%s1165_s1 + $0x218] sm:$0xff]  ;;  %v283_v49 = vld [vmem:[%s1165_s1 + $0x2a0] sm:$0xff] }
  0x1e   : > { %718 = vmatprep.subr.bf16.mxu0 %v717_v14  ;;  %v265_v46 = vld [vmem:[%s1165_s1 + $0x210] sm:$0xff]  ;;  %v307_v48 = vcombine.high %v198_v44, %v198_v44  ;;  %v284_v50 = vld [vmem:[%s1165_s1 + $0x2a8] sm:$0xff]  ;;  %v267_v53 = vld [vmem:[%s1165_s1 + $0x220] sm:$0xff] }
  0x1f   : > { %748 = vmatpush3.bf16.msra.mxu1 %v747_v13  ;;  %v763_v51 = vpack.c.bf16 %v266_v47, %v265_v46  ;;  %v765_v52 = vpack.c.bf16 %v284_v50, %v283_v49  ;;  %v268_v54 = vld [vmem:[%s1165_s1 + $0x228] sm:$0xff]  ;;  %v285_v55 = vld [vmem:[%s1165_s1 + $0x2b0] sm:$0xff]  ;;  %v286_v56 = vld [vmem:[%s1165_s1 + $0x2b8] sm:$0xff] }
  0x20   : > { %750 = vmatprep.subr.bf16.mxu1 %v749_v19  ;;  %v767_v57 = vpack.c.bf16 %v268_v54, %v267_v53  ;;  %v769_v58 = vpack.c.bf16 %v286_v56, %v285_v55  ;;  %v269_v59 = vld [vmem:[%s1165_s1 + $0x230] sm:$0xff]  ;;  %v270_v60 = vld [vmem:[%s1165_s1 + $0x238] sm:$0xff]  ;;  %v287_v61 = vld [vmem:[%s1165_s1 + $0x2c0] sm:$0xff] }
  0x21   : > { %720 = vmatpush3.bf16.msra.mxu0 %v719_v26  ;;  %v288_v62 = vld [vmem:[%s1165_s1 + $0x2c8] sm:$0xff]  ;;  %v771_v63 = vpack.c.bf16 %v270_v60, %v269_v59  ;;  %v271_v1 = vld [vmem:[%s1165_s1 + $0x240] sm:$0xff]  ;;  %v289_v3 = vld [vmem:[%s1165_s1 + $0x2d0] sm:$0xff] }
  0x22   : > { %722 = vmatprep.subr.bf16.mxu0 %v721_v28  ;;  %v773_v0 = vpack.c.bf16 %v288_v62, %v287_v61  ;;  %v272_v2 = vld [vmem:[%s1165_s1 + $0x248] sm:$0xff]  ;;  %v290_v4 = vld [vmem:[%s1165_s1 + $0x2d8] sm:$0xff]  ;;  %v273_v7 = vld [vmem:[%s1165_s1 + $0x250] sm:$0xff] }
  0x23   : > { %752 = vmatpush3.bf16.msra.mxu1 %v751_v27  ;;  %v775_v5 = vpack.c.bf16 %v272_v2, %v271_v1  ;;  %v777_v6 = vpack.c.bf16 %v290_v4, %v289_v3  ;;  %v274_v8 = vld [vmem:[%s1165_s1 + $0x258] sm:$0xff]  ;;  %v291_v9 = vld [vmem:[%s1165_s1 + $0x2e0] sm:$0xff]  ;;  %v292_v10 = vld [vmem:[%s1165_s1 + $0x2e8] sm:$0xff] }
  0x24   : > { %754 = vmatprep.subr.bf16.mxu1 %v753_v32  ;;  %v779_v11 = vpack.c.bf16 %v274_v8, %v273_v7  ;;  %v275_v13 = vld [vmem:[%s1165_s1 + $0x260] sm:$0xff]  ;;  %v276_v14 = vld [vmem:[%s1165_s1 + $0x268] sm:$0xff]  ;;  %v293_v15 = vld [vmem:[%s1165_s1 + $0x2f0] sm:$0xff] }
  0x25   : > { %724 = vmatpush3.bf16.msra.mxu0 %v723_v36  ;;  %v294_v16 = vld [vmem:[%s1165_s1 + $0x2f8] sm:$0xff]  ;;  %v783_v17 = vpack.c.bf16 %v276_v14, %v275_v13  ;;  %v277_v19 = vld [vmem:[%s1165_s1 + $0x270] sm:$0xff]  ;;  %v585_v23 = vld [vmem:[%s1166_s2] ss:$0 sm:$0xff] }
  0x26   : > { %758 = vmatprep.subr.bf16.mxu0 %v757_v38  ;;  %v785_v18 = vpack.c.bf16 %v294_v16, %v293_v15  ;;  %v278_v20 = vld [vmem:[%s1165_s1 + $0x278] sm:$0xff]  ;;  %v521_v34 = vld [vmem:[%s1167_s3] sm:$0xf] }
  0x27   : > { %756 = vmatpush3.bf16.msra.mxu1 %v755_v37  ;;  %v787_v21 = vpack.c.bf16 %v278_v20, %v277_v19 }
  0x28   : > { %376 = vmatmul.mubr.f32.vlgmr.msra.gmra.mrb[0].mxu0 %v196_v12  ;;  %v781_v12 = vpack.c.bf16 %v292_v10, %v291_v9 }
  0x29   : > { %760 = vmatpush3.bf16.msra.mxu0 %v759_v43  ;;  %515 = vmatprep.mubr.f32.mxu0 %v307_v48 }
  0x2a   : > { %446 = vmatmul.mubr.f32.vlgmr.msra.gmra.mrb[0].mxu1 %v197_v22  ;;  %762 = vmatprep.subr.bf16.mxu0 %v761_v45 }
  0x2d   : > { %764 = vmatpush3.bf16.msra.mxu0 %v763_v51 }
  0x2e   : > { %766 = vmatprep.subr.bf16.mxu0 %v765_v52 }
  0x31   : > { %768 = vmatpush3.bf16.msra.mxu0 %v767_v57 }
  0x32   : > { %770 = vmatprep.subr.bf16.mxu0 %v769_v58 }
  0x35   : > { %772 = vmatpush3.bf16.msra.mxu0 %v771_v63 }
  0x36   : > { %774 = vmatprep.subr.bf16.mxu0 %v773_v0 }
  0x39   : > { %776 = vmatpush3.bf16.msra.mxu0 %v775_v5 }
  0x3a   : > { %778 = vmatprep.subr.bf16.mxu0 %v777_v6 }
  0x3d   : > { %780 = vmatpush3.bf16.msra.mxu0 %v779_v11 }
  0x3e   : > { %782 = vmatprep.subr.bf16.mxu0 %v781_v12 }
  0x41   : > { %784 = vmatpush3.bf16.msra.mxu0 %v783_v17 }
  0x42   : > { %786 = vmatprep.subr.bf16.mxu0 %v785_v18 }
  0x45   : > { %788 = vmatpush3.bf16.msra.mxu0 %v787_v21 }
  0x48   : > { %516 = vmatmul.mubr.f32.vlgmr.msra.gmra.mrb[2].mxu0 %v198_v44 }
  0xfb   : > { %v620_v22 = vpop.f32.mrb[0].mxu0 }
  0xfc   : > { %v621_v24 = vpop.f32.mrb[1].mxu0 }
  0xfd   : > { %v655_v25 = vpop.f32.mrb[0].mxu1  ;;  %v622_v26 = vadd.f32 %v621_v24, %v620_v22 }
  0xfe   : > { %v656_v27 = vpop.f32.mrb[1].mxu1 }
  0xff   : > { %v657_v28 = vadd.f32 %v656_v27, %v655_v25  ;;  %v378_v29 = vadd.f32 %v622_v26, %v585_v23 }
 0x101   : > { %v448_v30 = vadd.f32 %v657_v28, %v378_v29 }
 0x11b   : > { %v690_v31 = vpop.f32.mrb[2].mxu0 }
 0x11c   : > { %v691_v32 = vpop.f32.mrb[3].mxu0 }
 0x11d   : > { %v692_v33 = vadd.f32 %v691_v32, %v690_v31 }
 0x11f   : > { %v518_v35 = vadd.f32 %v692_v33, %v448_v30 }
 0x121   : > { %v522_v36 = vadd.f32 %v521_v34, %v518_v35 }
 0x123   : > { %524 = vst.msk [vmem:[%s195_s5] sm:$0xf] %vm523_vm0, %v522_v36 }
 0x124 PF: > { %s14_s15 = sadd.s32 1, %s807_s15  }
 0x125   : > { %p11_p4 = scmp.ge.s32.totalorder %s14_s15, 4  }
 0x127   :  { %13 = sbr.rel (!%p11_p4) target bundleno = 1 (0x1), region = 66 }

// kernel: piip_forward.17
= control target key start
LH: loop header
LB: loop body
LE: loop exit
PB: predicated region body
PF: predicated region fallthrough
CT: control target
= control target key end

     0   :  { %s1621_s25 = smov 0   ;;  %s1946_s0 = inlined_call_operand.vmem [shape: f32[2,4,64], index: 0, kind: input, shape index: {}]   ;;  %s1947_s1 = inlined_call_operand.vmem [shape: f32[1,64], index: 1, kind: input, shape index: {}]   ;;  %s1948_s2 = inlined_call_operand.vmem [shape: f32[1,64], index: 2, kind: input, shape index: {}]   ;;  %s1949_s3 = inlined_call_operand.vmem [shape: f32[64,192], index: 3, kind: input, shape index: {}]   ;;  %s1950_s4 = inlined_call_operand.vmem [shape: f32[1,192], index: 4, kind: input, shape index: {}]   ;;  %s1951_s5 = inlined_call_operand.vmem [shape: f32[64,64], index: 5, kind: input, shape index: {}]   ;;  %s1952_s6 = inlined_call_operand.vmem [shape: f32[1,64], index: 6, kind: input, shape index: {}]   ;;  %s1953_s7 = inlined_call_operand.vmem [shape: f32[1,64], index: 7, kind: input, shape index: {}]   ;;  %s1954_s8 = inlined_call_operand.vmem [shape: f32[1,64], index: 8, kind: input, shape index: {}]   ;;  %s1955_s9 = inlined_call_operand.vmem [shape: f32[64,256], index: 9, kind: input, shape index: {}]   ;;  %s1956_s10 = inlined_call_operand.vmem [shape: f32[1,256], index: 10, kind: input, shape index: {}]   ;;  %s1957_s11 = inlined_call_operand.vmem [shape: f32[256,64], index: 11, kind: input, shape index: {}]   ;;  %s1958_s12 = inlined_call_operand.vmem [shape: f32[1,64], index: 12, kind: input, shape index: {}]   ;;  %s1959_s13 = inlined_call_operand.vmem [shape: f32[2,4,64], index: 13, kind: output, shape index: {}]  }
   0x1 LB: > { %s1314_s26 = sadd.s32 4294967295, %s1543_s25   ;;  %p1318_p0 = scmp.ge.s32.totalorder %s1543_s25, 1  ;;  %s1543_s25 = sphi %s1621_s25, %s23_s25  }
   0x2   : > { %p386_p1 = scmp.lt.s32.totalorder %s1543_s25, 3 }
   0x4   : > { %p387_p2 = pnand %p1318_p0, %p386_p1 }
   0x5   : > { %p428_p3 = scmp.lt.s32.totalorder (!%p387_p2), %s1314_s26, 1  ;;  %vm439_vm0 = vcmask (!%p387_p2), 519168   ;;  %v469_v7 = vld [vmem:[%s1949_s3 + $0x8] sm:$0xff] (!%p387_p2)  ;;  %v471_v8 = vld [vmem:[%s1949_s3 + $0x18] sm:$0xff] (!%p387_p2)  ;;  %v468_v10 = vld [vmem:[%s1949_s3] sm:$0xff] (!%p387_p2)  ;;  %v1545_v20 = vmov (!%p387_p2), 0.0   ;;  %v486_v41 = vlaneseq (!%p387_p2) }
   0x6   : > { %390 = sbr.rel (%p387_p2) target bundleno = 3040 (0xbe0), region = 72  ;;  %v1431_v9 = vpack.c.bf16 (!%p387_p2), %v471_v8, %v469_v7  ;;  %v470_v11 = vld [vmem:[%s1949_s3 + $0x10] sm:$0xff] (!%p387_p2)  ;;  %v473_v13 = vld [vmem:[%s1949_s3 + $0x28] sm:$0xff] (!%p387_p2)  ;;  %v475_v14 = vld [vmem:[%s1949_s3 + $0x38] sm:$0xff] (!%p387_p2)  ;;  %564 = vmatprep.mubr.f32.mxu1 (!%p387_p2), %v1545_v20  ;;  %vm496_vm1 = vcmask (!%p387_p2), 523264   ;;  %vm1546_vm2 = vmmov (!%p387_p2), 0  }
   0x7   : > { %v1433_v12 = vpack.c.bf16 (!%p387_p2), %v470_v11, %v468_v10  ;;  %v472_v15 = vld [vmem:[%s1949_s3 + $0x20] sm:$0xff] (!%p387_p2)  ;;  %v1435_v16 = vpack.c.bf16 (!%p387_p2), %v475_v14, %v473_v13  ;;  %v474_v17 = vld [vmem:[%s1949_s3 + $0x30] sm:$0xff] (!%p387_p2)  ;;  %v477_v18 = vld [vmem:[%s1949_s3 + $0x48] sm:$0xff] (!%p387_p2)  ;;  %v1700_v42 = vshrl.u32 (!%p387_p2), %v486_v41, 7  ;;  %1428 = vmatprep.mubr.msk.f32.mxu0 (!%p387_p2), %vm1546_vm2, %v1545_v20  ;;  %s1547_s24 = smov (!%p387_p2), 32   ;;  %s1548_s28 = smov (!%p387_p2), 64  }
   0x8   : > { %1432 = vmatprep.subr.bf16.mxu1 (!%p387_p2), %v1431_v9  ;;  %v479_v19 = vld [vmem:[%s1949_s3 + $0x58] sm:$0xff] (!%p387_p2)  ;;  %v1437_v21 = vpack.c.bf16 (!%p387_p2), %v474_v17, %v472_v15  ;;  %v476_v23 = vld [vmem:[%s1949_s3 + $0x40] sm:$0xff] (!%p387_p2)  ;;  %v478_v24 = vld [vmem:[%s1949_s3 + $0x50] sm:$0xff] (!%p387_p2)  ;;  %vm574_vm3 = vcmask (!%p387_p2), 261120   ;;  %vm666_vm4 = vcmask (!%p387_p2), 1043456   ;;  %vm650_vm5 = vcmask (!%p387_p2), 27648  }
   0x9   : > { %1434 = vmatpush1.bf16.msra.mxu1 (!%p387_p2), %v1433_v12  ;;  %v1439_v22 = vpack.c.bf16 (!%p387_p2), %v479_v19, %v477_v18  ;;  %v481_v25 = vld [vmem:[%s1949_s3 + $0x68] sm:$0xff] (!%p387_p2)  ;;  %v483_v26 = vld [vmem:[%s1949_s3 + $0x78] sm:$0xff] (!%p387_p2)  ;;  %v1441_v27 = vpack.c.bf16 (!%p387_p2), %v478_v24, %v476_v23  ;;  %v480_v29 = vld [vmem:[%s1949_s3 + $0x60] sm:$0xff] (!%p387_p2)  ;;  %v488_v43 = vsub.s32 (!%p387_p2), 0, %v1700_v42  ;;  %v492_v49 = vsub.s32 (!%p387_p2), 1, %v1700_v42  ;;  %s1549_s29 = smov (!%p387_p2), 96  }
   0xa   : > { %1436 = vmatprep.subr.bf16.mxu1 (!%p387_p2), %v1435_v16  ;;  %v1443_v28 = vpack.c.bf16 (!%p387_p2), %v483_v26, %v481_v25  ;;  %v482_v30 = vld [vmem:[%s1949_s3 + $0x70] sm:$0xff] (!%p387_p2)  ;;  %v1321_v36 = vld [vmem:[%s1947_s1] ss:$0 sm:$0xff] (!%p387_p2)  ;;  %vm662_vm6 = vcmask (!%p387_p2), 31744   ;;  %v1550_v23 = vmov (!%p387_p2), 0.0|0.0   ;;  %v915_v25 = vld [vmem:[%s1951_s5 + $0x18] sm:$0xff] (!%p387_p2) }
   0xb   : > { %v1445_v31 = vpack.c.bf16 (!%p387_p2), %v482_v30, %v480_v29  ;;  %v1322_v38 = vld [vmem:[%s1948_s2] ss:$0 sm:$0xff] (!%p387_p2)  ;;  %1447 = vmatprep.subr.bf16.mxu0 (!%p387_p2), %v1550_v23  ;;  %v918_v29 = vld [vmem:[%s1951_s5 + $0x30] sm:$0xff] (!%p387_p2)  ;;  %v919_v30 = vld [vmem:[%s1951_s5 + $0x38] sm:$0xff] (!%p387_p2) }
   0xc   : > { %v484_v44 = vld [vmem:[%s1950_s4] sm:$0x3] (!%p387_p2) }
   0xd   : > { %s1961_s26 = smov (!%p428_p3, %s1314_s26), 1  ;;  %1438 = vmatpush1.bf16.msra.mxu1 %v1437_v21  ;;  %v489_v45 = vrot.slane %v484_v44, %v488_v43  ;;  %v493_v50 = vrot.slane %v484_v44, %v492_v49  ;;  %v912_v19 = vld [vmem:[%s1951_s5] sm:$0xff]  ;;  %v913_v21 = vld [vmem:[%s1951_s5 + $0x8] sm:$0xff] }
   0xe   : > { %s1319_s27 = sshll.u32 %s1961_s26, 2  ;;  %1440 = vmatprep.subr.bf16.mxu1 %v1439_v22  ;;  %v914_v22 = vld [vmem:[%s1951_s5 + $0x10] sm:$0xff]  ;;  %v1448_v24 = vpack.c.bf16 %v913_v21, %v912_v19  ;;  %v916_v26 = vld [vmem:[%s1951_s5 + $0x20] sm:$0xff] }
   0xf   : > { %s431_s30 = scalar_lea.vmem %s1946_s0, %s1319_s27  ;;  %v1334_v21 = vld [vmem:[%s1953_s7] ss:$0 sm:$0xff] }
  0x10   : > { %v1637_v0 = vld [vmem:[%s431_s30] sm:$0xf]  ;;  %1449 = vmatpush3.bf16.msra.mxu0 %v1448_v24 }
  0x11   : > { %v440_v1 = vsel %vm439_vm0, %v1637_v0, 0.0  ;;  %1442 = vmatpush1.bf16.msra.mxu1 %v1441_v27  ;;  %1450 = vmatprep.subr.bf16.mxu0 %v1550_v23  ;;  %v917_v27 = vld [vmem:[%s1951_s5 + $0x28] sm:$0xff] }
  0x12   : > { %441 = vadd.xlane.f32.xlu0 %v440_v1  ;;  %1444 = vmatprep.subr.bf16.mxu1 %v1443_v28  ;;  %v1454_v28 = vpack.c.bf16 %v917_v27, %v916_v26  ;;  %v1169_v26 = vld [vmem:[%s1957_s11 + $0x98] sm:$0xff] }
  0x15   : > { %1446 = vmatpush1.bf16.msra.mxu1 %v1445_v31  ;;  %v1457_v31 = vpack.c.bf16 %v919_v30, %v918_v29  ;;  %v1153_v29 = vld [vmem:[%s1957_s11 + $0x18] sm:$0xff] }
  0x16   : > { %1392 = vmatprep.subr.mxu1 %v1545_v20 }
  0x9f   : > { %v442_v2 = vpop.xlane.xlu0 %441 }
  0xa0   : > { %v444_v3 = vmul.f32 0.015625, %v442_v2 }
  0xa2   : > { %v445_v4 = vsub.f32 %v1637_v0, %v444_v3 }
  0xa4   : > { %v446_v5 = vmul.f32 %v445_v4, %v445_v4 }
  0xa6   : > { %v447_v6 = vsel %vm439_vm0, %v446_v5, 0.0 }
  0xa7   : > { %448 = vadd.xlane.f32.xlu0 %v447_v6 }
 0x134   : > { %v449_v32 = vpop.xlane.xlu0 %448 }
 0x135   : > { %v450_v33 = vmul.f32 0.015625, %v449_v32 }
 0x137   : > { %v451_v34 = vadd.f32 1e-06, %v450_v33 }
 0x139   : > { %1521 = vrsqrt.f32 %v451_v34 }
 0x143   : > { %v1522_v35 = vpop.eup %1521 }
 0x144   : > { %v453_v37 = vmul.f32 %v1522_v35, %v445_v4 }
 0x146   : > { %v460_v39 = vmul.f32 %v1321_v36, %v453_v37  ;;  %v1332_v36 = vld [vmem:[%s1952_s6] ss:$0 sm:$0xff] }
 0x148   : > { %v467_v40 = vadd.f32 %v1322_v38, %v460_v39 }
 0x14a   : > { %1323 = vmatmul.mubr.msk.f32.vlgmr.msra.gmra.mrb[0].mxu1 %vm496_vm1, %v467_v40 }
 0x14b   : > { %1394 = vmatprep.mubr.msk.f32.mxu1 %vm1546_vm2, %v1545_v20 }
 0x21d   : > { %v566_v46 = vpop.f32.mrb[0].mxu1 }
 0x21e   : > { %v567_v47 = vadd.f32 %v566_v46, %v489_v45  ;;  %v568_v48 = vpop.f32.mrb[1].mxu1 }
 0x21f   : > { %v569_v52 = vadd.f32 %v568_v48, %v493_v50  ;;  %v1031_v50 = vld [vmem:[%s1955_s9 + $0x8] sm:$0xff] }
 0x220   : > { %742 = vrot.lane.b32.xlu0 %v567_v47, %s1547_s24  ;;  %572 = vrot.lane.b32.xlu1 %v567_v47, %s1548_s28 }
 0x292   : > { %v573_v51 = vpop.permute.xlu1 %572  ;;  %v743_v62 = vpop.permute.xlu0 %742 }
 0x293   : > { %1393 = vmatpush3.xpose.msk.msra.mxu1 %vm574_vm3, %v573_v51 }
 0x294   : > { %1397 = vmatprep.subr.mxu1 %v1545_v20 }
 0x296   : > { %1395 = vmatmul.mubr.msk.f32.vlgmr.msra.gmra.mrb[2].mxu1 %vm574_vm3, %v567_v47 }
 0x297   : > { %1398 = vmatpush3.msk.msra.mxu1 %vm666_vm4, %v569_v52  ;;  %1399 = vmatprep.mubr.msk.f32.mxu1 %vm1546_vm2, %v1545_v20 }
 0x298   : > { %1402 = vmatprep.subr.mxu1 %v1545_v20 }
 0x369   : > { %v645_v53 = vpop.f32.mrb[2].mxu1 }
 0x36a   : > { %v649_v54 = vmul.f32 0.17677669, %v645_v53  ;;  %v1396_v55 = vpop.f32.mrb[3].mxu1  ;;  %v1032_v53 = vld [vmem:[%s1955_s9 + $0x10] sm:$0xff] }
 0x36b   : > { %v1035_v55 = vld [vmem:[%s1955_s9 + $0x28] sm:$0xff] }
 0x36c   : > { %v651_v56 = vsel %vm650_vm5, %v649_v54, -inf }
 0x36d   : > { %652 = vmax.xlane.f32.xlu1 %v651_v56  ;;  %v1037_v56 = vld [vmem:[%s1955_s9 + $0x38] sm:$0xff] }
 0x3fa   : > { %v653_v57 = vpop.xlane.xlu1 %652 }
 0x3fb   : > { %v654_v58 = vsub.f32 %v649_v54, %v653_v57  ;;  %v1463_v57 = vpack.c.bf16 %v1037_v56, %v1035_v55  ;;  %v1160_v55 = vld [vmem:[%s1957_s11 + $0x50] sm:$0xff]  ;;  %v1161_v56 = vld [vmem:[%s1957_s11 + $0x58] sm:$0xff] }
 0x3fd   : > { %v655_v59 = vmul.f32 1.442695, %v654_v58  ;;  %v1034_v58 = vld [vmem:[%s1955_s9 + $0x20] sm:$0xff] }
 0x3ff   : > { %1523 = vpow2.f32 %v655_v59  ;;  %v1036_v59 = vld [vmem:[%s1955_s9 + $0x30] sm:$0xff] }
 0x409   : > { %v1524_v60 = vpop.eup %1523 }
 0x40a   : > { %v657_v61 = vsel %vm650_vm5, %v1524_v60, 0.0 }
 0x40b   : > { %658 = vadd.xlane.f32.xlu0 %v657_v61  ;;  %v1039_v61 = vld [vmem:[%s1955_s9 + $0x48] sm:$0xff] }
 0x421   : > { %740 = vrot.lane.b32.xlu0 %v567_v47, %s1549_s29 }
 0x498   : > { %v659_v63 = vpop.xlane.xlu0 %658 }
 0x499   : > { %1525 = vrcp.f32 %v659_v63 }
 0x49c   : > { %v741_v3 = vpop.permute.xlu0 %740 }
 0x4a3   : > { %v1526_v1 = vpop.eup %1525 }
 0x4a4   : > { %v661_v2 = vmul.f32 %v1526_v1, %v1524_v60  ;;  %v1465_v60 = vpack.c.bf16 %v1036_v59, %v1034_v58  ;;  %v1038_v1 = vld [vmem:[%s1955_s9 + $0x40] sm:$0xff]  ;;  %v1179_v58 = vld [vmem:[%s1957_s11 + $0xe8] sm:$0xff]  ;;  %v1497_v59 = vpack.c.bf16 %v1161_v56, %v1160_v55 }
 0x4a6   : > { %1400 = vmatmul.mubr.msk.f32.vlgmr.msra.gmra.mrb[4].mxu1 %vm662_vm6, %v661_v2  ;;  %v1040_v2 = vld [vmem:[%s1955_s9 + $0x50] sm:$0xff] }
 0x4a7   : > { %1403 = vmatpush3.xpose.msk.msra.mxu1 %vm574_vm3, %v743_v62  ;;  %1404 = vmatprep.mubr.msk.f32.mxu1 %vm1546_vm2, %v1545_v20  ;;  %v1041_v62 = vld [vmem:[%s1955_s9 + $0x58] sm:$0xff] }
 0x4a8   : > { %1407 = vmatprep.subr.mxu1 %v1545_v20  ;;  %v1467_v63 = vpack.c.bf16 %v1041_v62, %v1039_v61  ;;  %v1162_v61 = vld [vmem:[%s1957_s11 + $0x60] sm:$0xff]  ;;  %v1163_v62 = vld [vmem:[%s1957_s11 + $0x68] sm:$0xff] }
 0x4aa   : > { %1405 = vmatmul.mubr.msk.f32.vlgmr.msra.gmra.mrb[6].mxu1 %vm574_vm3, %v741_v3  ;;  %v1469_v3 = vpack.c.bf16 %v1040_v2, %v1038_v1  ;;  %v1181_v1 = vld [vmem:[%s1957_s11 + $0xf8] sm:$0xff]  ;;  %v1501_v2 = vpack.c.bf16 %v1163_v62, %v1162_v61 }
 0x4ab   : > { %1409 = vmatprep.mubr.msk.f32.mxu1 %vm1546_vm2, %v1545_v20 }
 0x579   : > { %v736_v4 = vpop.f32.mrb[4].mxu1 }
 0x57a   : > { %v1401_v5 = vpop.f32.mrb[5].mxu1 }
 0x57b   : > { %v1045_v5 = vld [vmem:[%s1955_s9 + $0x78] sm:$0xff] }
 0x57d   : > { %v814_v6 = vpop.f32.mrb[6].mxu1 }
 0x57e   : > { %v818_v7 = vmul.f32 0.17677669, %v814_v6  ;;  %v1406_v8 = vpop.f32.mrb[7].mxu1 }
 0x57f   : > { %v1044_v8 = vld [vmem:[%s1955_s9 + $0x70] sm:$0xff] }
 0x580   : > { %v819_v9 = vsel %vm650_vm5, %v818_v7, -inf }
 0x581   : > { %820 = vmax.xlane.f32.xlu0 %v819_v9 }
 0x60e   : > { %v821_v10 = vpop.xlane.xlu0 %820 }
 0x60f   : > { %v822_v11 = vsub.f32 %v818_v7, %v821_v10  ;;  %v1042_v7 = vld [vmem:[%s1955_s9 + $0x60] sm:$0xff] }
 0x610   : > { %v1473_v9 = vpack.c.bf16 %v1044_v8, %v1042_v7  ;;  %v1166_v10 = vld [vmem:[%s1957_s11 + $0x80] sm:$0xff] }
 0x611   : > { %v823_v12 = vmul.f32 1.442695, %v822_v11  ;;  %v1167_v11 = vld [vmem:[%s1957_s11 + $0x88] sm:$0xff]  ;;  %v1046_v7 = vld [vmem:[%s1956_s10] sm:$0x3] }
 0x612   : > { %v1051_v8 = vrot.slane %v1046_v7, %v488_v43 }
 0x613   : > { %1527 = vpow2.f32 %v823_v12  ;;  %v1150_v12 = vld [vmem:[%s1957_s11] sm:$0xff] }
 0x61d   : > { %v1528_v13 = vpop.eup %1527 }
 0x61e   : > { %v825_v14 = vsel %vm650_vm5, %v1528_v13, 0.0 }
 0x61f   : > { %826 = vadd.xlane.f32.xlu1 %v825_v14  ;;  %v1151_v14 = vld [vmem:[%s1957_s11 + $0x8] sm:$0xff] }
 0x630   : > { %830 = vrot.lane.b32.xlu1 %v569_v52, %s1549_s29  ;;  %v1030_v52 = vld [vmem:[%s1955_s9] sm:$0xff]  ;;  %s435_s29 = scalar_lea.vmem %s1959_s13, %s1319_s27 }
 0x631   : > { %v1461_v54 = vpack.c.bf16 %v1032_v53, %v1030_v52  ;;  %v1177_v52 = vld [vmem:[%s1957_s11 + $0xd8] sm:$0xff] }
 0x6ac   : > { %v827_v15 = vpop.xlane.xlu1 %826 }
 0x6ad   : > { %1529 = vrcp.f32 %v827_v15  ;;  %v1477_v15 = vpack.c.bf16 %v1151_v14, %v1150_v12 }
 0x6b0   : > { %v831_v16 = vpop.permute.xlu1 %830 }
 0x6b1   : > { %1408 = vmatpush3.msk.msra.mxu1 %vm666_vm4, %v831_v16 }
 0x6b7   : > { %v1530_v17 = vpop.eup %1529 }
 0x6b8   : > { %v829_v18 = vmul.f32 %v1530_v17, %v1528_v13  ;;  %v1475_v13 = vpack.c.bf16 %v1167_v11, %v1166_v10 }
 0x6ba   : > { %1410 = vmatmul.mubr.msk.f32.vlgmr.msra.gmra.mrb[8].mxu1 %vm662_vm6, %v829_v18 }
 0x6bb   : > { %1125 = vmatprep.mubr.f32.mxu1 %v1545_v20  ;;  %v1451_v20 = vpack.c.bf16 %v915_v25, %v914_v22 }
 0x6bd   : > { %1452 = vmatpush3.bf16.msra.mxu0 %v1451_v20  ;;  %v1168_v20 = vld [vmem:[%s1957_s11 + $0x90] sm:$0xff] }
 0x6be   : > { %1453 = vmatprep.subr.bf16.mxu0 %v1550_v23  ;;  %v1479_v27 = vpack.c.bf16 %v1169_v26, %v1168_v20 }
 0x6c1   : > { %1455 = vmatpush3.bf16.msra.mxu0 %v1454_v28  ;;  %v1152_v28 = vld [vmem:[%s1957_s11 + $0x10] sm:$0xff] }
 0x6c2   : > { %1456 = vmatprep.subr.bf16.mxu0 %v1550_v23  ;;  %v1335_v23 = vld [vmem:[%s1954_s8] ss:$0 sm:$0xff]  ;;  %v1481_v30 = vpack.c.bf16 %v1153_v29, %v1152_v28 }
 0x6c5   : > { %1458 = vmatpush3.bf16.msra.mxu0 %v1457_v31  ;;  %v1170_v31 = vld [vmem:[%s1957_s11 + $0xa0] sm:$0xff] }
 0x6c6   : > { %1476 = vmatprep.subr.bf16.mxu0 %v1475_v13 }
 0x78d   : > { %v903_v32 = vpop.f32.mrb[8].mxu1 }
 0x78e   : > { %908 = vrot.lane.b32.xlu1 %v903_v32, %s1547_s24  ;;  %v1411_v33 = vpop.f32.mrb[9].mxu1  ;;  %v1171_v32 = vld [vmem:[%s1957_s11 + $0xa8] sm:$0xff] }
 0x78f   : > { %v1483_v33 = vpack.c.bf16 %v1171_v32, %v1170_v31 }
 0x800   : > { %v909_v34 = vpop.permute.xlu1 %908 }
 0x801   : > { %v911_v35 = vsel %vm574_vm3, %v736_v4, %v909_v34  ;;  %v1043_v4 = vld [vmem:[%s1955_s9 + $0x68] sm:$0xff]  ;;  %v1154_v34 = vld [vmem:[%s1957_s11 + $0x20] sm:$0xff] }
 0x802   : > { %1429 = vmatmul.mubr.msk.f32.vlgmr.msra.gmra.mrb[0].mxu0 %vm496_vm1, %v911_v35  ;;  %v1471_v6 = vpack.c.bf16 %v1045_v5, %v1043_v4  ;;  %v1155_v35 = vld [vmem:[%s1957_s11 + $0x28] sm:$0xff]  ;;  %v1164_v4 = vld [vmem:[%s1957_s11 + $0x70] sm:$0xff]  ;;  %v1165_v5 = vld [vmem:[%s1957_s11 + $0x78] sm:$0xff] }
 0x803   : > { %1478 = vmatpush3.bf16.msra.mxu0 %v1477_v15 }
 0x804   : > { %1480 = vmatprep.subr.bf16.mxu0 %v1479_v27 }
 0x807   : > { %1482 = vmatpush3.bf16.msra.mxu0 %v1481_v30  ;;  %v1337_v30 = vld [vmem:[%s1958_s12] ss:$0 sm:$0xff] }
 0x808   : > { %1484 = vmatprep.subr.bf16.mxu0 %v1483_v33 }
 0x8d5   : > { %v996_v37 = vpop.f32.mrb[0].mxu0 }
 0x8d6   : > { %v997_v38 = vadd.f32 %v1332_v36, %v996_v37  ;;  %v1430_v39 = vpop.f32.mrb[1].mxu0  ;;  %v1485_v36 = vpack.c.bf16 %v1155_v35, %v1154_v34  ;;  %v1172_v37 = vld [vmem:[%s1957_s11 + $0xb0] sm:$0xff] }
 0x8d8   : > { %v1769_v40 = vadd.f32 %v997_v38, %v1637_v0  ;;  %v1033_v0 = vld [vmem:[%s1955_s9 + $0x18] sm:$0xff]  ;;  %1486 = vmatpush3.bf16.msra.mxu0 %v1485_v36 }
 0x8d9   : > { %v1459_v51 = vpack.c.bf16 %v1033_v0, %v1031_v50  ;;  %v1173_v38 = vld [vmem:[%s1957_s11 + $0xb8] sm:$0xff]  ;;  %v1159_v50 = vld [vmem:[%s1957_s11 + $0x48] sm:$0xff] }
 0x8da   : > { %v1003_v41 = vsel %vm439_vm0, %v1769_v40, 0.0  ;;  %v1487_v39 = vpack.c.bf16 %v1173_v38, %v1172_v37 }
 0x8db   : > { %1004 = vadd.xlane.f32.xlu1 %v1003_v41  ;;  %1460 = vmatprep.subr.bf16.mxu1 %v1459_v51  ;;  %v1156_v41 = vld [vmem:[%s1957_s11 + $0x30] sm:$0xff] }
 0x8dc   : > { %1462 = vmatpush1.bf16.msra.mxu1 %v1461_v54  ;;  %1488 = vmatprep.subr.bf16.mxu0 %v1487_v39  ;;  %v1176_v51 = vld [vmem:[%s1957_s11 + $0xd0] sm:$0xff] }
 0x8dd   : > { %1464 = vmatprep.subr.bf16.mxu1 %v1463_v57  ;;  %v1495_v54 = vpack.c.bf16 %v1177_v52, %v1176_v51  ;;  %v1178_v57 = vld [vmem:[%s1957_s11 + $0xe0] sm:$0xff] }
 0x8e0   : > { %1466 = vmatpush1.bf16.msra.mxu1 %v1465_v60  ;;  %v1499_v60 = vpack.c.bf16 %v1179_v58, %v1178_v57 }
 0x8e1   : > { %1468 = vmatprep.subr.bf16.mxu1 %v1467_v63  ;;  %v1180_v63 = vld [vmem:[%s1957_s11 + $0xf0] sm:$0xff] }
 0x8e4   : > { %1470 = vmatpush1.bf16.msra.mxu1 %v1469_v3  ;;  %v1503_v3 = vpack.c.bf16 %v1181_v1, %v1180_v63 }
 0x8e5   : > { %1472 = vmatprep.subr.bf16.mxu1 %v1471_v6  ;;  %v1505_v6 = vpack.c.bf16 %v1165_v5, %v1164_v4 }
 0x8e8   : > { %1474 = vmatpush1.bf16.msra.mxu1 %v1473_v9  ;;  %v1055_v9 = vrot.slane %v1046_v7, %v492_v49 }
 0x968   : > { %v1005_v44 = vpop.xlane.xlu1 %1004 }
 0x969   : > { %v1006_v45 = vmul.f32 0.015625, %v1005_v44  ;;  %v1157_v44 = vld [vmem:[%s1957_s11 + $0x38] sm:$0xff] }
 0x96b   : > { %v1007_v46 = vsub.f32 %v1769_v40, %v1006_v45  ;;  %v1174_v45 = vld [vmem:[%s1957_s11 + $0xc0] sm:$0xff] }
 0x96d   : > { %v1008_v47 = vmul.f32 %v1007_v46, %v1007_v46 }
 0x96f   : > { %v1009_v48 = vsel %vm439_vm0, %v1008_v47, 0.0  ;;  %v1175_v47 = vld [vmem:[%s1957_s11 + $0xc8] sm:$0xff] }
 0x970   : > { %1010 = vadd.xlane.f32.xlu0 %v1009_v48  ;;  %v1158_v48 = vld [vmem:[%s1957_s11 + $0x40] sm:$0xff]  ;;  %v1491_v0 = vpack.c.bf16 %v1175_v47, %v1174_v45 }
 0x971   : > { %v1493_v53 = vpack.c.bf16 %v1159_v50, %v1158_v48 }
 0x9fd   : > { %v1011_v16 = vpop.xlane.xlu0 %1010 }
 0x9fe   : > { %v1012_v17 = vmul.f32 0.015625, %v1011_v16 }
 0xa00   : > { %v1013_v18 = vadd.f32 1e-06, %v1012_v17 }
 0xa02   : > { %1531 = vrsqrt.f32 %v1013_v18 }
 0xa0c   : > { %v1532_v19 = vpop.eup %1531 }
 0xa0d   : > { %v1015_v22 = vmul.f32 %v1532_v19, %v1007_v46  ;;  %v1489_v46 = vpack.c.bf16 %v1157_v44, %v1156_v41 }
 0xa0f   : > { %v1022_v24 = vmul.f32 %v1334_v21, %v1015_v22  ;;  %1490 = vmatpush3.bf16.msra.mxu0 %v1489_v46 }
 0xa10   : > { %1492 = vmatprep.subr.bf16.mxu0 %v1491_v0 }
 0xa11   : > { %v1029_v25 = vadd.f32 %v1335_v23, %v1022_v24 }
 0xa13   : > { %1336 = vmatmul.mubr.msk.f32.vlgmr.msra.gmra.mrb[10].mxu1 %vm496_vm1, %v1029_v25  ;;  %1494 = vmatpush3.bf16.msra.mxu0 %v1493_v53 }
 0xa14   : > { %1496 = vmatprep.subr.bf16.mxu0 %v1495_v54 }
 0xa17   : > { %1498 = vmatpush3.bf16.msra.mxu0 %v1497_v59 }
 0xa18   : > { %1500 = vmatprep.subr.bf16.mxu0 %v1499_v60 }
 0xa1b   : > { %1502 = vmatpush3.bf16.msra.mxu0 %v1501_v2 }
 0xa1c   : > { %1504 = vmatprep.subr.bf16.mxu0 %v1503_v3 }
 0xa1f   : > { %1506 = vmatpush3.bf16.msra.mxu0 %v1505_v6 }
 0xae6   : > { %v1127_v10 = vpop.f32.mrb[10].mxu1 }
 0xae7   : > { %v1128_v11 = vadd.f32 %v1127_v10, %v1051_v8  ;;  %v1129_v12 = vpop.f32.mrb[11].mxu1 }
 0xae8   : > { %v1130_v13 = vadd.f32 %v1129_v12, %v1055_v9 }
 0xae9   : > { %v1134_v14 = vmul.f32 0.044715, %v1128_v11  ;;  %v1132_v26 = vmul.f32 0.5, %v1128_v11 }
 0xaea   : > { %v1135_v15 = vmul.f32 0.044715, %v1130_v13  ;;  %v1133_v25 = vmul.f32 0.5, %v1130_v13 }
 0xaeb   : > { %v1136_v16 = vmul.f32 %v1134_v14, %v1128_v11 }
 0xaec   : > { %v1137_v17 = vmul.f32 %v1135_v15, %v1130_v13 }
 0xaed   : > { %v1138_v18 = vmul.f32 %v1136_v16, %v1128_v11 }
 0xaee   : > { %v1139_v19 = vmul.f32 %v1137_v17, %v1130_v13 }
 0xaef   : > { %v1140_v21 = vadd.f32 %v1138_v18, %v1128_v11 }
 0xaf0   : > { %v1141_v22 = vadd.f32 %v1139_v19, %v1130_v13 }
 0xaf1   : > { %v1142_v23 = vmul.f32 0.7978846, %v1140_v21 }
 0xaf2   : > { %v1143_v24 = vmul.f32 0.7978846, %v1141_v22 }
 0xaf3   : > { %1533 = vtanh.f32 %v1142_v23 }
 0xaf4   : > { %1535 = vtanh.f32 %v1143_v24 }
 0xafd   : > { %v1534_v43 = vpop.eup %1533 }
 0xafe   : > { %v1536_v42 = vpop.eup %1535  ;;  %v1146_v49 = vadd.f32 1.0, %v1534_v43 }
 0xaff   : > { %v1147_v20 = vadd.f32 1.0, %v1536_v42 }
 0xb00   : > { %v1148_v28 = vmul.f32 %v1146_v49, %v1132_v26 }
 0xb01   : > { %v1149_v27 = vmul.f32 %v1147_v20, %v1133_v25 }
 0xb03   : > { %1253 = vmatprep.mubr.f32.mxu0 %v1149_v27 }
 0xb04   : > { %1254 = vmatmul.mubr.f32.vlgmr.msra.gmra.mrb[2].mxu0 %v1148_v28 }
 0xbd7   : > { %v1389_v29 = vpop.f32.mrb[2].mxu0 }
 0xbd8   : > { %v1390_v31 = vpop.f32.mrb[3].mxu0 }
 0xbd9   : > { %v1391_v32 = vadd.f32 %v1390_v31, %v1389_v29 }
 0xbdb   : > { %v1256_v33 = vadd.f32 %v1391_v32, %v1337_v30 }
 0xbdd   : > { %v1259_v34 = vadd.f32 %v1256_v33, %v1769_v40 }
 0xbdf   : > { %1260 = vst.msk [vmem:[%s435_s29] sm:$0xf] %vm439_vm0, %v1259_v34 }
 0xbe0 PF: > { %s23_s25 = sadd.s32 1, %s1543_s25  }
 0xbe1   : > { %p20_p4 = scmp.ge.s32.totalorder %s23_s25, 4  }
 0xbe3   :  { %22 = sbr.rel (!%p20_p4) target bundleno = 1 (0x1), region = 102 }

// kernel: piip_forward.16
= control target key start
LH: loop header
LB: loop body
LE: loop exit
PB: predicated region body
PF: predicated region fallthrough
CT: control target
= control target key end

     0   :  { %s880_s15 = smov 0   ;;  %s1222_s0 = inlined_call_operand.vmem [shape: f32[2,16,768], index: 0, kind: input, shape index: {}]   ;;  %s1223_s1 = inlined_call_operand.vmem [shape: f32[768,32], index: 1, kind: input, shape index: {}]   ;;  %s1224_s2 = inlined_call_operand.vmem [shape: f32[1,32], index: 2, kind: input, shape index: {}]   ;;  %s1225_s3 = inlined_call_operand.vmem [shape: f32[16,32], index: 3, kind: input, shape index: {}]   ;;  %s1226_s4 = inlined_call_operand.vmem [shape: f32[2,16,32], index: 4, kind: output, shape index: {}]  }
   0x1 LB: > { %s600_s16 = sadd.s32 4294967295, %s853_s15   ;;  %p604_p0 = scmp.ge.s32.totalorder %s853_s15, 1  ;;  %s853_s15 = sphi %s880_s15, %s14_s15  }
   0x2   : > { %p162_p1 = scmp.lt.s32.totalorder %s853_s15, 3 }
   0x4   : > { %p163_p2 = pnand %p604_p0, %p162_p1 }
   0x5   : > { %v226_v0 = vld [vmem:[%s1223_s1 + $0x80] sm:$0xff] (!%p163_p2)  ;;  %v227_v1 = vld [vmem:[%s1223_s1 + $0x88] sm:$0xff] (!%p163_p2)  ;;  %v228_v11 = vld [vmem:[%s1223_s1 + $0x90] sm:$0xff] (!%p163_p2)  ;;  %p953_p3 = scmp.lt.s32.totalorder (!%p163_p2), %s600_s16, 1  ;;  %vm542_vm0 = vcmask (!%p163_p2), 261120  }
   0x6   : > { %166 = sbr.rel (%p163_p2) target bundleno = 294 (0x126), region = 36  ;;  %v258_v2 = vld [vmem:[%s1223_s1 + $0x180] sm:$0xff] (!%p163_p2)  ;;  %v726_v3 = vpack.c.bf16 (!%p163_p2), %v227_v1, %v226_v0  ;;  %v259_v4 = vld [vmem:[%s1223_s1 + $0x188] sm:$0xff] (!%p163_p2)  ;;  %v229_v13 = vld [vmem:[%s1223_s1 + $0x98] sm:$0xff] (!%p163_p2) }
   0x7   : > { %v210_v5 = vld [vmem:[%s1223_s1] sm:$0xff] (!%p163_p2)  ;;  %v211_v6 = vld [vmem:[%s1223_s1 + $0x8] sm:$0xff] (!%p163_p2)  ;;  %v758_v7 = vpack.c.bf16 (!%p163_p2), %v259_v4, %v258_v2  ;;  %v260_v14 = vld [vmem:[%s1223_s1 + $0x190] sm:$0xff] (!%p163_p2)  ;;  %v730_v16 = vpack.c.bf16 (!%p163_p2), %v229_v13, %v228_v11 }
   0x8   : > { %v728_v8 = vpack.c.bf16 (!%p163_p2), %v211_v6, %v210_v5  ;;  %v242_v9 = vld [vmem:[%s1223_s1 + $0x100] sm:$0xff] (!%p163_p2)  ;;  %v243_v10 = vld [vmem:[%s1223_s1 + $0x108] sm:$0xff] (!%p163_p2)  ;;  %727 = vmatprep.subr.bf16.mxu0 (!%p163_p2), %v726_v3  ;;  %v261_v15 = vld [vmem:[%s1223_s1 + $0x198] sm:$0xff] (!%p163_p2) }
   0x9   : > { %v760_v12 = vpack.c.bf16 (!%p163_p2), %v243_v10, %v242_v9  ;;  %759 = vmatprep.subr.bf16.mxu1 (!%p163_p2), %v758_v7  ;;  %v762_v17 = vpack.c.bf16 (!%p163_p2), %v261_v15, %v260_v14  ;;  %v212_v18 = vld [vmem:[%s1223_s1 + $0x10] sm:$0xff] (!%p163_p2)  ;;  %v213_v19 = vld [vmem:[%s1223_s1 + $0x18] sm:$0xff] (!%p163_p2)  ;;  %v230_v23 = vld [vmem:[%s1223_s1 + $0xa0] sm:$0xff] (!%p163_p2) }
   0xa   : > { %729 = vmatpush3.bf16.msra.mxu0 (!%p163_p2), %v728_v8  ;;  %v244_v20 = vld [vmem:[%s1223_s1 + $0x110] sm:$0xff] (!%p163_p2)  ;;  %v732_v21 = vpack.c.bf16 (!%p163_p2), %v213_v19, %v212_v18  ;;  %v245_v22 = vld [vmem:[%s1223_s1 + $0x118] sm:$0xff] (!%p163_p2)  ;;  %v231_v24 = vld [vmem:[%s1223_s1 + $0xa8] sm:$0xff] (!%p163_p2) }
   0xb   : > { %761 = vmatpush3.bf16.msra.mxu1 (!%p163_p2), %v760_v12  ;;  %731 = vmatprep.subr.bf16.mxu0 (!%p163_p2), %v730_v16  ;;  %v764_v25 = vpack.c.bf16 (!%p163_p2), %v245_v22, %v244_v20  ;;  %v734_v26 = vpack.c.bf16 (!%p163_p2), %v231_v24, %v230_v23  ;;  %v262_v27 = vld [vmem:[%s1223_s1 + $0x1a0] sm:$0xff] (!%p163_p2)  ;;  %v263_v28 = vld [vmem:[%s1223_s1 + $0x1a8] sm:$0xff] (!%p163_p2)  ;;  %v232_v35 = vld [vmem:[%s1223_s1 + $0xb0] sm:$0xff] (!%p163_p2) }
   0xc   : > { %763 = vmatprep.subr.bf16.mxu1 (!%p163_p2), %v762_v17  ;;  %v214_v29 = vld [vmem:[%s1223_s1 + $0x20] sm:$0xff] (!%p163_p2)  ;;  %v766_v30 = vpack.c.bf16 (!%p163_p2), %v263_v28, %v262_v27  ;;  %v215_v31 = vld [vmem:[%s1223_s1 + $0x28] sm:$0xff] (!%p163_p2)  ;;  %v233_v36 = vld [vmem:[%s1223_s1 + $0xb8] sm:$0xff] (!%p163_p2) }
   0xd   : > { %v246_v32 = vld [vmem:[%s1223_s1 + $0x120] sm:$0xff]  ;;  %v247_v33 = vld [vmem:[%s1223_s1 + $0x128] sm:$0xff]  ;;  %v736_v34 = vpack.c.bf16 %v215_v31, %v214_v29  ;;  %v264_v37 = vld [vmem:[%s1223_s1 + $0x1b0] sm:$0xff]  ;;  %v738_v39 = vpack.c.bf16 %v233_v36, %v232_v35  ;;  %s1229_s16 = smov (!%p953_p3, %s600_s16), 1 }
   0xe   : > { %733 = vmatpush3.bf16.msra.mxu0 %v732_v21  ;;  %v768_v38 = vpack.c.bf16 %v247_v33, %v246_v32  ;;  %v265_v40 = vld [vmem:[%s1223_s1 + $0x1b8] sm:$0xff]  ;;  %v216_v41 = vld [vmem:[%s1223_s1 + $0x30] sm:$0xff]  ;;  %v234_v46 = vld [vmem:[%s1223_s1 + $0xc0] sm:$0xff]  ;;  %s838_s30 = smul.u32 96, %s1229_s16 }
   0xf   : > { %765 = vmatpush3.bf16.msra.mxu1 %v764_v25  ;;  %735 = vmatprep.subr.bf16.mxu0 %v734_v26  ;;  %v217_v42 = vld [vmem:[%s1223_s1 + $0x38] sm:$0xff]  ;;  %v770_v43 = vpack.c.bf16 %v265_v40, %v264_v37  ;;  %v248_v44 = vld [vmem:[%s1223_s1 + $0x130] sm:$0xff]  ;;  %v235_v47 = vld [vmem:[%s1223_s1 + $0xc8] sm:$0xff] }
  0x10   : > { %767 = vmatprep.subr.bf16.mxu1 %v766_v30  ;;  %v249_v45 = vld [vmem:[%s1223_s1 + $0x138] sm:$0xff]  ;;  %v266_v48 = vld [vmem:[%s1223_s1 + $0x1c0] sm:$0xff]  ;;  %v267_v49 = vld [vmem:[%s1223_s1 + $0x1c8] sm:$0xff]  ;;  %v740_v50 = vpack.c.bf16 %v217_v42, %v216_v41  ;;  %v742_v52 = vpack.c.bf16 %v235_v47, %v234_v46  ;;  %s1054_s25 = scalar_lea.vmem %s1222_s0, %s838_s30 }
  0x11   : > { %v772_v51 = vpack.c.bf16 %v249_v45, %v248_v44  ;;  %v218_v53 = vld [vmem:[%s1223_s1 + $0x40] sm:$0xff]  ;;  %v219_v54 = vld [vmem:[%s1223_s1 + $0x48] sm:$0xff]  ;;  %v774_v56 = vpack.c.bf16 %v267_v49, %v266_v48  ;;  %v236_v58 = vld [vmem:[%s1223_s1 + $0xd0] sm:$0xff] }
  0x12   : > { %737 = vmatpush3.bf16.msra.mxu0 %v736_v34  ;;  %v250_v55 = vld [vmem:[%s1223_s1 + $0x140] sm:$0xff]  ;;  %v251_v57 = vld [vmem:[%s1223_s1 + $0x148] sm:$0xff]  ;;  %v237_v59 = vld [vmem:[%s1223_s1 + $0xd8] sm:$0xff]  ;;  %v744_v62 = vpack.c.bf16 %v219_v54, %v218_v53 }
  0x13   : > { %769 = vmatpush3.bf16.msra.mxu1 %v768_v38  ;;  %739 = vmatprep.subr.bf16.mxu0 %v738_v39  ;;  %v268_v60 = vld [vmem:[%s1223_s1 + $0x1d0] sm:$0xff]  ;;  %v269_v61 = vld [vmem:[%s1223_s1 + $0x1d8] sm:$0xff]  ;;  %v776_v63 = vpack.c.bf16 %v251_v57, %v250_v55  ;;  %v746_v0 = vpack.c.bf16 %v237_v59, %v236_v58  ;;  %v238_v6 = vld [vmem:[%s1223_s1 + $0xe0] sm:$0xff] }
  0x14   : > { %771 = vmatprep.subr.bf16.mxu1 %v770_v43  ;;  %v220_v1 = vld [vmem:[%s1223_s1 + $0x50] sm:$0xff]  ;;  %v221_v2 = vld [vmem:[%s1223_s1 + $0x58] sm:$0xff]  ;;  %v778_v4 = vpack.c.bf16 %v269_v61, %v268_v60  ;;  %v239_v7 = vld [vmem:[%s1223_s1 + $0xe8] sm:$0xff] }
  0x15   : > { %v252_v3 = vld [vmem:[%s1223_s1 + $0x150] sm:$0xff]  ;;  %v253_v5 = vld [vmem:[%s1223_s1 + $0x158] sm:$0xff]  ;;  %v270_v8 = vld [vmem:[%s1223_s1 + $0x1e0] sm:$0xff]  ;;  %v748_v10 = vpack.c.bf16 %v221_v2, %v220_v1  ;;  %v750_v14 = vpack.c.bf16 %v239_v7, %v238_v6 }
  0x16   : > { %741 = vmatpush3.bf16.msra.mxu0 %v740_v50  ;;  %v271_v9 = vld [vmem:[%s1223_s1 + $0x1e8] sm:$0xff]  ;;  %v222_v11 = vld [vmem:[%s1223_s1 + $0x60] sm:$0xff]  ;;  %v780_v13 = vpack.c.bf16 %v253_v5, %v252_v3  ;;  %v201_v17 = vld [vmem:[%s1054_s25 + $0x18] sm:$0xff] }
  0x17   : > { %773 = vmatpush3.bf16.msra.mxu1 %v772_v51  ;;  %743 = vmatprep.subr.bf16.mxu0 %v742_v52  ;;  %v223_v12 = vld [vmem:[%s1223_s1 + $0x68] sm:$0xff]  ;;  %v254_v15 = vld [vmem:[%s1223_s1 + $0x160] sm:$0xff]  ;;  %v782_v18 = vpack.c.bf16 %v271_v9, %v270_v8  ;;  %v240_v20 = vld [vmem:[%s1223_s1 + $0xf0] sm:$0xff] }
  0x18   : > { %775 = vmatprep.subr.bf16.mxu1 %v774_v56  ;;  %v199_v16 = vld [vmem:[%s1054_s25 + $0x8] sm:$0xff]  ;;  %v241_v21 = vld [vmem:[%s1223_s1 + $0xf8] sm:$0xff]  ;;  %v272_v22 = vld [vmem:[%s1223_s1 + $0x1f0] sm:$0xff]  ;;  %452 = vmatprep.mubr.f32.mxu1 %v201_v17  ;;  %v752_v24 = vpack.c.bf16 %v223_v12, %v222_v11 }
  0x19   : > { %v255_v19 = vld [vmem:[%s1223_s1 + $0x168] sm:$0xff]  ;;  %377 = vmatprep.mubr.f32.mxu0 %v199_v16  ;;  %v273_v23 = vld [vmem:[%s1223_s1 + $0x1f8] sm:$0xff]  ;;  %v754_v26 = vpack.c.bf16 %v241_v21, %v240_v20  ;;  %v224_v27 = vld [vmem:[%s1223_s1 + $0x70] sm:$0xff] }
  0x1a   : > { %745 = vmatpush3.bf16.msra.mxu0 %v744_v62  ;;  %v784_v25 = vpack.c.bf16 %v255_v19, %v254_v15  ;;  %v225_v28 = vld [vmem:[%s1223_s1 + $0x78] sm:$0xff]  ;;  %v256_v29 = vld [vmem:[%s1223_s1 + $0x170] sm:$0xff]  ;;  %v786_v30 = vpack.c.bf16 %v273_v23, %v272_v22  ;;  %v290_v32 = vld [vmem:[%s1223_s1 + $0x280] sm:$0xff] }
  0x1b   : > { %777 = vmatpush3.bf16.msra.mxu1 %v776_v63  ;;  %747 = vmatprep.subr.bf16.mxu0 %v746_v0  ;;  %v257_v31 = vld [vmem:[%s1223_s1 + $0x178] sm:$0xff]  ;;  %v291_v33 = vld [vmem:[%s1223_s1 + $0x288] sm:$0xff]  ;;  %v756_v34 = vpack.c.bf16 %v225_v28, %v224_v27  ;;  %v274_v37 = vld [vmem:[%s1223_s1 + $0x200] sm:$0xff] }
  0x1c   : > { %779 = vmatprep.subr.bf16.mxu1 %v778_v4  ;;  %v788_v35 = vpack.c.bf16 %v257_v31, %v256_v29  ;;  %v790_v36 = vpack.c.bf16 %v291_v33, %v290_v32  ;;  %v275_v38 = vld [vmem:[%s1223_s1 + $0x208] sm:$0xff]  ;;  %v292_v39 = vld [vmem:[%s1223_s1 + $0x290] sm:$0xff]  ;;  %v293_v40 = vld [vmem:[%s1223_s1 + $0x298] sm:$0xff] }
  0x1d   : > { %v198_v41 = vld [vmem:[%s1054_s25] sm:$0xff]  ;;  %v792_v42 = vpack.c.bf16 %v275_v38, %v274_v37  ;;  %v200_v43 = vld [vmem:[%s1054_s25 + $0x10] sm:$0xff]  ;;  %v794_v44 = vpack.c.bf16 %v293_v40, %v292_v39  ;;  %v277_v46 = vld [vmem:[%s1223_s1 + $0x218] sm:$0xff] }
  0x1e   : > { %749 = vmatpush3.bf16.msra.mxu0 %v748_v10  ;;  %v276_v45 = vld [vmem:[%s1223_s1 + $0x210] sm:$0xff]  ;;  %v294_v47 = vld [vmem:[%s1223_s1 + $0x2a0] sm:$0xff]  ;;  %v295_v48 = vld [vmem:[%s1223_s1 + $0x2a8] sm:$0xff] }
  0x1f   : > { %781 = vmatpush3.bf16.msra.mxu1 %v780_v13  ;;  %751 = vmatprep.subr.bf16.mxu0 %v750_v14  ;;  %v205_v49 = vld [vmem:[%s1054_s25 + $0x38] sm:$0xff]  ;;  %v796_v50 = vpack.c.bf16 %v277_v46, %v276_v45  ;;  %v204_v51 = vld [vmem:[%s1054_s25 + $0x30] sm:$0xff]  ;;  %v207_v52 = vld [vmem:[%s1054_s25 + $0x48] sm:$0xff]  ;;  %v798_v53 = vpack.c.bf16 %v295_v48, %v294_v47 }
  0x20   : > { %783 = vmatprep.subr.bf16.mxu1 %v782_v18  ;;  %v278_v54 = vld [vmem:[%s1223_s1 + $0x220] sm:$0xff]  ;;  %v279_v55 = vld [vmem:[%s1223_s1 + $0x228] sm:$0xff]  ;;  %v296_v57 = vld [vmem:[%s1223_s1 + $0x2b0] sm:$0xff] }
  0x21   : > { %v206_v56 = vld [vmem:[%s1054_s25 + $0x40] sm:$0xff]  ;;  %v297_v58 = vld [vmem:[%s1223_s1 + $0x2b8] sm:$0xff]  ;;  %v203_v59 = vld [vmem:[%s1054_s25 + $0x28] sm:$0xff]  ;;  %v800_v60 = vpack.c.bf16 %v279_v55, %v278_v54 }
  0x22   : > { %753 = vmatpush3.bf16.msra.mxu0 %v752_v24  ;;  %v209_v61 = vld [vmem:[%s1054_s25 + $0x58] sm:$0xff]  ;;  %v802_v62 = vpack.c.bf16 %v297_v58, %v296_v57  ;;  %v280_v63 = vld [vmem:[%s1223_s1 + $0x230] sm:$0xff]  ;;  %v298_v1 = vld [vmem:[%s1223_s1 + $0x2c0] sm:$0xff] }
  0x23   : > { %785 = vmatpush3.bf16.msra.mxu1 %v784_v25  ;;  %755 = vmatprep.subr.bf16.mxu0 %v754_v26  ;;  %v281_v0 = vld [vmem:[%s1223_s1 + $0x238] sm:$0xff]  ;;  %v299_v2 = vld [vmem:[%s1223_s1 + $0x2c8] sm:$0xff]  ;;  %v282_v5 = vld [vmem:[%s1223_s1 + $0x240] sm:$0xff] }
  0x24   : > { %787 = vmatprep.subr.bf16.mxu1 %v786_v30  ;;  %v804_v3 = vpack.c.bf16 %v281_v0, %v280_v63  ;;  %v806_v4 = vpack.c.bf16 %v299_v2, %v298_v1  ;;  %v283_v6 = vld [vmem:[%s1223_s1 + $0x248] sm:$0xff]  ;;  %v300_v7 = vld [vmem:[%s1223_s1 + $0x2d0] sm:$0xff]  ;;  %v301_v8 = vld [vmem:[%s1223_s1 + $0x2d8] sm:$0xff] }
  0x25   : > { %v808_v9 = vpack.c.bf16 %v283_v6, %v282_v5  ;;  %v810_v10 = vpack.c.bf16 %v301_v8, %v300_v7  ;;  %v284_v11 = vld [vmem:[%s1223_s1 + $0x250] sm:$0xff]  ;;  %v285_v12 = vld [vmem:[%s1223_s1 + $0x258] sm:$0xff]  ;;  %v302_v13 = vld [vmem:[%s1223_s1 + $0x2e0] sm:$0xff] }
  0x26   : > { %757 = vmatpush3.bf16.msra.mxu0 %v756_v34  ;;  %v303_v14 = vld [vmem:[%s1223_s1 + $0x2e8] sm:$0xff]  ;;  %v812_v15 = vpack.c.bf16 %v285_v12, %v284_v11  ;;  %v286_v17 = vld [vmem:[%s1223_s1 + $0x260] sm:$0xff]  ;;  %v304_v19 = vld [vmem:[%s1223_s1 + $0x2f0] sm:$0xff] }
  0x27   : > { %789 = vmatpush3.bf16.msra.mxu1 %v788_v35  ;;  %791 = vmatprep.subr.bf16.mxu0 %v790_v36  ;;  %v814_v16 = vpack.c.bf16 %v303_v14, %v302_v13  ;;  %v287_v18 = vld [vmem:[%s1223_s1 + $0x268] sm:$0xff]  ;;  %v305_v20 = vld [vmem:[%s1223_s1 + $0x2f8] sm:$0xff]  ;;  %v288_v23 = vld [vmem:[%s1223_s1 + $0x270] sm:$0xff] }
  0x28   : > { %822 = vmatprep.subr.bf16.mxu1 %v790_v36  ;;  %v816_v21 = vpack.c.bf16 %v287_v18, %v286_v17  ;;  %v818_v22 = vpack.c.bf16 %v305_v20, %v304_v19  ;;  %v289_v24 = vld [vmem:[%s1223_s1 + $0x278] sm:$0xff]  ;;  %v202_v26 = vld [vmem:[%s1054_s25 + $0x20] sm:$0xff]  ;;  %v208_v27 = vld [vmem:[%s1054_s25 + $0x50] sm:$0xff]  ;;  %s611_s25 = sshll.u32 %s1229_s16, 4 }
  0x29   : > { %378 = vmatmul.mubr.f32.vlgmr.msra.gmra.mrb[0].mxu0 %v198_v41  ;;  %v820_v25 = vpack.c.bf16 %v289_v24, %v288_v23  ;;  %v608_v30 = vld [vmem:[%s1224_s2] ss:$0 sm:$0xff]  ;;  %s197_s30 = scalar_lea.vmem %s1226_s4, %s611_s25 }
  0x2a   : > { %453 = vmatmul.mubr.f32.vlgmr.msra.gmra.mrb[0].mxu1 %v200_v43  ;;  %793 = vmatpush3.bf16.msra.mxu0 %v792_v42 }
  0x2b   : > { %830 = vmatpush3.bf16.msra.mxu1 %v792_v42  ;;  %795 = vmatprep.subr.bf16.mxu0 %v794_v44 }
  0x2c   : > { %823 = vmatprep.subr.bf16.mxu1 %v794_v44  ;;  %382 = vmatprep.mubr.f32.mxu0 %v205_v49 }
  0x2d   : > { %383 = vmatmul.mubr.f32.gmra.mrb[2].mxu0 %v204_v51  ;;  %457 = vmatprep.mubr.f32.mxu1 %v207_v52 }
  0x2e   : > { %797 = vmatpush3.bf16.msra.mxu0 %v796_v50  ;;  %458 = vmatmul.mubr.f32.gmra.mrb[2].mxu1 %v206_v56 }
  0x2f   : > { %831 = vmatpush3.bf16.msra.mxu1 %v796_v50  ;;  %799 = vmatprep.subr.bf16.mxu0 %v798_v53  ;;  %v538_v50 = vld [vmem:[%s1225_s3] sm:$0xff] }
  0x30   : > { %824 = vmatprep.subr.bf16.mxu1 %v798_v53  ;;  %527 = vmatprep.mubr.f32.mxu0 %v203_v59  ;;  %v539_v53 = vld [vmem:[%s1225_s3 + $0x8] sm:$0xff] }
  0x31   : > { %532 = vmatprep.mubr.f32.mxu1 %v209_v61 }
  0x32   : > { %801 = vmatpush3.bf16.msra.mxu0 %v800_v60 }
  0x33   : > { %832 = vmatpush3.bf16.msra.mxu1 %v800_v60  ;;  %803 = vmatprep.subr.bf16.mxu0 %v802_v62 }
  0x34   : > { %825 = vmatprep.subr.bf16.mxu1 %v802_v62 }
  0x36   : > { %805 = vmatpush3.bf16.msra.mxu0 %v804_v3 }
  0x37   : > { %833 = vmatpush3.bf16.msra.mxu1 %v804_v3  ;;  %807 = vmatprep.subr.bf16.mxu0 %v806_v4 }
  0x38   : > { %826 = vmatprep.subr.bf16.mxu1 %v806_v4 }
  0x3a   : > { %809 = vmatpush3.bf16.msra.mxu0 %v808_v9 }
  0x3b   : > { %834 = vmatpush3.bf16.msra.mxu1 %v808_v9  ;;  %811 = vmatprep.subr.bf16.mxu0 %v810_v10 }
  0x3c   : > { %827 = vmatprep.subr.bf16.mxu1 %v810_v10 }
  0x3e   : > { %813 = vmatpush3.bf16.msra.mxu0 %v812_v15 }
  0x3f   : > { %835 = vmatpush3.bf16.msra.mxu1 %v812_v15  ;;  %815 = vmatprep.subr.bf16.mxu0 %v814_v16 }
  0x40   : > { %828 = vmatprep.subr.bf16.mxu1 %v814_v16 }
  0x42   : > { %817 = vmatpush3.bf16.msra.mxu0 %v816_v21 }
  0x43   : > { %836 = vmatpush3.bf16.msra.mxu1 %v816_v21  ;;  %819 = vmatprep.subr.bf16.mxu0 %v818_v22 }
  0x44   : > { %829 = vmatprep.subr.bf16.mxu1 %v818_v22 }
  0x46   : > { %821 = vmatpush3.bf16.msra.mxu0 %v820_v25 }
  0x47   : > { %837 = vmatpush3.bf16.msra.mxu1 %v820_v25 }
  0x49   : > { %528 = vmatmul.mubr.f32.vlgmr.msra.gmra.mrb[4].mxu0 %v202_v26 }
  0x4a   : > { %533 = vmatmul.mubr.f32.vlgmr.msra.gmra.mrb[4].mxu1 %v208_v27 }
  0xfc   : > { %v644_v28 = vpop.f32.mrb[0].mxu0 }
  0xfd   : > { %v682_v29 = vpop.f32.mrb[0].mxu1  ;;  %v645_v31 = vpop.f32.mrb[1].mxu0 }
  0xfe   : > { %v646_v32 = vadd.f32 %v645_v31, %v644_v28  ;;  %v683_v33 = vpop.f32.mrb[1].mxu1 }
  0xff   : > { %v684_v34 = vadd.f32 %v683_v33, %v682_v29 }
 0x100   : > { %v380_v35 = vadd.f32 %v646_v32, %v608_v30  ;;  %v647_v36 = vpop.f32.mrb[2].mxu0 }
 0x101   : > { %v648_v37 = vpop.f32.mrb[3].mxu0  ;;  %v685_v38 = vpop.f32.mrb[2].mxu1 }
 0x102   : > { %v455_v39 = vadd.f32 %v684_v34, %v380_v35  ;;  %v649_v40 = vadd.f32 %v648_v37, %v647_v36  ;;  %v686_v41 = vpop.f32.mrb[3].mxu1 }
 0x103   : > { %v687_v42 = vadd.f32 %v686_v41, %v685_v38 }
 0x104   : > { %v385_v43 = vadd.f32 %v649_v40, %v608_v30 }
 0x106   : > { %v460_v44 = vadd.f32 %v687_v42, %v385_v43 }
 0x11c   : > { %v720_v45 = vpop.f32.mrb[4].mxu0 }
 0x11d   : > { %v723_v46 = vpop.f32.mrb[4].mxu1  ;;  %v721_v47 = vpop.f32.mrb[5].mxu0 }
 0x11e   : > { %v722_v48 = vadd.f32 %v721_v47, %v720_v45  ;;  %v724_v49 = vpop.f32.mrb[5].mxu1 }
 0x11f   : > { %v725_v51 = vadd.f32 %v724_v49, %v723_v46 }
 0x120   : > { %v530_v52 = vadd.f32 %v722_v48, %v455_v39 }
 0x121   : > { %v535_v54 = vadd.f32 %v725_v51, %v460_v44 }
 0x122   : > { %v540_v55 = vadd.f32 %v538_v50, %v530_v52 }
 0x123   : > { %v541_v56 = vadd.f32 %v539_v53, %v535_v54 }
 0x124   : > { %543 = vst.msk [vmem:[%s197_s30] sm:$0xff] %vm542_vm0, %v540_v55 }
 0x125   : > { %544 = vst.msk [vmem:[%s197_s30 + $0x8] sm:$0xff] %vm542_vm0, %v541_v56 }
 0x126 PF: > { %s14_s15 = sadd.s32 1, %s853_s15  }
 0x127   : > { %p11_p4 = scmp.ge.s32.totalorder %s14_s15, 4  }
 0x129   :  { %13 = sbr.rel (!%p11_p4) target bundleno = 1 (0x1), region = 66 }

// kernel: piip_forward.20
= control target key start
LH: loop header
LB: loop body
LE: loop exit
PB: predicated region body
PF: predicated region fallthrough
CT: control target
= control target key end

     0   :  { %s1946_s24 = smov 0   ;;  %s2191_s0 = inlined_call_operand.vmem [shape: f32[2,4,64], index: 0, kind: input, shape index: {}]   ;;  %s2192_s1 = inlined_call_operand.vmem [shape: f32[2,16,32], index: 1, kind: input, shape index: {}]   ;;  %s2193_s2 = inlined_call_operand.vmem [shape: f32[32,64], index: 2, kind: input, shape index: {}]   ;;  %s2194_s3 = inlined_call_operand.vmem [shape: f32[1,64], index: 3, kind: input, shape index: {}]   ;;  %s2195_s4 = inlined_call_operand.vmem [shape: f32[1,64], index: 4, kind: input, shape index: {}]   ;;  %s2196_s5 = inlined_call_operand.vmem [shape: f32[1,64], index: 5, kind: input, shape index: {}]   ;;  %s2197_s6 = inlined_call_operand.vmem [shape: f32[1,64], index: 6, kind: input, shape index: {}]   ;;  %s2198_s7 = inlined_call_operand.vmem [shape: f32[1,64], index: 7, kind: input, shape index: {}]   ;;  %s2199_s8 = inlined_call_operand.vmem [shape: f32[64,64], index: 8, kind: input, shape index: {}]   ;;  %s2200_s9 = inlined_call_operand.vmem [shape: f32[1,64], index: 9, kind: input, shape index: {}]   ;;  %s2201_s10 = inlined_call_operand.vmem [shape: f32[64,64], index: 10, kind: input, shape index: {}]   ;;  %s2202_s11 = inlined_call_operand.vmem [shape: f32[1,64], index: 11, kind: input, shape index: {}]   ;;  %s2203_s12 = inlined_call_operand.vmem [shape: f32[64,64], index: 12, kind: input, shape index: {}]   ;;  %s2204_s13 = inlined_call_operand.vmem [shape: f32[1,64], index: 13, kind: input, shape index: {}]   ;;  %s2205_s14 = inlined_call_operand.vmem [shape: f32[64,64], index: 14, kind: input, shape index: {}]   ;;  %s2206_s15 = inlined_call_operand.vmem [shape: f32[1,64], index: 15, kind: input, shape index: {}]   ;;  %s2207_s16 = inlined_call_operand.vmem [shape: f32[1,64], index: 16, kind: input, shape index: {}]   ;;  %s2208_s17 = inlined_call_operand.vmem [shape: f32[2,4,64], index: 17, kind: output, shape index: {}]  }
   0x1   :  { %2209 = sst [smem:[#allocation2_spill]] %s2191_s0 }
   0x2   :  { %2210 = sst [smem:[#allocation3_spill]] %s2192_s1 }
   0x3 LB: > { %s1519_s25 = sadd.s32 4294967295, %s1849_s24   ;;  %p1523_p0 = scmp.ge.s32.totalorder %s1849_s24, 1  ;;  %s1849_s24 = sphi %s1946_s24, %s27_s24  }
   0x4   : > { %p496_p1 = scmp.lt.s32.totalorder %s1849_s24, 3 }
   0x6   : > { %p497_p2 = pnand %p1523_p0, %p496_p1 }
   0x7   : > { %v567_v0 = vld [vmem:[%s2193_s2] sm:$0xff] (!%p497_p2)  ;;  %v568_v1 = vld [vmem:[%s2193_s2 + $0x8] sm:$0xff] (!%p497_p2)  ;;  %v569_v2 = vld [vmem:[%s2193_s2 + $0x10] sm:$0xff] (!%p497_p2)  ;;  %p551_p3 = scmp.lt.s32.totalorder (!%p497_p2), %s1519_s25, 1  ;;  %vm578_vm0 = vcmask (!%p497_p2), 261120   ;;  %s2211_s22 = sld [smem:[#allocation3_spill]] (!%p497_p2) }
   0x8   : > { %500 = sbr.rel (%p497_p2) target bundleno = 1970 (0x7b2), region = 88  ;;  %v1728_v3 = vpack.c.bf16 (!%p497_p2), %v568_v1, %v567_v0  ;;  %v570_v4 = vld [vmem:[%s2193_s2 + $0x18] sm:$0xff] (!%p497_p2)  ;;  %s2212_s29 = sld [smem:[#allocation2_spill]] (!%p497_p2)  ;;  %vm662_vm1 = vcmask (!%p497_p2), 519168   ;;  %v1528_v10 = vld [vmem:[%s2194_s3] ss:$0 sm:$0xff] (!%p497_p2)  ;;  %vm2117_vm4 = vmpackc.low (!%p497_p2), %vm578_vm0, %vm578_vm0 }
   0x9   : > { %v1732_v5 = vpack.c.bf16 (!%p497_p2), %v570_v4, %v569_v2  ;;  %vm693_vm2 = vcmask (!%p497_p2), 523264   ;;  %v736_v32 = vld [vmem:[%s2199_s8] sm:$0xff] (!%p497_p2)  ;;  %v737_v33 = vld [vmem:[%s2199_s8 + $0x8] sm:$0xff] (!%p497_p2)  ;;  %v1851_v37 = vmov (!%p497_p2), 0.0|0.0   ;;  %v738_v39 = vld [vmem:[%s2199_s8 + $0x10] sm:$0xff] (!%p497_p2)  ;;  %vm1852_vm3 = vmmov (!%p497_p2), 0  }
   0xa   : > { %1729 = vmatprep.subr.bf16.mxu1 (!%p497_p2), %v1728_v3  ;;  %v824_v34 = vld [vmem:[%s2201_s10] sm:$0xff] (!%p497_p2)  ;;  %v1737_v35 = vpack.c.bf16 (!%p497_p2), %v737_v33, %v736_v32  ;;  %v825_v36 = vld [vmem:[%s2201_s10 + $0x8] sm:$0xff] (!%p497_p2)  ;;  %v739_v40 = vld [vmem:[%s2199_s8 + $0x18] sm:$0xff] (!%p497_p2)  ;;  %v1853_v60 = vmov (!%p497_p2), 0.0   ;;  %s1854_s19 = smov (!%p497_p2), 96   ;;  %vm1090_vm5 = vcmask (!%p497_p2), 125952  }
   0xb   : > { %1731 = vmatpush3.bf16.msra.mxu1 (!%p497_p2), %v1728_v3  ;;  %v1748_v38 = vpack.c.bf16 (!%p497_p2), %v825_v36, %v824_v34  ;;  %v826_v41 = vld [vmem:[%s2201_s10 + $0x10] sm:$0xff] (!%p497_p2)  ;;  %v1740_v42 = vpack.c.bf16 (!%p497_p2), %v739_v40, %v738_v39  ;;  %v827_v43 = vld [vmem:[%s2201_s10 + $0x18] sm:$0xff] (!%p497_p2)  ;;  %v740_v45 = vld [vmem:[%s2199_s8 + $0x20] sm:$0xff] (!%p497_p2)  ;;  %vm1102_vm6 = vcmask (!%p497_p2), 130048   ;;  %s1855_s28 = smov (!%p497_p2), 32  }
   0xc   : > { %1733 = vmatprep.subr.bf16.mxu1 (!%p497_p2), %v1732_v5  ;;  %v1752_v44 = vpack.c.bf16 (!%p497_p2), %v827_v43, %v826_v41  ;;  %v741_v46 = vld [vmem:[%s2199_s8 + $0x28] sm:$0xff] (!%p497_p2)  ;;  %v828_v47 = vld [vmem:[%s2201_s10 + $0x20] sm:$0xff] (!%p497_p2)  ;;  %v742_v51 = vld [vmem:[%s2199_s8 + $0x30] sm:$0xff] (!%p497_p2) }
   0xd   : > { %1749 = vmatprep.subr.bf16.mxu0 (!%p497_p2), %v1748_v38  ;;  %v1743_v48 = vpack.c.bf16 (!%p497_p2), %v741_v46, %v740_v45  ;;  %v829_v49 = vld [vmem:[%s2201_s10 + $0x28] sm:$0xff] (!%p497_p2)  ;;  %v743_v52 = vld [vmem:[%s2199_s8 + $0x38] sm:$0xff] (!%p497_p2)  ;;  %v830_v53 = vld [vmem:[%s2201_s10 + $0x30] sm:$0xff] (!%p497_p2) }
   0xe   : > { %1751 = vmatpush3.bf16.msra.mxu0 (!%p497_p2), %v1748_v38  ;;  %v1756_v50 = vpack.c.bf16 (!%p497_p2), %v829_v49, %v828_v47  ;;  %v1746_v54 = vpack.c.bf16 (!%p497_p2), %v743_v52, %v742_v51  ;;  %v831_v55 = vld [vmem:[%s2201_s10 + $0x38] sm:$0xff] (!%p497_p2)  ;;  %v920_v57 = vld [vmem:[%s2203_s12] sm:$0xff] (!%p497_p2)  ;;  %v921_v58 = vld [vmem:[%s2203_s12 + $0x8] sm:$0xff] (!%p497_p2) }
   0xf   : > { %s2216_s25 = smov (!%p551_p3, %s1519_s25), 1  ;;  %1735 = vmatpush3.bf16.msra.mxu1 %v1732_v5  ;;  %1753 = vmatprep.subr.bf16.mxu0 %v1752_v44  ;;  %v1760_v56 = vpack.c.bf16 %v831_v55, %v830_v53  ;;  %v1764_v59 = vpack.c.bf16 %v921_v58, %v920_v57  ;;  %v1537_v32 = vld [vmem:[%s2202_s11] ss:$0 sm:$0xff] }
  0x10   : > { %s1556_s1 = sshll.u32 %s2216_s25, 4  ;;  %s1524_s26 = sshll.u32 %s2216_s25, 2  ;;  %1736 = vmatprep.subr.bf16.mxu1 %v1851_v37  ;;  %v1535_v33 = vld [vmem:[%s2200_s9] ss:$0 sm:$0xff] }
  0x11   : > { %s559_s23 = scalar_lea.vmem %s2211_s22, %s1556_s1  ;;  %s554_s0 = scalar_lea.vmem %s2212_s29, %s1524_s26  ;;  %v1540_v45 = vld [vmem:[%s2204_s13] ss:$0 sm:$0xff] }
  0x12   : > { %v565_v6 = vld [vmem:[%s559_s23] sm:$0xff]  ;;  %v566_v7 = vld [vmem:[%s559_s23 + $0x8] sm:$0xff]  ;;  %1755 = vmatpush3.bf16.msra.mxu0 %v1752_v44  ;;  %s563_s20 = scalar_lea.vmem %s2208_s17, %s1524_s26 }
  0x13   : > { %1621 = vmatprep.mubr.msk.f32.mxu1 %vm578_vm0, %v565_v6  ;;  %v1980_v8 = vld [vmem:[%s554_s0] sm:$0xf]  ;;  %1757 = vmatprep.subr.bf16.mxu0 %v1756_v50 }
  0x14   : > { %1622 = vmatmul.mubr.msk.f32.vlgmr.msra.gmra.mrb[0].mxu1 %vm578_vm0, %v566_v7  ;;  %v663_v9 = vsel %vm662_vm1, %v1980_v8, 0.0  ;;  %v1533_v7 = vld [vmem:[%s2197_s6] ss:$0 sm:$0xff] }
  0x15   : > { %664 = vadd.xlane.f32.xlu1 %v663_v9  ;;  %1738 = vmatpush3.bf16.msra.mxu1 %v1737_v35 }
  0x16   : > { %1739 = vmatprep.subr.bf16.mxu1 %v1851_v37  ;;  %1759 = vmatpush3.bf16.msra.mxu0 %v1756_v50 }
  0x17   : > { %1761 = vmatprep.subr.bf16.mxu0 %v1760_v56  ;;  %1640 = vmatprep.mubr.msk.f32.mxu1 %vm1852_vm3, %v1853_v60 }
  0x19   : > { %1741 = vmatpush3.bf16.msra.mxu1 %v1740_v42 }
  0x1a   : > { %1742 = vmatprep.subr.bf16.mxu1 %v1851_v37  ;;  %1763 = vmatpush3.bf16.msra.mxu0 %v1760_v56 }
  0x1b   : > { %1780 = vmatprep.subr.bf16.mxu0 %v1851_v37 }
  0x1d   : > { %1744 = vmatpush3.bf16.msra.mxu1 %v1743_v48 }
  0x1e   : > { %1745 = vmatprep.subr.bf16.mxu1 %v1851_v37 }
  0x21   : > { %1747 = vmatpush3.bf16.msra.mxu1 %v1746_v54 }
  0x22   : > { %1765 = vmatprep.subr.bf16.mxu1 %v1764_v59 }
  0xa2   : > { %v665_v17 = vpop.xlane.xlu1 %664 }
  0xa3   : > { %v667_v18 = vmul.f32 0.015625, %v665_v17 }
  0xa5   : > { %v1990_v21 = vsub.f32 %v1980_v8, %v667_v18 }
  0xa7   : > { %v669_v26 = vmul.f32 %v1990_v21, %v1990_v21 }
  0xa9   : > { %v670_v30 = vsel %vm662_vm1, %v669_v26, 0.0 }
  0xe7   : > { %v1623_v11 = vpop.f32.mrb[0].mxu1 }
  0xe8   : > { %v651_v12 = vpop.f32.mrb[1].mxu1  ;;  %v657_v14 = vadd.f32 %v1623_v11, %v1528_v10 }
  0xe9   : > { %v652_v13 = vadd.f32 %v1528_v10, %v651_v12  ;;  %v1534_v10 = vld [vmem:[%s2198_s7] ss:$0 sm:$0xff] }
  0xea   : > { %v697_v16 = vsel %vm693_vm2, %v657_v14, 0.0 }
  0xeb   : > { %v694_v15 = vsel %vm693_vm2, %v652_v13, 0.0 }
  0xec   : > { %695 = vadd.xlane.f32.xlu0 %v694_v15 }
  0xf0   : > { %698 = vadd.xlane.f32.xlu0 %v697_v16  ;;  %v1531_v16 = vld [vmem:[%s2195_s4] ss:$0 sm:$0xff] }
 0x179   : > { %v696_v19 = vpop.xlane.xlu0 %695 }
 0x17a   : > { %v700_v20 = vmul.f32 0.015625, %v696_v19  ;;  %v1532_v19 = vld [vmem:[%s2196_s5] ss:$0 sm:$0xff] }
 0x17c   : > { %v1992_v22 = vsub.f32 %v652_v13, %v700_v20  ;;  %v922_v20 = vld [vmem:[%s2203_s12 + $0x10] sm:$0xff] }
 0x17d   : > { %v699_v23 = vpop.xlane.xlu0 %698 }
 0x17e   : > { %v701_v24 = vmul.f32 0.015625, %v699_v23  ;;  %v704_v25 = vmul.f32 %v1992_v22, %v1992_v22 }
 0x180   : > { %v1998_v27 = vsub.f32 %v657_v14, %v701_v24  ;;  %v706_v28 = vsel %vm693_vm2, %v704_v25, 0.0 }
 0x181   : > { %707 = vadd.xlane.f32.xlu1 %v706_v28 }
 0x182   : > { %v705_v29 = vmul.f32 %v1998_v27, %v1998_v27 }
 0x184   : > { %v709_v31 = vsel %vm693_vm2, %v705_v29, 0.0  ;;  %v926_v29 = vld [vmem:[%s2203_s12 + $0x30] sm:$0xff] }
 0x185   : > { %710 = vadd.xlane.f32.xlu0 %v709_v31  ;;  %671 = vadd.xlane.f32.xlu1 %v670_v30  ;;  %v927_v30 = vld [vmem:[%s2203_s12 + $0x38] sm:$0xff] }
 0x186   : > { %v1776_v31 = vpack.c.bf16 %v927_v30, %v926_v29  ;;  %v1361_v29 = vld [vmem:[%s2205_s14 + $0x28] sm:$0xff] }
 0x20e   : > { %v708_v61 = vpop.xlane.xlu1 %707 }
 0x20f   : > { %v712_v62 = vmul.f32 0.015625, %v708_v61 }
 0x211   : > { %v714_v63 = vadd.f32 1e-06, %v712_v62 }
 0x212   : > { %v711_v0 = vpop.xlane.xlu0 %710  ;;  %v672_v1 = vpop.xlane.xlu1 %671 }
 0x213   : > { %1829 = vrsqrt.f32 %v714_v63  ;;  %v713_v2 = vmul.f32 0.015625, %v711_v0  ;;  %v673_v3 = vmul.f32 0.015625, %v672_v1 }
 0x215   : > { %v715_v4 = vadd.f32 1e-06, %v713_v2  ;;  %v674_v5 = vadd.f32 1e-06, %v673_v3 }
 0x217   : > { %1831 = vrsqrt.f32 %v715_v4 }
 0x218   : > { %1833 = vrsqrt.f32 %v674_v5 }
 0x21d   : > { %v1830_v6 = vpop.eup %1829 }
 0x21e   : > { %v718_v9 = vmul.f32 %v1830_v6, %v1992_v22  ;;  %v923_v22 = vld [vmem:[%s2203_s12 + $0x18] sm:$0xff] }
 0x21f   : > { %v1768_v26 = vpack.c.bf16 %v923_v22, %v922_v20 }
 0x220   : > { %v726_v11 = vmul.f32 %v1533_v7, %v718_v9 }
 0x221   : > { %v1832_v12 = vpop.eup %1831 }
 0x222   : > { %v1834_v13 = vpop.eup %1833  ;;  %v719_v14 = vmul.f32 %v1832_v12, %v1998_v27  ;;  %v734_v15 = vadd.f32 %v1534_v10, %v726_v11  ;;  %v925_v27 = vld [vmem:[%s2203_s12 + $0x28] sm:$0xff] }
 0x223   : > { %v676_v17 = vmul.f32 %v1834_v13, %v1990_v21  ;;  %v924_v21 = vld [vmem:[%s2203_s12 + $0x20] sm:$0xff] }
 0x224   : > { %v727_v18 = vmul.f32 %v1533_v7, %v719_v14  ;;  %1659 = vmatprep.mubr.msk.f32.mxu0 %vm693_vm2, %v734_v15  ;;  %v1772_v28 = vpack.c.bf16 %v925_v27, %v924_v21  ;;  %v1359_v27 = vld [vmem:[%s2205_s14 + $0x18] sm:$0xff] }
 0x225   : > { %v683_v23 = vmul.f32 %v1531_v16, %v676_v17 }
 0x226   : > { %v735_v24 = vadd.f32 %v1534_v10, %v727_v18 }
 0x227   : > { %v690_v25 = vadd.f32 %v1532_v19, %v683_v23 }
 0x228   : > { %1660 = vmatmul.mubr.msk.f32.vlgmr.msra.gmra.mrb[0].mxu0 %vm693_vm2, %v735_v24 }
 0x229   : > { %1641 = vmatmul.mubr.msk.f32.vlgmr.msra.gmra.mrb[2].mxu1 %vm693_vm2, %v690_v25  ;;  %1685 = vmatprep.mubr.msk.f32.mxu0 %vm1852_vm3, %v1853_v60  ;;  %v1357_v25 = vld [vmem:[%s2205_s14 + $0x8] sm:$0xff] }
 0x22a   : > { %1767 = vmatpush3.bf16.msra.mxu1 %v1764_v59  ;;  %1678 = vmatprep.mubr.msk.f32.mxu1 %vm693_vm2, %v734_v15 }
 0x22b   : > { %1769 = vmatprep.subr.bf16.mxu1 %v1768_v26 }
 0x22e   : > { %1771 = vmatpush3.bf16.msra.mxu1 %v1768_v26  ;;  %v1358_v26 = vld [vmem:[%s2205_s14 + $0x10] sm:$0xff] }
 0x22f   : > { %1773 = vmatprep.subr.bf16.mxu1 %v1772_v28 }
 0x232   : > { %1775 = vmatpush3.bf16.msra.mxu1 %v1772_v28  ;;  %v1798_v28 = vpack.c.bf16 %v1359_v27, %v1358_v26 }
 0x233   : > { %1777 = vmatprep.subr.bf16.mxu1 %v1776_v31 }
 0x236   : > { %1779 = vmatpush3.bf16.msra.mxu1 %v1776_v31 }
 0x237   : > { %1787 = vmatprep.subr.bf16.mxu1 %v1851_v37 }
 0x239   : > { %1679 = vmatmul.mubr.msk.f32.vlgmr.msra.gmra.mrb[4].mxu1 %vm693_vm2, %v735_v24  ;;  %v1356_v24 = vld [vmem:[%s2205_s14] sm:$0xff] }
 0x23a   : > { %1699 = vmatprep.mubr.msk.f32.mxu1 %vm1852_vm3, %v1853_v60  ;;  %v1795_v21 = vpack.c.bf16 %v1357_v25, %v1356_v24 }
 0x2fb   : > { %v1661_v34 = vpop.f32.mrb[0].mxu0 }
 0x2fc   : > { %v820_v35 = vpop.f32.mrb[2].mxu1  ;;  %v917_v36 = vadd.f32 %v1661_v34, %v1537_v32  ;;  %v911_v38 = vpop.f32.mrb[1].mxu0 }
 0x2fd   : > { %v821_v39 = vadd.f32 %v1535_v33, %v820_v35  ;;  %v1642_v40 = vpop.f32.mrb[3].mxu1  ;;  %v912_v41 = vadd.f32 %v1537_v32, %v911_v38  ;;  %v1362_v32 = vld [vmem:[%s2205_s14 + $0x30] sm:$0xff]  ;;  %v1363_v33 = vld [vmem:[%s2205_s14 + $0x38] sm:$0xff] }
 0x2fe   : > { %v1804_v35 = vpack.c.bf16 %v1363_v33, %v1362_v32 }
 0x2ff   : > { %v1819_v43 = vpack.i.bf16 %v917_v36, %v912_v41  ;;  %v1781_v44 = vpack.c.bf16 %v917_v36, %v912_v41  ;;  %1176 = vrot.lane.b32.xlu1 %v821_v39, %s1854_s19  ;;  %v1551_v41 = vld [vmem:[%s2206_s15] ss:$0 sm:$0xff] }
 0x301   : > { %1820 = vrot.lane.b32.xlu0 %v1819_v43, %s1854_s19  ;;  %1783 = vmatpush3.bf16.xpose.msk.msra.mxu0 %vm2117_vm4, %v1781_v44  ;;  %v1553_v43 = vld [vmem:[%s2207_s16] ss:$0 sm:$0xff] }
 0x302   : > { %1784 = vmatprep.subr.bf16.mxu0 %v1851_v37 }
 0x308   : > { %1686 = vmatmul.mubr.msk.f32.vlgmr.msra.gmra.mrb[2].mxu0 %vm578_vm0, %v821_v39 }
 0x309   : > { %1692 = vmatprep.mubr.msk.f32.mxu0 %vm1852_vm3, %v1853_v60 }
 0x30c   : > { %v1680_v46 = vpop.f32.mrb[4].mxu1 }
 0x30d   : > { %v1007_v47 = vadd.f32 %v1680_v46, %v1540_v45  ;;  %v1001_v48 = vpop.f32.mrb[5].mxu1 }
 0x30e   : > { %v1002_v49 = vadd.f32 %v1540_v45, %v1001_v48 }
 0x310   : > { %v1824_v50 = vpack.i.bf16 %v1007_v47, %v1002_v49  ;;  %v1785_v51 = vpack.c.bf16 %v1007_v47, %v1002_v49 }
 0x312   : > { %1786 = vmatpush3.bf16.msra.mxu0 %v1785_v51 }
 0x313   : > { %1791 = vmatprep.subr.bf16.mxu0 %v1851_v37 }
 0x371   : > { %v1177_v56 = vpop.permute.xlu1 %1176 }
 0x373   : > { %v1821_v52 = vpop.permute.xlu0 %1820 }
 0x374   : > { %v1823_v53 = vunpack.i.h.bf16 %v1821_v52  ;;  %v1822_v54 = vunpack.i.l.bf16 %v1821_v52 }
 0x376   : > { %v1788_v55 = vpack.c.bf16 %v1823_v53, %v1822_v54 }
 0x378   : > { %1790 = vmatpush3.bf16.xpose.msk.msra.mxu1 %vm2117_vm4, %v1788_v55 }
 0x37f   : > { %1700 = vmatmul.mubr.msk.f32.vlgmr.msra.gmra.mrb[6].mxu1 %vm578_vm0, %v1177_v56 }
 0x3db   : > { %v1085_v57 = vpop.f32.mrb[2].mxu0 }
 0x3dc   : > { %v1089_v58 = vmul.f32 0.17677669, %v1085_v57  ;;  %v1687_v59 = vpop.f32.mrb[3].mxu0 }
 0x3de   : > { %v1091_v61 = vsel %vm1090_vm5, %v1089_v58, -inf }
 0x3df   : > { %1092 = vmax.xlane.f32.xlu1 %v1091_v61 }
 0x452   : > { %v1254_v62 = vpop.f32.mrb[6].mxu1 }
 0x453   : > { %v1258_v63 = vmul.f32 0.17677669, %v1254_v62  ;;  %v1701_v0 = vpop.f32.mrb[7].mxu1 }
 0x455   : > { %v1259_v1 = vsel %vm1090_vm5, %v1258_v63, -inf }
 0x456   : > { %1260 = vmax.xlane.f32.xlu0 %v1259_v1 }
 0x46c   : > { %v1093_v2 = vpop.xlane.xlu1 %1092 }
 0x46d   : > { %v1094_v3 = vsub.f32 %v1089_v58, %v1093_v2 }
 0x46f   : > { %v1095_v4 = vmul.f32 1.442695, %v1094_v3 }
 0x471   : > { %1835 = vpow2.f32 %v1095_v4 }
 0x47b   : > { %v1836_v5 = vpop.eup %1835 }
 0x47c   : > { %v1097_v6 = vsel %vm1090_vm5, %v1836_v5, 0.0 }
 0x47d   : > { %1098 = vadd.xlane.f32.xlu0 %v1097_v6 }
 0x493   : > { %1825 = vrot.lane.b32.xlu0 %v1824_v50, %s1854_s19 }
 0x4e3   : > { %v1261_v7 = vpop.xlane.xlu0 %1260 }
 0x4e4   : > { %v1262_v9 = vsub.f32 %v1258_v63, %v1261_v7 }
 0x4e6   : > { %v1263_v10 = vmul.f32 1.442695, %v1262_v9 }
 0x4e8   : > { %1837 = vpow2.f32 %v1263_v10 }
 0x4f2   : > { %v1838_v11 = vpop.eup %1837 }
 0x4f3   : > { %v1265_v12 = vsel %vm1090_vm5, %v1838_v11, 0.0 }
 0x4f4   : > { %1266 = vadd.xlane.f32.xlu1 %v1265_v12 }
 0x50a   : > { %v1099_v13 = vpop.xlane.xlu0 %1098 }
 0x50b   : > { %1839 = vrcp.f32 %v1099_v13 }
 0x50e   : > { %v1826_v14 = vpop.permute.xlu0 %1825 }
 0x50f   : > { %v1828_v15 = vunpack.i.h.bf16 %v1826_v14  ;;  %v1827_v16 = vunpack.i.l.bf16 %v1826_v14 }
 0x511   : > { %v1792_v19 = vpack.c.bf16 %v1828_v15, %v1827_v16 }
 0x515   : > { %v1840_v17 = vpop.eup %1839 }
 0x516   : > { %v1101_v18 = vmul.f32 %v1840_v17, %v1836_v5 }
 0x518   : > { %1693 = vmatmul.mubr.msk.f32.vlgmr.msra.gmra.mrb[4].mxu0 %vm1102_vm6, %v1101_v18 }
 0x519   : > { %1793 = vmatpush3.bf16.msra.mxu0 %v1792_v19  ;;  %1706 = vmatprep.mubr.msk.f32.mxu0 %vm1852_vm3, %v1853_v60 }
 0x51a   : > { %1794 = vmatprep.subr.bf16.mxu0 %v1851_v37 }
 0x581   : > { %v1267_v20 = vpop.xlane.xlu1 %1266 }
 0x582   : > { %1841 = vrcp.f32 %v1267_v20 }
 0x58c   : > { %v1842_v22 = vpop.eup %1841 }
 0x58d   : > { %v1269_v23 = vmul.f32 %v1842_v22, %v1838_v11 }
 0x58f   : > { %1707 = vmatmul.mubr.msk.f32.vlgmr.msra.gmra.mrb[6].mxu0 %vm1102_vm6, %v1269_v23 }
 0x590   : > { %1725 = vmatprep.mubr.msk.f32.mxu0 %vm1852_vm3, %v1853_v60  ;;  %1796 = vmatpush3.bf16.msra.mxu0 %v1795_v21  ;;  %v1360_v60 = vld [vmem:[%s2205_s14 + $0x20] sm:$0xff] }
 0x591   : > { %1797 = vmatprep.subr.bf16.mxu0 %v1851_v37  ;;  %v1801_v30 = vpack.c.bf16 %v1361_v29, %v1360_v60 }
 0x594   : > { %1799 = vmatpush3.bf16.msra.mxu0 %v1798_v28 }
 0x595   : > { %1800 = vmatprep.subr.bf16.mxu0 %v1851_v37 }
 0x598   : > { %1802 = vmatpush3.bf16.msra.mxu0 %v1801_v30 }
 0x599   : > { %1803 = vmatprep.subr.bf16.mxu0 %v1851_v37 }
 0x59c   : > { %1805 = vmatpush3.bf16.msra.mxu0 %v1804_v35 }
 0x5eb   : > { %v1172_v31 = vpop.f32.mrb[4].mxu0 }
 0x5ec   : > { %v1694_v34 = vpop.f32.mrb[5].mxu0 }
 0x662   : > { %v1347_v36 = vpop.f32.mrb[6].mxu0 }
 0x663   : > { %1352 = vrot.lane.b32.xlu1 %v1347_v36, %s1855_s28  ;;  %v1708_v38 = vpop.f32.mrb[7].mxu0 }
 0x6d5   : > { %v1353_v39 = vpop.permute.xlu1 %1352 }
 0x6d6   : > { %v1355_v40 = vsel %vm578_vm0, %v1172_v31, %v1353_v39 }
 0x6d7   : > { %1726 = vmatmul.mubr.msk.f32.vlgmr.msra.gmra.mrb[8].mxu0 %vm693_vm2, %v1355_v40 }
 0x7aa   : > { %v1440_v42 = vpop.f32.mrb[8].mxu0 }
 0x7ab   : > { %v1441_v37 = vadd.f32 %v1551_v41, %v1440_v42  ;;  %v1727_v44 = vpop.f32.mrb[9].mxu0 }
 0x7ad   : > { %v1451_v45 = vmul.f32 %v1553_v43, %v1441_v37 }
 0x7af   : > { %v1452_v46 = vadd.f32 %v1451_v45, %v1980_v8 }
 0x7b1   : > { %1453 = vst.msk [vmem:[%s563_s20] sm:$0xf] %vm662_vm1, %v1452_v46 }
 0x7b2 PF: > { %s27_s24 = sadd.s32 1, %s1849_s24  }
 0x7b3   : > { %p24_p4 = scmp.ge.s32.totalorder %s27_s24, 4  }
 0x7b5   :  { %26 = sbr.rel (!%p24_p4) target bundleno = 3 (0x3), region = 121 }

// kernel: piip_forward.19
= control target key start
LH: loop header
LB: loop body
LE: loop exit
PB: predicated region body
PF: predicated region fallthrough
CT: control target
= control target key end

     0   :  { %s1808_s25 = smov 0   ;;  %s2002_s0 = inlined_call_operand.vmem [shape: f32[2,16,32], index: 0, kind: input, shape index: {}]   ;;  %s2003_s1 = inlined_call_operand.vmem [shape: f32[1,32], index: 1, kind: input, shape index: {}]   ;;  %s2004_s2 = inlined_call_operand.vmem [shape: f32[1,32], index: 2, kind: input, shape index: {}]   ;;  %s2005_s3 = inlined_call_operand.vmem [shape: f32[32,96], index: 3, kind: input, shape index: {}]   ;;  %s2006_s4 = inlined_call_operand.vmem [shape: f32[1,96], index: 4, kind: input, shape index: {}]   ;;  %s2007_s5 = inlined_call_operand.vmem [shape: f32[32,32], index: 5, kind: input, shape index: {}]   ;;  %s2008_s6 = inlined_call_operand.vmem [shape: f32[1,32], index: 6, kind: input, shape index: {}]   ;;  %s2009_s7 = inlined_call_operand.vmem [shape: f32[1,32], index: 7, kind: input, shape index: {}]   ;;  %s2010_s8 = inlined_call_operand.vmem [shape: f32[1,32], index: 8, kind: input, shape index: {}]   ;;  %s2011_s9 = inlined_call_operand.vmem [shape: f32[32,128], index: 9, kind: input, shape index: {}]   ;;  %s2012_s10 = inlined_call_operand.vmem [shape: f32[1,128], index: 10, kind: input, shape index: {}]   ;;  %s2013_s11 = inlined_call_operand.vmem [shape: f32[128,32], index: 11, kind: input, shape index: {}]   ;;  %s2014_s12 = inlined_call_operand.vmem [shape: f32[1,32], index: 12, kind: input, shape index: {}]   ;;  %s2015_s13 = inlined_call_operand.vmem [shape: f32[2,16,32], index: 13, kind: output, shape index: {}]  }
   0x1 LB: > { %s1399_s26 = sadd.s32 4294967295, %s1730_s25   ;;  %p1403_p0 = scmp.ge.s32.totalorder %s1730_s25, 1  ;;  %s1730_s25 = sphi %s1808_s25, %s23_s25  }
   0x2   : > { %p387_p1 = scmp.lt.s32.totalorder %s1730_s25, 3 }
   0x4   : > { %p388_p2 = pnand %p1403_p0, %p387_p1 }
   0x5   : > { %p431_p3 = scmp.lt.s32.totalorder (!%p388_p2), %s1399_s26, 1  ;;  %vm445_vm0 = vcmask (!%p388_p2), 261120   ;;  %v489_v14 = vld [vmem:[%s2005_s3] sm:$0xff] (!%p388_p2)  ;;  %v490_v15 = vld [vmem:[%s2005_s3 + $0x8] sm:$0xff] (!%p388_p2)  ;;  %v491_v16 = vld [vmem:[%s2005_s3 + $0x10] sm:$0xff] (!%p388_p2)  ;;  %vm587_vm1 = vcmask (!%p388_p2), 130048  }
   0x6   : > { %391 = sbr.rel (%p388_p2) target bundleno = 2545 (0x9f1), region = 72  ;;  %v1586_v17 = vpack.c.bf16 (!%p388_p2), %v490_v15, %v489_v14  ;;  %v492_v18 = vld [vmem:[%s2005_s3 + $0x18] sm:$0xff] (!%p388_p2)  ;;  %v1408_v27 = vld [vmem:[%s2003_s1] ss:$0 sm:$0xff] (!%p388_p2)  ;;  %s1732_s14 = smov (!%p388_p2), 80   ;;  %vm1595_vm2 = vmpackc.low (!%p388_p2), %vm587_vm1, %vm587_vm1 }
   0x7   : > { %v1590_v19 = vpack.c.bf16 (!%p388_p2), %v492_v18, %v491_v16  ;;  %v1409_v29 = vld [vmem:[%s2004_s2] ss:$0 sm:$0xff] (!%p388_p2)  ;;  %s1733_s15 = smov (!%p388_p2), 96   ;;  %s1734_s16 = smov (!%p388_p2), 112  }
   0x8   : > { %1587 = vmatprep.subr.bf16.mxu1 (!%p388_p2), %v1586_v17  ;;  %v1410_v36 = vld [vmem:[%s2006_s4] ss:$0 sm:$0xff] (!%p388_p2)  ;;  %s1735_s17 = smov (!%p388_p2), 48   ;;  %s1736_s18 = smov (!%p388_p2), 64  }
   0x9   : > { %1589 = vmatpush3.bf16.msra.mxu1 (!%p388_p2), %v1586_v17 }
   0xa   : > { %1591 = vmatprep.subr.bf16.mxu1 (!%p388_p2), %v1590_v19 }
   0xd   : > { %s2017_s26 = smov (!%p431_p3, %s1399_s26), 1  ;;  %1593 = vmatpush3.bf16.msra.mxu1 %v1590_v19 }
   0xe   : > { %s1436_s27 = sshll.u32 %s2017_s26, 4 }
   0xf   : > { %s435_s30 = scalar_lea.vmem %s2002_s0, %s1436_s27  ;;  %s440_s24 = scalar_lea.vmem %s2015_s13, %s1436_s27 }
  0x10   : > { %v1824_v0 = vld [vmem:[%s435_s30] sm:$0xff]  ;;  %v1826_v1 = vld [vmem:[%s435_s30 + $0x8] sm:$0xff]  ;;  %s1737_s30 = smov 16  }
  0x11   : > { %v446_v2 = vsel %vm445_vm0, %v1824_v0, 0.0  ;;  %v449_v3 = vsel %vm445_vm0, %v1826_v1, 0.0 }
  0x12   : > { %447 = vadd.xlane.f32.xlu0 %v446_v2 }
  0x16   : > { %450 = vadd.xlane.f32.xlu0 %v449_v3 }
  0x9f   : > { %v448_v4 = vpop.xlane.xlu0 %447 }
  0xa0   : > { %v453_v5 = vmul.f32 0.03125, %v448_v4 }
  0xa2   : > { %v455_v6 = vsub.f32 %v1824_v0, %v453_v5 }
  0xa3   : > { %v451_v7 = vpop.xlane.xlu0 %450 }
  0xa4   : > { %v454_v8 = vmul.f32 0.03125, %v451_v7  ;;  %v457_v9 = vmul.f32 %v455_v6, %v455_v6 }
  0xa6   : > { %v456_v10 = vsub.f32 %v1826_v1, %v454_v8  ;;  %v459_v11 = vsel %vm445_vm0, %v457_v9, 0.0 }
  0xa7   : > { %460 = vadd.xlane.f32.xlu1 %v459_v11 }
  0xa8   : > { %v458_v12 = vmul.f32 %v456_v10, %v456_v10 }
  0xaa   : > { %v462_v13 = vsel %vm445_vm0, %v458_v12, 0.0 }
  0xab   : > { %463 = vadd.xlane.f32.xlu1 %v462_v13 }
 0x134   : > { %v461_v20 = vpop.xlane.xlu1 %460 }
 0x135   : > { %v465_v21 = vmul.f32 0.03125, %v461_v20 }
 0x137   : > { %v467_v22 = vadd.f32 1e-06, %v465_v21 }
 0x138   : > { %v464_v23 = vpop.xlane.xlu1 %463 }
 0x139   : > { %1696 = vrsqrt.f32 %v467_v22  ;;  %v466_v24 = vmul.f32 0.03125, %v464_v23 }
 0x13b   : > { %v468_v25 = vadd.f32 1e-06, %v466_v24 }
 0x13d   : > { %1698 = vrsqrt.f32 %v468_v25 }
 0x143   : > { %v1697_v26 = vpop.eup %1696 }
 0x144   : > { %v471_v28 = vmul.f32 %v1697_v26, %v455_v6 }
 0x146   : > { %v479_v30 = vmul.f32 %v1408_v27, %v471_v28 }
 0x147   : > { %v1699_v31 = vpop.eup %1698 }
 0x148   : > { %v472_v32 = vmul.f32 %v1699_v31, %v456_v10  ;;  %v487_v33 = vadd.f32 %v1409_v29, %v479_v30 }
 0x14a   : > { %v480_v34 = vmul.f32 %v1408_v27, %v472_v32  ;;  %1498 = vmatprep.mubr.msk.f32.mxu1 %vm445_vm0, %v487_v33 }
 0x14c   : > { %v488_v35 = vadd.f32 %v1409_v29, %v480_v34 }
 0x14e   : > { %1499 = vmatmul.mubr.msk.f32.vlgmr.msra.gmra.mrb[0].mxu1 %vm445_vm0, %v488_v35 }
 0x221   : > { %v1500_v37 = vpop.f32.mrb[0].mxu1 }
 0x222   : > { %v578_v38 = vadd.f32 %v1500_v37, %v1410_v36  ;;  %v572_v39 = vpop.f32.mrb[1].mxu1 }
 0x223   : > { %v573_v40 = vadd.f32 %v1410_v36, %v572_v39 }
 0x225   : > { %1505 = vmatprep.mubr.msk.f32.mxu1 %vm587_vm1, %v573_v40  ;;  %v1860_v41 = vpack.i.bf16 %v578_v38, %v573_v40 }
 0x227   : > { %1682 = vrot.lane.b32.xlu1 %v1860_v41, %s1732_s14  ;;  %1677 = vrot.lane.b32.xlu0 %v1860_v41, %s1733_s15 }
 0x22b   : > { %782 = vrot.lane.b32.xlu1 %v573_v40, %s1734_s16 }
 0x22f   : > { %784 = vrot.lane.b32.xlu1 %v578_v38, %s1734_s16 }
 0x299   : > { %v1683_v42 = vpop.permute.xlu1 %1682  ;;  %v1678_v43 = vpop.permute.xlu0 %1677 }
 0x29a   : > { %v1685_v44 = vunpack.i.h.bf16 %v1683_v42  ;;  %v1684_v45 = vunpack.i.l.bf16 %v1683_v42  ;;  %v1680_v46 = vunpack.i.h.bf16 %v1678_v43  ;;  %v1679_v47 = vunpack.i.l.bf16 %v1678_v43  ;;  %v994_v42 = vld [vmem:[%s2007_s5] sm:$0xff]  ;;  %v995_v43 = vld [vmem:[%s2007_s5 + $0x8] sm:$0xff] }
 0x29c   : > { %v1594_v48 = vpack.c.bf16 %v1680_v46, %v1679_v47  ;;  %v1604_v49 = vpack.c.bf16 %v1685_v44, %v1684_v45  ;;  %v1614_v44 = vpack.c.bf16 %v995_v43, %v994_v42  ;;  %v996_v45 = vld [vmem:[%s2007_s5 + $0x10] sm:$0xff]  ;;  %v997_v46 = vld [vmem:[%s2007_s5 + $0x18] sm:$0xff] }
 0x29d   : > { %v783_v50 = vpop.permute.xlu1 %782  ;;  %v1618_v47 = vpack.c.bf16 %v997_v46, %v996_v45  ;;  %v1248_v42 = vld [vmem:[%s2013_s11 + $0x30] sm:$0xff]  ;;  %v1249_v43 = vld [vmem:[%s2013_s11 + $0x38] sm:$0xff]  ;;  %v1250_v45 = vld [vmem:[%s2013_s11 + $0x40] sm:$0xff] }
 0x29e   : > { %1596 = vmatprep.subr.msk.bf16.mxu1 %vm1595_vm2, %v1594_v48  ;;  %v1251_v46 = vld [vmem:[%s2013_s11 + $0x48] sm:$0xff] }
 0x29f   : > { %1599 = vmatpush3.bf16.xpose.msk.msra.mxu1 %vm1595_vm2, %v1594_v48 }
 0x2a0   : > { %1606 = vmatprep.subr.msk.bf16.mxu1 %vm1595_vm2, %v1604_v49 }
 0x2a1   : > { %v785_v51 = vpop.permute.xlu1 %784 }
 0x2a6   : > { %1506 = vmatmul.mubr.msk.f32.vlgmr.msra.gmra.mrb[2].mxu1 %vm587_vm1, %v578_v38 }
 0x2a7   : > { %1609 = vmatpush3.bf16.xpose.msk.msra.mxu1 %vm1595_vm2, %v1604_v49  ;;  %1519 = vmatprep.mubr.msk.f32.mxu1 %vm587_vm1, %v783_v50 }
 0x2a8   : > { %1615 = vmatprep.subr.bf16.mxu1 %v1614_v44 }
 0x2ae   : > { %1520 = vmatmul.mubr.msk.f32.vlgmr.msra.gmra.mrb[4].mxu1 %vm587_vm1, %v785_v51 }
 0x2af   : > { %1617 = vmatpush3.bf16.msra.mxu1 %v1614_v44  ;;  %v1642_v44 = vpack.c.bf16 %v1249_v43, %v1248_v42 }
 0x2b0   : > { %1619 = vmatprep.subr.bf16.mxu1 %v1618_v47 }
 0x2b3   : > { %1621 = vmatpush3.bf16.msra.mxu1 %v1618_v47  ;;  %v1252_v47 = vld [vmem:[%s2013_s11 + $0x50] sm:$0xff] }
 0x379   : > { %v1507_v52 = vpop.f32.mrb[2].mxu1 }
 0x37a   : > { %v672_v53 = vmul.f32 0.25, %v1507_v52  ;;  %v662_v54 = vpop.f32.mrb[3].mxu1 }
 0x37b   : > { %v671_v55 = vmul.f32 0.25, %v662_v54 }
 0x37c   : > { %v676_v56 = vsel %vm587_vm1, %v672_v53, -inf }
 0x37d   : > { %677 = vmax.xlane.f32.xlu1 %v676_v56  ;;  %v673_v57 = vsel %vm587_vm1, %v671_v55, -inf  ;;  %v1425_v56 = vld [vmem:[%s2008_s6] ss:$0 sm:$0xff] }
 0x37e   : > { %674 = vmax.xlane.f32.xlu0 %v673_v57 }
 0x381   : > { %v1521_v58 = vpop.f32.mrb[4].mxu1 }
 0x382   : > { %v864_v59 = vpop.f32.mrb[5].mxu1  ;;  %v874_v61 = vmul.f32 0.25, %v1521_v58 }
 0x383   : > { %v873_v60 = vmul.f32 0.25, %v864_v59 }
 0x384   : > { %v878_v63 = vsel %vm587_vm1, %v874_v61, -inf }
 0x385   : > { %v875_v62 = vsel %vm587_vm1, %v873_v60, -inf }
 0x386   : > { %876 = vmax.xlane.f32.xlu0 %v875_v62 }
 0x38a   : > { %879 = vmax.xlane.f32.xlu0 %v878_v63 }
 0x40a   : > { %v678_v2 = vpop.xlane.xlu1 %677 }
 0x40b   : > { %v680_v3 = vsub.f32 %v672_v53, %v678_v2  ;;  %v675_v4 = vpop.xlane.xlu0 %674 }
 0x40c   : > { %v679_v5 = vsub.f32 %v671_v55, %v675_v4 }
 0x40d   : > { %v683_v6 = vmul.f32 1.442695, %v680_v3 }
 0x40e   : > { %v681_v7 = vmul.f32 1.442695, %v679_v5 }
 0x40f   : > { %1700 = vpow2.f32 %v683_v6 }
 0x410   : > { %1702 = vpow2.f32 %v681_v7 }
 0x413   : > { %v877_v8 = vpop.xlane.xlu0 %876 }
 0x414   : > { %v881_v9 = vsub.f32 %v873_v60, %v877_v8 }
 0x416   : > { %v883_v10 = vmul.f32 1.442695, %v881_v9 }
 0x417   : > { %v880_v11 = vpop.xlane.xlu0 %879 }
 0x418   : > { %1704 = vpow2.f32 %v883_v10  ;;  %v882_v12 = vsub.f32 %v874_v61, %v880_v11  ;;  %v1132_v11 = vld [vmem:[%s2011_s9] sm:$0xff] }
 0x419   : > { %v1701_v13 = vpop.eup %1700 }
 0x41a   : > { %v1703_v14 = vpop.eup %1702  ;;  %v885_v15 = vmul.f32 1.442695, %v882_v12  ;;  %v688_v16 = vsel %vm587_vm1, %v1701_v13, 0.0  ;;  %v1133_v12 = vld [vmem:[%s2011_s9 + $0x8] sm:$0xff] }
 0x41b   : > { %689 = vadd.xlane.f32.xlu1 %v688_v16  ;;  %v685_v17 = vsel %vm587_vm1, %v1703_v14, 0.0 }
 0x41c   : > { %1706 = vpow2.f32 %v885_v15  ;;  %686 = vadd.xlane.f32.xlu0 %v685_v17  ;;  %v1135_v15 = vld [vmem:[%s2011_s9 + $0x18] sm:$0xff]  ;;  %v1242_v17 = vld [vmem:[%s2013_s11] sm:$0xff] }
 0x422   : > { %v1705_v18 = vpop.eup %1704 }
 0x423   : > { %v887_v19 = vsel %vm587_vm1, %v1705_v18, 0.0 }
 0x424   : > { %888 = vadd.xlane.f32.xlu0 %v887_v19 }
 0x426   : > { %v1707_v20 = vpop.eup %1706 }
 0x427   : > { %v890_v21 = vsel %vm587_vm1, %v1707_v20, 0.0 }
 0x428   : > { %891 = vadd.xlane.f32.xlu1 %v890_v21 }
 0x439   : > { %1692 = vrot.lane.b32.xlu1 %v1860_v41, %s1735_s17 }
 0x43a   : > { %1687 = vrot.lane.b32.xlu0 %v1860_v41, %s1736_s18 }
 0x4a8   : > { %v690_v23 = vpop.xlane.xlu1 %689 }
 0x4a9   : > { %v687_v22 = vpop.xlane.xlu0 %686 }
 0x4aa   : > { %1708 = vrcp.f32 %v687_v22 }
 0x4ab   : > { %1710 = vrcp.f32 %v690_v23 }
 0x4b1   : > { %v889_v24 = vpop.xlane.xlu0 %888 }
 0x4b2   : > { %1712 = vrcp.f32 %v889_v24 }
 0x4b4   : > { %v1709_v25 = vpop.eup %1708 }
 0x4b5   : > { %v892_v26 = vpop.xlane.xlu1 %891  ;;  %v1688_v27 = vpop.permute.xlu0 %1687  ;;  %v693_v28 = vmul.f32 %v1709_v25, %v1703_v14  ;;  %v1134_v14 = vld [vmem:[%s2011_s9 + $0x10] sm:$0xff] }
 0x4b6   : > { %1714 = vrcp.f32 %v892_v26  ;;  %v1690_v29 = vunpack.i.h.bf16 %v1688_v27  ;;  %v1689_v30 = vunpack.i.l.bf16 %v1688_v27  ;;  %v1711_v32 = vpop.eup %1710  ;;  %v1626_v16 = vpack.c.bf16 %v1135_v15, %v1134_v14  ;;  %v1428_v27 = vld [vmem:[%s2009_s7] ss:$0 sm:$0xff] }
 0x4b7   : > { %1512 = vmatprep.mubr.msk.f32.mxu0 %vm587_vm1, %v693_v28  ;;  %v694_v38 = vmul.f32 %v1711_v32, %v1701_v13  ;;  %v1622_v13 = vpack.c.bf16 %v1133_v12, %v1132_v11 }
 0x4b8   : > { %v1600_v31 = vpack.c.bf16 %v1690_v29, %v1689_v30  ;;  %v1429_v29 = vld [vmem:[%s2010_s8] ss:$0 sm:$0xff] }
 0x4b9   : > { %v1693_v33 = vpop.permute.xlu1 %1692  ;;  %1623 = vmatprep.subr.bf16.mxu1 %v1622_v13 }
 0x4ba   : > { %v1695_v34 = vunpack.i.h.bf16 %v1693_v33  ;;  %v1694_v35 = vunpack.i.l.bf16 %v1693_v33  ;;  %1601 = vmatprep.subr.bf16.mxu0 %v1600_v31 }
 0x4bb   : > { %1603 = vmatpush3.bf16.msra.mxu0 %v1600_v31 }
 0x4bc   : > { %v1713_v36 = vpop.eup %1712  ;;  %v1610_v37 = vpack.c.bf16 %v1695_v34, %v1694_v35 }
 0x4bd   : > { %v895_v39 = vmul.f32 %v1713_v36, %v1705_v18  ;;  %v1243_v18 = vld [vmem:[%s2013_s11 + $0x8] sm:$0xff]  ;;  %v1244_v36 = vld [vmem:[%s2013_s11 + $0x10] sm:$0xff] }
 0x4be   : > { %1513 = vmatmul.mubr.msk.f32.vlgmr.msra.gmra.mrb[0].mxu0 %vm587_vm1, %v694_v38  ;;  %1611 = vmatprep.subr.bf16.mxu0 %v1610_v37  ;;  %v1630_v19 = vpack.c.bf16 %v1243_v18, %v1242_v17  ;;  %v1433_v18 = vld [vmem:[%s2014_s12] ss:$0 sm:$0xff] }
 0x4bf   : > { %1613 = vmatpush3.bf16.msra.mxu0 %v1610_v37  ;;  %1526 = vmatprep.mubr.msk.f32.mxu0 %vm587_vm1, %v895_v39  ;;  %v1245_v37 = vld [vmem:[%s2013_s11 + $0x18] sm:$0xff]  ;;  %v1246_v39 = vld [vmem:[%s2013_s11 + $0x20] sm:$0xff] }
 0x4c0   : > { %v1715_v40 = vpop.eup %1714  ;;  %1631 = vmatprep.subr.bf16.mxu0 %v1630_v19  ;;  %v1634_v38 = vpack.c.bf16 %v1245_v37, %v1244_v36 }
 0x4c1   : > { %v896_v41 = vmul.f32 %v1715_v40, %v1707_v20  ;;  %v1247_v40 = vld [vmem:[%s2013_s11 + $0x28] sm:$0xff] }
 0x4c3   : > { %1527 = vmatmul.mubr.msk.f32.vlgmr.msra.gmra.mrb[2].mxu0 %vm587_vm1, %v896_v41  ;;  %v1638_v41 = vpack.c.bf16 %v1247_v40, %v1246_v39 }
 0x4c4   : > { %1633 = vmatpush3.bf16.msra.mxu0 %v1630_v19 }
 0x4c5   : > { %1635 = vmatprep.subr.bf16.mxu0 %v1634_v38 }
 0x4c8   : > { %1637 = vmatpush3.bf16.msra.mxu0 %v1634_v38 }
 0x4c9   : > { %1639 = vmatprep.subr.bf16.mxu0 %v1638_v41 }
 0x4cc   : > { %1641 = vmatpush3.bf16.msra.mxu0 %v1638_v41 }
 0x4cd   : > { %1643 = vmatprep.subr.bf16.mxu0 %v1642_v44 }
 0x4d0   : > { %1645 = vmatpush3.bf16.msra.mxu0 %v1642_v44 }
 0x591   : > { %v1514_v48 = vpop.f32.mrb[0].mxu0 }
 0x592   : > { %v773_v49 = vpop.f32.mrb[1].mxu0 }
 0x596   : > { %v1528_v50 = vpop.f32.mrb[2].mxu0 }
 0x597   : > { %v975_v51 = vpop.f32.mrb[3].mxu0 }
 0x598   : > { %986 = vrot.lane.b32.xlu1 %v975_v51, %s1737_s30  ;;  %v1254_v51 = vld [vmem:[%s2013_s11 + $0x60] sm:$0xff] }
 0x59c   : > { %988 = vrot.lane.b32.xlu1 %v1528_v50, %s1737_s30 }
 0x60a   : > { %v987_v52 = vpop.permute.xlu1 %986 }
 0x60b   : > { %v992_v53 = vsel %vm587_vm1, %v773_v49, %v987_v52  ;;  %v1253_v49 = vld [vmem:[%s2013_s11 + $0x58] sm:$0xff]  ;;  %v1255_v52 = vld [vmem:[%s2013_s11 + $0x68] sm:$0xff] }
 0x60c   : > { %1537 = vmatprep.mubr.msk.f32.mxu1 %vm445_vm0, %v992_v53  ;;  %v1650_v50 = vpack.c.bf16 %v1253_v49, %v1252_v47  ;;  %v1654_v53 = vpack.c.bf16 %v1255_v52, %v1254_v51 }
 0x60e   : > { %v989_v54 = vpop.permute.xlu1 %988 }
 0x60f   : > { %v993_v55 = vsel %vm587_vm1, %v1514_v48, %v989_v54  ;;  %v1646_v48 = vpack.c.bf16 %v1251_v46, %v1250_v45  ;;  %v1256_v54 = vld [vmem:[%s2013_s11 + $0x70] sm:$0xff] }
 0x610   : > { %1538 = vmatmul.mubr.msk.f32.vlgmr.msra.gmra.mrb[6].mxu1 %vm445_vm0, %v993_v55  ;;  %v1257_v55 = vld [vmem:[%s2013_s11 + $0x78] sm:$0xff] }
 0x611   : > { %1625 = vmatpush3.bf16.msra.mxu1 %v1622_v13  ;;  %1647 = vmatprep.subr.bf16.mxu0 %v1646_v48 }
 0x612   : > { %1627 = vmatprep.subr.bf16.mxu1 %v1626_v16  ;;  %1649 = vmatpush3.bf16.msra.mxu0 %v1646_v48 }
 0x613   : > { %1651 = vmatprep.subr.bf16.mxu0 %v1650_v50 }
 0x615   : > { %1629 = vmatpush3.bf16.msra.mxu1 %v1626_v16 }
 0x616   : > { %1653 = vmatpush3.bf16.msra.mxu0 %v1650_v50 }
 0x617   : > { %1655 = vmatprep.subr.bf16.mxu0 %v1654_v53 }
 0x61a   : > { %1657 = vmatpush3.bf16.msra.mxu0 %v1654_v53 }
 0x6e3   : > { %v1539_v57 = vpop.f32.mrb[6].mxu1 }
 0x6e4   : > { %v1083_v58 = vadd.f32 %v1539_v57, %v1425_v56  ;;  %v1077_v59 = vpop.f32.mrb[7].mxu1  ;;  %v1430_v57 = vld [vmem:[%s2012_s10] ss:$0 sm:$0xff] }
 0x6e5   : > { %v1078_v60 = vadd.f32 %v1425_v56, %v1077_v59  ;;  %v1658_v56 = vpack.c.bf16 %v1257_v55, %v1256_v54 }
 0x6e6   : > { %v1903_v61 = vadd.f32 %v1083_v58, %v1826_v1 }
 0x6e7   : > { %v1906_v62 = vadd.f32 %v1078_v60, %v1824_v0  ;;  %1659 = vmatprep.subr.bf16.mxu0 %v1658_v56 }
 0x6e8   : > { %v1093_v63 = vsel %vm445_vm0, %v1903_v61, 0.0  ;;  %1661 = vmatpush3.bf16.msra.mxu0 %v1658_v56 }
 0x6e9   : > { %1094 = vadd.xlane.f32.xlu1 %v1093_v63  ;;  %v1090_v2 = vsel %vm445_vm0, %v1906_v62, 0.0 }
 0x6ea   : > { %1091 = vadd.xlane.f32.xlu0 %v1090_v2 }
 0x776   : > { %v1095_v3 = vpop.xlane.xlu1 %1094 }
 0x777   : > { %v1097_v4 = vmul.f32 0.03125, %v1095_v3  ;;  %v1092_v5 = vpop.xlane.xlu0 %1091 }
 0x778   : > { %v1096_v6 = vmul.f32 0.03125, %v1092_v5 }
 0x779   : > { %v1099_v7 = vsub.f32 %v1903_v61, %v1097_v4 }
 0x77a   : > { %v1098_v1 = vsub.f32 %v1906_v62, %v1096_v6 }
 0x77b   : > { %v1101_v9 = vmul.f32 %v1099_v7, %v1099_v7 }
 0x77c   : > { %v1100_v8 = vmul.f32 %v1098_v1, %v1098_v1 }
 0x77d   : > { %v1105_v10 = vsel %vm445_vm0, %v1101_v9, 0.0 }
 0x77e   : > { %v1102_v0 = vsel %vm445_vm0, %v1100_v8, 0.0 }
 0x77f   : > { %1103 = vadd.xlane.f32.xlu0 %v1102_v0 }
 0x783   : > { %1106 = vadd.xlane.f32.xlu0 %v1105_v10 }
 0x80c   : > { %v1104_v20 = vpop.xlane.xlu0 %1103 }
 0x80d   : > { %v1108_v21 = vmul.f32 0.03125, %v1104_v20 }
 0x80f   : > { %v1110_v22 = vadd.f32 1e-06, %v1108_v21 }
 0x810   : > { %v1107_v23 = vpop.xlane.xlu0 %1106 }
 0x811   : > { %1716 = vrsqrt.f32 %v1110_v22  ;;  %v1109_v24 = vmul.f32 0.03125, %v1107_v23 }
 0x813   : > { %v1111_v25 = vadd.f32 1e-06, %v1109_v24 }
 0x815   : > { %1718 = vrsqrt.f32 %v1111_v25 }
 0x81b   : > { %v1717_v26 = vpop.eup %1716 }
 0x81c   : > { %v1114_v28 = vmul.f32 %v1717_v26, %v1098_v1 }
 0x81e   : > { %v1122_v30 = vmul.f32 %v1428_v27, %v1114_v28 }
 0x81f   : > { %v1719_v31 = vpop.eup %1718 }
 0x820   : > { %v1115_v32 = vmul.f32 %v1719_v31, %v1099_v7  ;;  %v1130_v33 = vadd.f32 %v1429_v29, %v1122_v30 }
 0x822   : > { %v1123_v34 = vmul.f32 %v1428_v27, %v1115_v32  ;;  %1548 = vmatprep.mubr.msk.f32.mxu1 %vm445_vm0, %v1130_v33 }
 0x824   : > { %v1131_v35 = vadd.f32 %v1429_v29, %v1123_v34 }
 0x826   : > { %1549 = vmatmul.mubr.msk.f32.vlgmr.msra.gmra.mrb[8].mxu1 %vm445_vm0, %v1131_v35 }
 0x8f9   : > { %v1550_v58 = vpop.f32.mrb[8].mxu1 }
 0x8fa   : > { %v1221_v59 = vadd.f32 %v1550_v58, %v1430_v57  ;;  %v1215_v60 = vpop.f32.mrb[9].mxu1 }
 0x8fb   : > { %v1216_v63 = vadd.f32 %v1430_v57, %v1215_v60 }
 0x8fc   : > { %v1227_v2 = vmul.f32 0.044715, %v1221_v59  ;;  %v1225_v15 = vmul.f32 0.5, %v1221_v59 }
 0x8fd   : > { %v1226_v3 = vmul.f32 0.044715, %v1216_v63  ;;  %v1224_v13 = vmul.f32 0.5, %v1216_v63 }
 0x8fe   : > { %v1229_v4 = vmul.f32 %v1227_v2, %v1221_v59 }
 0x8ff   : > { %v1228_v5 = vmul.f32 %v1226_v3, %v1216_v63 }
 0x900   : > { %v1231_v6 = vmul.f32 %v1229_v4, %v1221_v59 }
 0x901   : > { %v1230_v7 = vmul.f32 %v1228_v5, %v1216_v63 }
 0x902   : > { %v1233_v1 = vadd.f32 %v1231_v6, %v1221_v59 }
 0x903   : > { %v1232_v8 = vadd.f32 %v1230_v7, %v1216_v63 }
 0x904   : > { %v1235_v0 = vmul.f32 0.7978846, %v1233_v1 }
 0x905   : > { %v1234_v9 = vmul.f32 0.7978846, %v1232_v8 }
 0x906   : > { %1720 = vtanh.f32 %v1235_v0 }
 0x907   : > { %1722 = vtanh.f32 %v1234_v9 }
 0x910   : > { %v1721_v10 = vpop.eup %1720 }
 0x911   : > { %v1723_v11 = vpop.eup %1722  ;;  %v1239_v12 = vadd.f32 1.0, %v1721_v10 }
 0x912   : > { %v1238_v14 = vadd.f32 1.0, %v1723_v11 }
 0x913   : > { %v1241_v17 = vmul.f32 %v1239_v12, %v1225_v15 }
 0x914   : > { %v1240_v16 = vmul.f32 %v1238_v14, %v1224_v13 }
 0x916   : > { %1583 = vmatprep.mubr.f32.mxu0 %v1240_v16 }
 0x917   : > { %1584 = vmatmul.mubr.f32.vlgmr.msra.gmra.mrb[4].mxu0 %v1241_v17 }
 0x9ea   : > { %v1585_v19 = vpop.f32.mrb[4].mxu0 }
 0x9eb   : > { %v1337_v20 = vadd.f32 %v1585_v19, %v1433_v18  ;;  %v1331_v21 = vpop.f32.mrb[5].mxu0 }
 0x9ec   : > { %v1332_v22 = vadd.f32 %v1433_v18, %v1331_v21 }
 0x9ed   : > { %v1341_v23 = vadd.f32 %v1337_v20, %v1903_v61 }
 0x9ee   : > { %v1340_v24 = vadd.f32 %v1332_v22, %v1906_v62 }
 0x9ef   : > { %1343 = vst.msk [vmem:[%s440_s24 + $0x8] sm:$0xff] %vm445_vm0, %v1341_v23 }
 0x9f0   : > { %1342 = vst.msk [vmem:[%s440_s24] sm:$0xff] %vm445_vm0, %v1340_v24 }
 0x9f1 PF: > { %s23_s25 = sadd.s32 1, %s1730_s25  }
 0x9f2   : > { %p20_p4 = scmp.ge.s32.totalorder %s23_s25, 4  }
 0x9f4   :  { %22 = sbr.rel (!%p20_p4) target bundleno = 1 (0x1), region = 102 }

// kernel: piip_forward.28
= control target key start
LH: loop header
LB: loop body
LE: loop exit
PB: predicated region body
PF: predicated region fallthrough
CT: control target
= control target key end

     0   :  { %s1146_s30 = smov 0   ;;  %s1275_s0 = inlined_call_operand.vmem [shape: f32[2,16,32], index: 0, kind: input, shape index: {}]   ;;  %s1276_s1 = inlined_call_operand.vmem [shape: f32[32,32], index: 1, kind: input, shape index: {}]   ;;  %s1277_s2 = inlined_call_operand.vmem [shape: f32[1,32], index: 2, kind: input, shape index: {}]   ;;  %s1278_s3 = inlined_call_operand.vmem [shape: f32[1,32], index: 3, kind: input, shape index: {}]   ;;  %s1279_s4 = inlined_call_operand.vmem [shape: f32[32,64], index: 4, kind: input, shape index: {}]   ;;  %s1280_s5 = inlined_call_operand.vmem [shape: f32[1,64], index: 5, kind: input, shape index: {}]   ;;  %s1281_s6 = inlined_call_operand.vmem [shape: f32[64,64], index: 6, kind: input, shape index: {}]   ;;  %s1282_s7 = inlined_call_operand.vmem [shape: f32[1,64], index: 7, kind: input, shape index: {}]   ;;  %s1283_s8 = inlined_call_operand.vmem [shape: f32[1,64], index: 8, kind: input, shape index: {}]   ;;  %s1284_s9 = inlined_call_operand.vmem [shape: f32[2,16,64], index: 9, kind: output, shape index: {}]  }
   0x1 LB: > { %s897_s10 = sadd.s32 4294967295, %s1091_s30   ;;  %p901_p0 = scmp.ge.s32.totalorder %s1091_s30, 1  ;;  %s1091_s30 = sphi %s1146_s30, %s19_s30  }
   0x2   : > { %p287_p1 = scmp.lt.s32.totalorder %s1091_s30, 3 }
   0x4   : > { %p288_p2 = pnand %p901_p0, %p287_p1 }
   0x5   : > { %v337_v0 = vld [vmem:[%s1276_s1] sm:$0xff] (!%p288_p2)  ;;  %v338_v1 = vld [vmem:[%s1276_s1 + $0x8] sm:$0xff] (!%p288_p2)  ;;  %v339_v2 = vld [vmem:[%s1276_s1 + $0x10] sm:$0xff] (!%p288_p2)  ;;  %v1093_v3 = vmov (!%p288_p2), 0.0|0.0   ;;  %vm1094_vm0 = vmmov (!%p288_p2), 0   ;;  %v1095_v6 = vmov (!%p288_p2), 0.0   ;;  %v426_v20 = vlaneseq (!%p288_p2) }
   0x6   : > { %291 = sbr.rel (%p288_p2) target bundleno = 1204 (0x4b4), region = 56  ;;  %1026 = vmatprep.subr.bf16.mxu0 (!%p288_p2), %v1093_v3  ;;  %v1027_v4 = vpack.c.bf16 (!%p288_p2), %v338_v1, %v337_v0  ;;  %v340_v5 = vld [vmem:[%s1276_s1 + $0x18] sm:$0xff] (!%p288_p2)  ;;  %963 = vmatprep.mubr.msk.f32.mxu0 (!%p288_p2), %vm1094_vm0, %v1095_v6  ;;  %p323_p3 = scmp.lt.s32.totalorder (!%p288_p2), %s897_s10, 1  ;;  %vm341_vm1 = vcmask (!%p288_p2), 261120   ;;  %v540_v40 = vld [vmem:[%s1279_s4] sm:$0xff] (!%p288_p2)  ;;  %v541_v41 = vld [vmem:[%s1279_s4 + $0x8] sm:$0xff] (!%p288_p2) }
   0x7   : > { %1032 = vmatprep.subr.bf16.mxu1 (!%p288_p2), %v1093_v3  ;;  %974 = vmatprep.mubr.msk.f32.mxu1 (!%p288_p2), %vm1094_vm0, %v1095_v6  ;;  %v1030_v7 = vpack.c.bf16 (!%p288_p2), %v340_v5, %v339_v2  ;;  %v427_v21 = vshrl.u32 (!%p288_p2), %v426_v20, 7  ;;  %v1038_v42 = vpack.c.bf16 (!%p288_p2), %v541_v41, %v540_v40  ;;  %v542_v43 = vld [vmem:[%s1279_s4 + $0x10] sm:$0xff] (!%p288_p2)  ;;  %v543_v44 = vld [vmem:[%s1279_s4 + $0x18] sm:$0xff] (!%p288_p2)  ;;  %v908_v51 = vld [vmem:[%s1277_s2] ss:$0 sm:$0xff] (!%p288_p2)  ;;  %vm642_vm2 = vcmask (!%p288_p2), 523264  }
   0x8   : > { %1028 = vmatpush3.bf16.msra.mxu0 (!%p288_p2), %v1027_v4  ;;  %1034 = vmatpush3.bf16.msra.mxu1 (!%p288_p2), %v1027_v4  ;;  %v1042_v45 = vpack.c.bf16 (!%p288_p2), %v543_v44, %v542_v43  ;;  %v909_v54 = vld [vmem:[%s1278_s3] ss:$0 sm:$0xff] (!%p288_p2)  ;;  %v635_v60 = vld [vmem:[%s1281_s6 + $0x8] sm:$0xff] (!%p288_p2)  ;;  %v636_v62 = vld [vmem:[%s1281_s6 + $0x10] sm:$0xff] (!%p288_p2) }
   0x9   : > { %1029 = vmatprep.subr.bf16.mxu0 (!%p288_p2), %v1093_v3  ;;  %1035 = vmatprep.subr.bf16.mxu1 (!%p288_p2), %v1093_v3  ;;  %v1186_v22 = vsub.s32 (!%p288_p2), 0, %v427_v21  ;;  %v634_v59 = vld [vmem:[%s1281_s6] sm:$0xff] (!%p288_p2)  ;;  %v637_v63 = vld [vmem:[%s1281_s6 + $0x18] sm:$0xff] (!%p288_p2)  ;;  %v639_v2 = vld [vmem:[%s1281_s6 + $0x28] sm:$0xff] (!%p288_p2) }
   0xa   : > { %v1047_v61 = vpack.c.bf16 (!%p288_p2), %v635_v60, %v634_v59  ;;  %v1050_v0 = vpack.c.bf16 (!%p288_p2), %v637_v63, %v636_v62  ;;  %v638_v1 = vld [vmem:[%s1281_s6 + $0x20] sm:$0xff] (!%p288_p2)  ;;  %v640_v5 = vld [vmem:[%s1281_s6 + $0x30] sm:$0xff] (!%p288_p2) }
   0xb   : > { %v1053_v4 = vpack.c.bf16 (!%p288_p2), %v639_v2, %v638_v1 }
   0xc   : > { %1031 = vmatpush3.bf16.msra.mxu0 (!%p288_p2), %v1030_v7  ;;  %1037 = vmatpush3.bf16.msra.mxu1 (!%p288_p2), %v1030_v7 }
   0xd   : > { %s1286_s10 = smov (!%p323_p3, %s897_s10), 1  ;;  %1046 = vmatprep.subr.bf16.mxu1 %v1093_v3  ;;  %1039 = vmatprep.subr.bf16.mxu0 %v1038_v42 }
   0xe   : > { %s919_s19 = sshll.u32 %s1286_s10, 4 }
   0xf   : > { %s327_s22 = scalar_lea.vmem %s1275_s0, %s919_s19  ;;  %s332_s23 = scalar_lea.vmem %s1284_s9, %s919_s19 }
  0x10   : > { %v333_v8 = vld [vmem:[%s327_s22] sm:$0xff]  ;;  %v334_v9 = vld [vmem:[%s327_s22 + $0x8] sm:$0xff] }
  0x11   : > { %v342_v10 = vsel %vm341_vm1, %v333_v8, 0.0  ;;  %v343_v11 = vsel %vm341_vm1, %v334_v9, 0.0 }
  0x12   : > { %v344_v12 = vadd.f32 %v343_v11, %v342_v10 }
  0x14   : > { %v345_v13 = vrot.slane %v344_v12, 4 }
  0x16   : > { %v346_v14 = vadd.f32 %v345_v13, %v344_v12 }
  0x18   : > { %v347_v15 = vrot.slane %v346_v14, 2 }
  0x1a   : > { %v348_v16 = vadd.f32 %v347_v15, %v346_v14 }
  0x1c   : > { %v349_v17 = vrot.slane %v348_v16, 1 }
  0x1e   : > { %v350_v18 = vadd.f32 %v349_v17, %v348_v16 }
  0x20   : > { %v352_v19 = vmul.f32 0.0625, %v350_v18 }
  0x22   : > { %964 = vmatmul.mubr.msk.f32.vlgmr.msra.gmra.mrb[0].mxu0 %vm341_vm1, %v352_v19 }
  0x23   : > { %1041 = vmatpush3.bf16.msra.mxu0 %v1038_v42 }
  0x24   : > { %1043 = vmatprep.subr.bf16.mxu0 %v1042_v45 }
  0x27   : > { %1045 = vmatpush3.bf16.msra.mxu0 %v1042_v45  ;;  %v915_v45 = vld [vmem:[%s1282_s7] ss:$0 sm:$0xff] }
  0x28   : > { %1058 = vmatprep.subr.bf16.mxu0 %v1093_v3 }
  0xf5   : > { %v422_v23 = vpop.f32.mrb[0].mxu0 }
  0xf6   : > { %v429_v24 = vrot.slane %v422_v23, %v1186_v22  ;;  %v965_v25 = vpop.f32.mrb[1].mxu0 }
  0xf8   : > { %v430_v26 = vsub.f32 %v333_v8, %v429_v24  ;;  %v431_v27 = vsub.f32 %v334_v9, %v429_v24  ;;  %v910_v8 = vld [vmem:[%s1280_s5] ss:$0 sm:$0xff] }
  0xfa   : > { %v432_v28 = vmul.f32 %v430_v26, %v430_v26  ;;  %v433_v29 = vmul.f32 %v431_v27, %v431_v27 }
  0xfc   : > { %v434_v30 = vsel %vm341_vm1, %v432_v28, 0.0  ;;  %v435_v31 = vsel %vm341_vm1, %v433_v29, 0.0 }
  0xfd   : > { %v436_v32 = vadd.f32 %v435_v31, %v434_v30 }
  0xff   : > { %v437_v33 = vrot.slane %v436_v32, 4 }
 0x101   : > { %v438_v34 = vadd.f32 %v437_v33, %v436_v32 }
 0x103   : > { %v439_v35 = vrot.slane %v438_v34, 2 }
 0x105   : > { %v440_v36 = vadd.f32 %v439_v35, %v438_v34 }
 0x107   : > { %v441_v37 = vrot.slane %v440_v36, 1 }
 0x109   : > { %v442_v38 = vadd.f32 %v441_v37, %v440_v36 }
 0x10b   : > { %v443_v39 = vmul.f32 0.0625, %v442_v38 }
 0x10d   : > { %975 = vmatmul.mubr.msk.f32.vlgmr.msra.gmra.mrb[0].mxu1 %vm341_vm1, %v443_v39 }
 0x10e   : > { %1004 = vmatprep.mubr.msk.f32.mxu1 %vm1094_vm0, %v1095_v6  ;;  %1048 = vmatpush3.bf16.msra.mxu1 %v1047_v61 }
 0x10f   : > { %1049 = vmatprep.subr.bf16.mxu1 %v1093_v3 }
 0x112   : > { %1051 = vmatpush3.bf16.msra.mxu1 %v1050_v0 }
 0x113   : > { %1052 = vmatprep.subr.bf16.mxu1 %v1093_v3 }
 0x116   : > { %1054 = vmatpush3.bf16.msra.mxu1 %v1053_v4 }
 0x117   : > { %1055 = vmatprep.subr.bf16.mxu1 %v1093_v3 }
 0x1e0   : > { %v513_v46 = vpop.f32.mrb[0].mxu1 }
 0x1e1   : > { %v514_v47 = vadd.f32 1e-05, %v513_v46  ;;  %v976_v48 = vpop.f32.mrb[1].mxu1 }
 0x1e2   : > { %v916_v48 = vld [vmem:[%s1283_s8] ss:$0 sm:$0xff] }
 0x1e3   : > { %1081 = vrsqrt.f32 %v514_v47 }
 0x1ed   : > { %v1082_v49 = vpop.eup %1081 }
 0x1ee   : > { %v521_v50 = vrot.slane %v1082_v49, %v1186_v22 }
 0x1f0   : > { %v522_v52 = vmul.f32 %v521_v50, %v430_v26  ;;  %v523_v53 = vmul.f32 %v521_v50, %v431_v27 }
 0x1f2   : > { %v530_v55 = vmul.f32 %v908_v51, %v522_v52  ;;  %v531_v56 = vmul.f32 %v908_v51, %v523_v53 }
 0x1f4   : > { %v538_v57 = vadd.f32 %v909_v54, %v530_v55  ;;  %v539_v58 = vadd.f32 %v909_v54, %v531_v56 }
 0x1f6   : > { %985 = vmatprep.mubr.msk.f32.mxu0 %vm341_vm1, %v538_v57 }
 0x1f7   : > { %986 = vmatmul.mubr.msk.f32.vlgmr.msra.gmra.mrb[2].mxu0 %vm341_vm1, %v539_v58 }
 0x1f8   : > { %1023 = vmatprep.mubr.msk.f32.mxu0 %vm1094_vm0, %v1095_v6  ;;  %1060 = vmatpush3.bf16.msra.mxu0 %v1047_v61  ;;  %v641_v6 = vld [vmem:[%s1281_s6 + $0x38] sm:$0xff] }
 0x1f9   : > { %1061 = vmatprep.subr.bf16.mxu0 %v1093_v3  ;;  %v1056_v7 = vpack.c.bf16 %v641_v6, %v640_v5 }
 0x1fb   : > { %1057 = vmatpush3.bf16.msra.mxu1 %v1056_v7 }
 0x1fc   : > { %1063 = vmatpush3.bf16.msra.mxu0 %v1050_v0 }
 0x1fd   : > { %1064 = vmatprep.subr.bf16.mxu0 %v1093_v3 }
 0x200   : > { %1066 = vmatpush3.bf16.msra.mxu0 %v1053_v4 }
 0x201   : > { %1067 = vmatprep.subr.bf16.mxu0 %v1093_v3 }
 0x204   : > { %1069 = vmatpush3.bf16.msra.mxu0 %v1056_v7 }
 0x2ca   : > { %v987_v9 = vpop.f32.mrb[2].mxu0 }
 0x2cb   : > { %v629_v10 = vadd.f32 %v987_v9, %v910_v8  ;;  %v623_v11 = vpop.f32.mrb[3].mxu0 }
 0x2cc   : > { %v624_v12 = vadd.f32 %v910_v8, %v623_v11 }
 0x2cd   : > { %v644_v13 = vsel %vm642_vm2, %v629_v10, 0.0 }
 0x2ce   : > { %v643_v14 = vsel %vm642_vm2, %v624_v12, 0.0 }
 0x2cf   : > { %v645_v15 = vadd.f32 %v644_v13, %v643_v14 }
 0x2d1   : > { %v646_v16 = vrot.slane %v645_v15, 4 }
 0x2d3   : > { %v647_v17 = vadd.f32 %v646_v16, %v645_v15 }
 0x2d5   : > { %v648_v3 = vrot.slane %v647_v17, 2 }
 0x2d7   : > { %v649_v18 = vadd.f32 %v648_v3, %v647_v17 }
 0x2d9   : > { %v650_v19 = vrot.slane %v649_v18, 1 }
 0x2db   : > { %v651_v20 = vadd.f32 %v650_v19, %v649_v18 }
 0x2dd   : > { %v652_v21 = vmul.f32 0.0625, %v651_v20 }
 0x2df   : > { %1005 = vmatmul.mubr.msk.f32.vlgmr.msra.gmra.mrb[2].mxu1 %vm642_vm2, %v652_v21 }
 0x3b2   : > { %v722_v23 = vpop.f32.mrb[2].mxu1 }
 0x3b3   : > { %v729_v24 = vrot.slane %v722_v23, %v1186_v22  ;;  %v1006_v25 = vpop.f32.mrb[3].mxu1 }
 0x3b5   : > { %v730_v26 = vsub.f32 %v624_v12, %v729_v24  ;;  %v731_v27 = vsub.f32 %v629_v10, %v729_v24 }
 0x3b7   : > { %v732_v28 = vmul.f32 %v730_v26, %v730_v26  ;;  %v733_v29 = vmul.f32 %v731_v27, %v731_v27 }
 0x3b9   : > { %v734_v30 = vsel %vm642_vm2, %v732_v28, 0.0  ;;  %v735_v31 = vsel %vm642_vm2, %v733_v29, 0.0 }
 0x3ba   : > { %v736_v32 = vadd.f32 %v735_v31, %v734_v30 }
 0x3bc   : > { %v737_v33 = vrot.slane %v736_v32, 4 }
 0x3be   : > { %v738_v34 = vadd.f32 %v737_v33, %v736_v32 }
 0x3c0   : > { %v739_v35 = vrot.slane %v738_v34, 2 }
 0x3c2   : > { %v740_v36 = vadd.f32 %v739_v35, %v738_v34 }
 0x3c4   : > { %v741_v37 = vrot.slane %v740_v36, 1 }
 0x3c6   : > { %v742_v38 = vadd.f32 %v741_v37, %v740_v36 }
 0x3c8   : > { %v743_v39 = vmul.f32 0.0625, %v742_v38 }
 0x3ca   : > { %1024 = vmatmul.mubr.msk.f32.vlgmr.msra.gmra.mrb[4].mxu0 %vm642_vm2, %v743_v39 }
 0x49d   : > { %v813_v40 = vpop.f32.mrb[4].mxu0 }
 0x49e   : > { %v814_v41 = vadd.f32 1e-05, %v813_v40  ;;  %v1025_v42 = vpop.f32.mrb[5].mxu0 }
 0x4a0   : > { %1083 = vrsqrt.f32 %v814_v41 }
 0x4aa   : > { %v1084_v43 = vpop.eup %1083 }
 0x4ab   : > { %v821_v44 = vrot.slane %v1084_v43, %v1186_v22 }
 0x4ad   : > { %v822_v46 = vmul.f32 %v821_v44, %v730_v26  ;;  %v823_v47 = vmul.f32 %v821_v44, %v731_v27 }
 0x4af   : > { %v830_v49 = vmul.f32 %v915_v45, %v822_v46  ;;  %v831_v50 = vmul.f32 %v915_v45, %v823_v47 }
 0x4b1   : > { %v838_v51 = vadd.f32 %v916_v48, %v830_v49  ;;  %v839_v52 = vadd.f32 %v916_v48, %v831_v50 }
 0x4b3   : > { %840 = vst.msk [vmem:[%s332_s23] sm:$0xff] %vm642_vm2, %v838_v51  ;;  %841 = vst.msk [vmem:[%s332_s23 + $0x8] sm:$0xff] %vm642_vm2, %v839_v52 }
 0x4b4 PF: > { %s19_s30 = sadd.s32 1, %s1091_s30  }
 0x4b5   : > { %p16_p4 = scmp.ge.s32.totalorder %s19_s30, 4  }
 0x4b7   :  { %18 = sbr.rel (!%p16_p4) target bundleno = 1 (0x1), region = 86 }

// kernel: piip_forward.21
= control target key start
LH: loop header
LB: loop body
LE: loop exit
PB: predicated region body
PF: predicated region fallthrough
CT: control target
= control target key end

     0   :  { %s1911_s24 = smov 0   ;;  %s2109_s0 = inlined_call_operand.vmem [shape: f32[2,16,32], index: 0, kind: input, shape index: {}]   ;;  %s2110_s1 = inlined_call_operand.vmem [shape: f32[2,4,64], index: 1, kind: input, shape index: {}]   ;;  %s2111_s2 = inlined_call_operand.vmem [shape: f32[64,32], index: 2, kind: input, shape index: {}]   ;;  %s2112_s3 = inlined_call_operand.vmem [shape: f32[1,32], index: 3, kind: input, shape index: {}]   ;;  %s2113_s4 = inlined_call_operand.vmem [shape: f32[1,32], index: 4, kind: input, shape index: {}]   ;;  %s2114_s5 = inlined_call_operand.vmem [shape: f32[1,32], index: 5, kind: input, shape index: {}]   ;;  %s2115_s6 = inlined_call_operand.vmem [shape: f32[1,32], index: 6, kind: input, shape index: {}]   ;;  %s2116_s7 = inlined_call_operand.vmem [shape: f32[1,32], index: 7, kind: input, shape index: {}]   ;;  %s2117_s8 = inlined_call_operand.vmem [shape: f32[32,32], index: 8, kind: input, shape index: {}]   ;;  %s2118_s9 = inlined_call_operand.vmem [shape: f32[1,32], index: 9, kind: input, shape index: {}]   ;;  %s2119_s10 = inlined_call_operand.vmem [shape: f32[32,32], index: 10, kind: input, shape index: {}]   ;;  %s2120_s11 = inlined_call_operand.vmem [shape: f32[1,32], index: 11, kind: input, shape index: {}]   ;;  %s2121_s12 = inlined_call_operand.vmem [shape: f32[32,32], index: 12, kind: input, shape index: {}]   ;;  %s2122_s13 = inlined_call_operand.vmem [shape: f32[1,32], index: 13, kind: input, shape index: {}]   ;;  %s2123_s14 = inlined_call_operand.vmem [shape: f32[32,32], index: 14, kind: input, shape index: {}]   ;;  %s2124_s15 = inlined_call_operand.vmem [shape: f32[1,32], index: 15, kind: input, shape index: {}]   ;;  %s2125_s16 = inlined_call_operand.vmem [shape: f32[1,32], index: 16, kind: input, shape index: {}]   ;;  %s2126_s17 = inlined_call_operand.vmem [shape: f32[2,16,32], index: 17, kind: output, shape index: {}]  }
   0x1   :  { %2127 = sst [smem:[#allocation2_spill]] %s2109_s0 }
   0x2   :  { %2128 = sst [smem:[#allocation3_spill]] %s2110_s1 }
   0x3 LB: > { %s1564_s25 = sadd.s32 4294967295, %s1814_s24   ;;  %p1568_p0 = scmp.ge.s32.totalorder %s1814_s24, 1  ;;  %s1814_s24 = sphi %s1911_s24, %s27_s24  }
   0x4   : > { %p496_p1 = scmp.lt.s32.totalorder %s1814_s24, 3 }
   0x6   : > { %p497_p2 = pnand %p1568_p0, %p496_p1 }
   0x7   : > { %v569_v0 = vld [vmem:[%s2111_s2] sm:$0xff] (!%p497_p2)  ;;  %v570_v1 = vld [vmem:[%s2111_s2 + $0x8] sm:$0xff] (!%p497_p2)  ;;  %v571_v2 = vld [vmem:[%s2111_s2 + $0x10] sm:$0xff] (!%p497_p2)  ;;  %v1816_v3 = vmov (!%p497_p2), 0.0|0.0   ;;  %vm1817_vm0 = vmmov (!%p497_p2), 0   ;;  %v1818_v6 = vmov (!%p497_p2), 0.0  }
   0x8   : > { %500 = sbr.rel (%p497_p2) target bundleno = 2387 (0x953), region = 88  ;;  %1733 = vmatprep.subr.bf16.mxu0 (!%p497_p2), %v1816_v3  ;;  %v1734_v4 = vpack.c.bf16 (!%p497_p2), %v570_v1, %v569_v0  ;;  %v572_v5 = vld [vmem:[%s2111_s2 + $0x18] sm:$0xff] (!%p497_p2)  ;;  %1666 = vmatprep.mubr.msk.f32.mxu0 (!%p497_p2), %vm1817_vm0, %v1818_v6  ;;  %p552_p3 = scmp.lt.s32.totalorder (!%p497_p2), %s1564_s25, 1  ;;  %v573_v8 = vld [vmem:[%s2111_s2 + $0x20] sm:$0xff] (!%p497_p2)  ;;  %v574_v9 = vld [vmem:[%s2111_s2 + $0x28] sm:$0xff] (!%p497_p2)  ;;  %vm660_vm1 = vcmask (!%p497_p2), 261120  }
   0x9   : > { %v1737_v7 = vpack.c.bf16 (!%p497_p2), %v572_v5, %v571_v2  ;;  %s2129_s28 = sld [smem:[#allocation2_spill]] (!%p497_p2)  ;;  %v1740_v10 = vpack.c.bf16 (!%p497_p2), %v574_v9, %v573_v8  ;;  %v575_v13 = vld [vmem:[%s2111_s2 + $0x30] sm:$0xff] (!%p497_p2)  ;;  %v576_v14 = vld [vmem:[%s2111_s2 + $0x38] sm:$0xff] (!%p497_p2)  ;;  %s2130_s22 = sld [smem:[#allocation3_spill]] (!%p497_p2)  ;;  %vm584_vm2 = vcmask (!%p497_p2), 523264   ;;  %vm706_vm3 = vcmask (!%p497_p2), 257024  }
   0xa   : > { %1735 = vmatpush3.bf16.msra.mxu0 (!%p497_p2), %v1734_v4  ;;  %v1743_v17 = vpack.c.bf16 (!%p497_p2), %v576_v14, %v575_v13  ;;  %v1574_v27 = vld [vmem:[%s2112_s3] ss:$0 sm:$0xff] (!%p497_p2)  ;;  %v735_v35 = vld [vmem:[%s2117_s8 + $0x8] sm:$0xff] (!%p497_p2)  ;;  %v736_v36 = vld [vmem:[%s2117_s8 + $0x10] sm:$0xff] (!%p497_p2)  ;;  %vm991_vm4 = vcmask (!%p497_p2), 130048   ;;  %vm1107_vm5 = vcmask (!%p497_p2), 1043456  }
   0xb   : > { %1736 = vmatprep.subr.bf16.mxu0 (!%p497_p2), %v1816_v3  ;;  %v734_v34 = vld [vmem:[%s2117_s8] sm:$0xff] (!%p497_p2)  ;;  %v737_v38 = vld [vmem:[%s2117_s8 + $0x18] sm:$0xff] (!%p497_p2)  ;;  %v827_v62 = vld [vmem:[%s2119_s10 + $0x8] sm:$0xff] (!%p497_p2)  ;;  %vm1078_vm6 = vcmask (!%p497_p2), 31744   ;;  %s1819_s30 = smov (!%p497_p2), 112  }
   0xc   : > { %v1745_v37 = vpack.c.bf16 (!%p497_p2), %v735_v35, %v734_v34  ;;  %v1749_v39 = vpack.c.bf16 (!%p497_p2), %v737_v38, %v736_v36  ;;  %v1576_v53 = vld [vmem:[%s2113_s4] ss:$0 sm:$0xff] (!%p497_p2)  ;;  %v911_v1 = vld [vmem:[%s2121_s12 + $0x8] sm:$0xff] (!%p497_p2)  ;;  %v828_v4 = vld [vmem:[%s2119_s10 + $0x10] sm:$0xff] (!%p497_p2) }
   0xd   : > { %v1577_v57 = vld [vmem:[%s2114_s5] ss:$0 sm:$0xff] (!%p497_p2)  ;;  %v829_v5 = vld [vmem:[%s2119_s10 + $0x18] sm:$0xff] (!%p497_p2) }
   0xe   : > { %1738 = vmatpush3.bf16.msra.mxu0 (!%p497_p2), %v1737_v7  ;;  %1746 = vmatprep.subr.bf16.mxu1 (!%p497_p2), %v1745_v37  ;;  %v826_v61 = vld [vmem:[%s2119_s10] sm:$0xff] (!%p497_p2)  ;;  %v1757_v7 = vpack.c.bf16 (!%p497_p2), %v829_v5, %v828_v4  ;;  %v913_v8 = vld [vmem:[%s2121_s12 + $0x18] sm:$0xff] (!%p497_p2) }
   0xf   : > { %s2132_s25 = smov (!%p552_p3, %s1564_s25), 1  ;;  %1739 = vmatprep.subr.bf16.mxu0 %v1816_v3  ;;  %1748 = vmatpush3.bf16.msra.mxu1 %v1745_v37  ;;  %v910_v63 = vld [vmem:[%s2121_s12] sm:$0xff]  ;;  %v1754_v0 = vpack.c.bf16 %v827_v62, %v826_v61 }
  0x10   : > { %s1605_s23 = sshll.u32 %s2132_s25, 4  ;;  %s1571_s1 = sshll.u32 %s2132_s25, 2  ;;  %1750 = vmatprep.subr.bf16.mxu1 %v1749_v39  ;;  %v1760_v2 = vpack.c.bf16 %v911_v1, %v910_v63 }
  0x11   : > { %s556_s29 = scalar_lea.vmem %s2129_s28, %s1605_s23  ;;  %s560_s26 = scalar_lea.vmem %s2130_s22, %s1571_s1 }
  0x12   : > { %v1949_v11 = vld [vmem:[%s556_s29] sm:$0xff]  ;;  %v1951_v12 = vld [vmem:[%s556_s29 + $0x8] sm:$0xff]  ;;  %1741 = vmatpush3.bf16.msra.mxu0 %v1740_v10  ;;  %s1820_s28 = smov 16   ;;  %s565_s20 = scalar_lea.vmem %s2126_s17, %s1605_s23 }
  0x13   : > { %v661_v15 = vsel %vm660_vm1, %v1949_v11, 0.0  ;;  %v664_v16 = vsel %vm660_vm1, %v1951_v12, 0.0  ;;  %1742 = vmatprep.subr.bf16.mxu0 %v1816_v3  ;;  %v568_v18 = vld [vmem:[%s560_s26] sm:$0xf]  ;;  %1752 = vmatpush3.bf16.msra.mxu1 %v1749_v39 }
  0x14   : > { %662 = vadd.xlane.f32.xlu0 %v661_v15  ;;  %1753 = vmatprep.subr.bf16.mxu1 %v1816_v3 }
  0x16   : > { %1744 = vmatpush3.bf16.msra.mxu0 %v1743_v17 }
  0x17   : > { %1759 = vmatprep.subr.bf16.mxu0 %v1816_v3 }
  0x18   : > { %665 = vadd.xlane.f32.xlu0 %v664_v16  ;;  %v1578_v16 = vld [vmem:[%s2115_s6] ss:$0 sm:$0xff] }
  0x19   : > { %1667 = vmatmul.mubr.msk.f32.vlgmr.msra.gmra.mrb[0].mxu0 %vm584_vm2, %v568_v18 }
  0x1a   : > { %1699 = vmatprep.mubr.msk.f32.mxu0 %vm1817_vm0, %v1818_v6  ;;  %1761 = vmatpush3.bf16.msra.mxu0 %v1760_v2 }
  0x1b   : > { %1762 = vmatprep.subr.bf16.mxu0 %v1816_v3 }
  0xa1   : > { %v663_v19 = vpop.xlane.xlu0 %662 }
  0xa2   : > { %v668_v25 = vmul.f32 0.03125, %v663_v19 }
  0xa4   : > { %v670_v26 = vsub.f32 %v1949_v11, %v668_v25  ;;  %v1583_v25 = vld [vmem:[%s2120_s11] ss:$0 sm:$0xff] }
  0xa5   : > { %v666_v20 = vpop.xlane.xlu0 %665 }
  0xa6   : > { %v669_v21 = vmul.f32 0.03125, %v666_v20  ;;  %v672_v31 = vmul.f32 %v670_v26, %v670_v26  ;;  %v1580_v20 = vld [vmem:[%s2118_s9] ss:$0 sm:$0xff] }
  0xa8   : > { %v671_v22 = vsub.f32 %v1951_v12, %v669_v21  ;;  %v674_v33 = vsel %vm660_vm1, %v672_v31, 0.0 }
  0xaa   : > { %v673_v23 = vmul.f32 %v671_v22, %v671_v22 }
  0xac   : > { %v677_v24 = vsel %vm660_vm1, %v673_v23, 0.0 }
  0xad   : > { %678 = vadd.xlane.f32.xlu0 %v677_v24 }
  0xec   : > { %v654_v28 = vpop.f32.mrb[0].mxu0 }
  0xed   : > { %v655_v29 = vadd.f32 %v1574_v27, %v654_v28  ;;  %v1668_v30 = vpop.f32.mrb[1].mxu0  ;;  %v1585_v27 = vld [vmem:[%s2122_s13] ss:$0 sm:$0xff] }
  0xef   : > { %v707_v32 = vsel %vm706_vm3, %v655_v29, 0.0 }
  0xf0   : > { %708 = vadd.xlane.f32.xlu1 %v707_v32 }
  0xf4   : > { %675 = vadd.xlane.f32.xlu1 %v674_v33 }
 0x13a   : > { %v679_v40 = vpop.xlane.xlu0 %678 }
 0x13b   : > { %v681_v41 = vmul.f32 0.03125, %v679_v40 }
 0x13d   : > { %v683_v42 = vadd.f32 1e-06, %v681_v41 }
 0x13f   : > { %1786 = vrsqrt.f32 %v683_v42 }
 0x149   : > { %v1787_v51 = vpop.eup %1786 }
 0x14a   : > { %v687_v52 = vmul.f32 %v1787_v51, %v671_v22 }
 0x14c   : > { %v695_v56 = vmul.f32 %v1576_v53, %v687_v52 }
 0x14e   : > { %v703_v60 = vadd.f32 %v1577_v57, %v695_v56 }
 0x17d   : > { %v709_v43 = vpop.xlane.xlu1 %708 }
 0x17e   : > { %v710_v44 = vmul.f32 0.03125, %v709_v43 }
 0x180   : > { %v711_v45 = vsub.f32 %v655_v29, %v710_v44 }
 0x181   : > { %v676_v46 = vpop.xlane.xlu1 %675 }
 0x182   : > { %v680_v47 = vmul.f32 0.03125, %v676_v46  ;;  %v712_v48 = vmul.f32 %v711_v45, %v711_v45 }
 0x184   : > { %v682_v49 = vadd.f32 1e-06, %v680_v47  ;;  %v713_v50 = vsel %vm706_vm3, %v712_v48, 0.0 }
 0x185   : > { %714 = vadd.xlane.f32.xlu1 %v713_v50 }
 0x186   : > { %1788 = vrsqrt.f32 %v682_v49 }
 0x190   : > { %v1789_v54 = vpop.eup %1788 }
 0x191   : > { %v686_v55 = vmul.f32 %v1789_v54, %v670_v26 }
 0x193   : > { %v694_v58 = vmul.f32 %v1576_v53, %v686_v55 }
 0x195   : > { %v702_v59 = vadd.f32 %v1577_v57, %v694_v58 }
 0x197   : > { %1677 = vmatprep.mubr.msk.f32.mxu1 %vm660_vm1, %v702_v59 }
 0x198   : > { %1678 = vmatmul.mubr.msk.f32.vlgmr.msra.gmra.mrb[0].mxu1 %vm660_vm1, %v703_v60 }
 0x199   : > { %1688 = vmatprep.mubr.msk.f32.mxu1 %vm1817_vm0, %v1818_v6  ;;  %1755 = vmatpush3.bf16.msra.mxu1 %v1754_v0  ;;  %v912_v6 = vld [vmem:[%s2121_s12 + $0x10] sm:$0xff] }
 0x19a   : > { %1756 = vmatprep.subr.bf16.mxu1 %v1816_v3  ;;  %v1763_v9 = vpack.c.bf16 %v913_v8, %v912_v6  ;;  %v1579_v3 = vld [vmem:[%s2116_s7] ss:$0 sm:$0xff] }
 0x19c   : > { %1764 = vmatpush3.bf16.msra.mxu0 %v1763_v9 }
 0x19d   : > { %1758 = vmatpush3.bf16.msra.mxu1 %v1757_v7 }
 0x212   : > { %v715_v10 = vpop.xlane.xlu1 %714 }
 0x213   : > { %v716_v13 = vmul.f32 0.03125, %v715_v10 }
 0x215   : > { %v717_v14 = vadd.f32 1e-06, %v716_v13 }
 0x217   : > { %1790 = vrsqrt.f32 %v717_v14 }
 0x221   : > { %v1791_v15 = vpop.eup %1790 }
 0x222   : > { %v719_v17 = vmul.f32 %v1791_v15, %v711_v45 }
 0x224   : > { %v726_v18 = vmul.f32 %v1578_v16, %v719_v17 }
 0x226   : > { %v733_v19 = vadd.f32 %v1579_v3, %v726_v18 }
 0x228   : > { %1689 = vmatmul.mubr.msk.f32.vlgmr.msra.gmra.mrb[2].mxu1 %vm660_vm1, %v733_v19  ;;  %1700 = vmatmul.mubr.msk.f32.vlgmr.msra.gmra.mrb[2].mxu0 %vm660_vm1, %v733_v19 }
 0x26b   : > { %v1679_v21 = vpop.f32.mrb[0].mxu1 }
 0x26c   : > { %v823_v22 = vadd.f32 %v1679_v21, %v1580_v20  ;;  %v817_v23 = vpop.f32.mrb[1].mxu1  ;;  %v1392_v21 = vld [vmem:[%s2123_s14] sm:$0xff] }
 0x26d   : > { %v818_v24 = vadd.f32 %v1580_v20, %v817_v23  ;;  %v1394_v23 = vld [vmem:[%s2123_s14 + $0x10] sm:$0xff] }
 0x26f   : > { %1704 = vmatprep.mubr.msk.f32.mxu1 %vm991_vm4, %v818_v24 }
 0x2fb   : > { %v906_v26 = vpop.f32.mrb[2].mxu1  ;;  %v987_v28 = vpop.f32.mrb[2].mxu0 }
 0x2fc   : > { %v907_v29 = vadd.f32 %v1583_v25, %v906_v26  ;;  %v1690_v30 = vpop.f32.mrb[3].mxu1  ;;  %v1701_v31 = vpop.f32.mrb[3].mxu0  ;;  %v988_v32 = vadd.f32 %v1585_v27, %v987_v28  ;;  %v1395_v25 = vld [vmem:[%s2123_s14 + $0x18] sm:$0xff] }
 0x2fd   : > { %v1769_v26 = vpack.c.bf16 %v1395_v25, %v1394_v23 }
 0x2fe   : > { %1702 = vmatprep.subr.msk.mxu1 %vm991_vm4, %v907_v29 }
 0x2ff   : > { %1703 = vmatpush3.xpose.msk.msra.mxu1 %vm991_vm4, %v907_v29 }
 0x300   : > { %1707 = vmatprep.subr.msk.mxu1 %vm1107_vm5, %v988_v32 }
 0x302   : > { %1705 = vmatmul.mubr.msk.f32.vlgmr.msra.gmra.mrb[4].mxu1 %vm991_vm4, %v823_v22 }
 0x303   : > { %1708 = vmatpush3.msk.msra.mxu1 %vm1107_vm5, %v988_v32 }
 0x3d5   : > { %v1706_v33 = vpop.f32.mrb[4].mxu1 }
 0x3d6   : > { %v1077_v34 = vmul.f32 0.25, %v1706_v33  ;;  %v1067_v35 = vpop.f32.mrb[5].mxu1  ;;  %v1599_v33 = vld [vmem:[%s2124_s15] ss:$0 sm:$0xff] }
 0x3d7   : > { %v1076_v36 = vmul.f32 0.25, %v1067_v35  ;;  %v1602_v35 = vld [vmem:[%s2125_s16] ss:$0 sm:$0xff] }
 0x3d8   : > { %v1082_v37 = vsel %vm1078_vm6, %v1077_v34, -inf }
 0x3d9   : > { %1083 = vmax.xlane.f32.xlu1 %v1082_v37  ;;  %v1079_v38 = vsel %vm1078_vm6, %v1076_v36, -inf }
 0x3da   : > { %1080 = vmax.xlane.f32.xlu0 %v1079_v38 }
 0x466   : > { %v1084_v39 = vpop.xlane.xlu1 %1083 }
 0x467   : > { %v1086_v40 = vsub.f32 %v1077_v34, %v1084_v39  ;;  %v1081_v41 = vpop.xlane.xlu0 %1080 }
 0x468   : > { %v1085_v42 = vsub.f32 %v1076_v36, %v1081_v41 }
 0x469   : > { %v1089_v43 = vmul.f32 1.442695, %v1086_v40 }
 0x46a   : > { %v1087_v44 = vmul.f32 1.442695, %v1085_v42 }
 0x46b   : > { %1792 = vpow2.f32 %v1089_v43 }
 0x46c   : > { %1794 = vpow2.f32 %v1087_v44 }
 0x475   : > { %v1793_v45 = vpop.eup %1792 }
 0x476   : > { %v1795_v46 = vpop.eup %1794  ;;  %v1094_v47 = vsel %vm1078_vm6, %v1793_v45, 0.0 }
 0x477   : > { %1095 = vadd.xlane.f32.xlu1 %v1094_v47  ;;  %v1091_v48 = vsel %vm1078_vm6, %v1795_v46, 0.0 }
 0x478   : > { %1092 = vadd.xlane.f32.xlu0 %v1091_v48 }
 0x488   : > { %1186 = vrot.lane.b32.xlu1 %v818_v24, %s1819_s30 }
 0x48c   : > { %1188 = vrot.lane.b32.xlu1 %v823_v22, %s1819_s30  ;;  %v1393_v22 = vld [vmem:[%s2123_s14 + $0x8] sm:$0xff] }
 0x48d   : > { %v1765_v24 = vpack.c.bf16 %v1393_v22, %v1392_v21 }
 0x48e   : > { %1190 = vrot.lane.b32.xlu0 %v907_v29, %s1819_s30 }
 0x48f   : > { %1766 = vmatprep.subr.bf16.mxu0 %v1765_v24 }
 0x490   : > { %1768 = vmatpush3.bf16.msra.mxu0 %v1765_v24 }
 0x491   : > { %1770 = vmatprep.subr.bf16.mxu0 %v1769_v26 }
 0x494   : > { %1772 = vmatpush3.bf16.msra.mxu0 %v1769_v26 }
 0x504   : > { %v1096_v49 = vpop.xlane.xlu1 %1095 }
 0x505   : > { %1796 = vrcp.f32 %v1096_v49  ;;  %v1093_v50 = vpop.xlane.xlu0 %1092 }
 0x506   : > { %1798 = vrcp.f32 %v1093_v50 }
 0x508   : > { %v1187_v54 = vpop.permute.xlu1 %1186 }
 0x509   : > { %v1191_v51 = vpop.permute.xlu0 %1190 }
 0x50a   : > { %1712 = vmatprep.subr.msk.mxu1 %vm991_vm4, %v1191_v51 }
 0x50c   : > { %v1189_v57 = vpop.permute.xlu1 %1188 }
 0x50f   : > { %v1797_v52 = vpop.eup %1796 }
 0x510   : > { %v1799_v53 = vpop.eup %1798  ;;  %v1100_v56 = vmul.f32 %v1797_v52, %v1793_v45 }
 0x511   : > { %v1099_v55 = vmul.f32 %v1799_v53, %v1795_v46 }
 0x513   : > { %1709 = vmatprep.mubr.msk.f32.mxu1 %vm1078_vm6, %v1099_v55 }
 0x514   : > { %1710 = vmatmul.mubr.msk.f32.vlgmr.msra.gmra.mrb[6].mxu1 %vm1078_vm6, %v1100_v56 }
 0x515   : > { %1713 = vmatpush3.xpose.msk.msra.mxu1 %vm991_vm4, %v1191_v51  ;;  %1714 = vmatprep.mubr.msk.f32.mxu1 %vm991_vm4, %v1187_v54 }
 0x518   : > { %1715 = vmatmul.mubr.msk.f32.vlgmr.msra.gmra.mrb[8].mxu1 %vm991_vm4, %v1189_v57 }
 0x5e7   : > { %v1711_v58 = vpop.f32.mrb[6].mxu1 }
 0x5e8   : > { %v1177_v59 = vpop.f32.mrb[7].mxu1 }
 0x5eb   : > { %v1716_v60 = vpop.f32.mrb[8].mxu1 }
 0x5ec   : > { %v1274_v61 = vmul.f32 0.25, %v1716_v60  ;;  %v1264_v62 = vpop.f32.mrb[9].mxu1 }
 0x5ed   : > { %v1273_v63 = vmul.f32 0.25, %v1264_v62 }
 0x5ee   : > { %v1278_v0 = vsel %vm1078_vm6, %v1274_v61, -inf }
 0x5ef   : > { %1279 = vmax.xlane.f32.xlu0 %v1278_v0  ;;  %v1275_v1 = vsel %vm1078_vm6, %v1273_v63, -inf }
 0x5f0   : > { %1276 = vmax.xlane.f32.xlu1 %v1275_v1 }
 0x601   : > { %1297 = vrot.lane.b32.xlu1 %v988_v32, %s1819_s30 }
 0x67c   : > { %v1280_v2 = vpop.xlane.xlu0 %1279 }
 0x67d   : > { %v1282_v4 = vsub.f32 %v1274_v61, %v1280_v2  ;;  %v1277_v5 = vpop.xlane.xlu1 %1276 }
 0x67e   : > { %v1281_v6 = vsub.f32 %v1273_v63, %v1277_v5 }
 0x67f   : > { %v1285_v7 = vmul.f32 1.442695, %v1282_v4 }
 0x680   : > { %v1283_v8 = vmul.f32 1.442695, %v1281_v6 }
 0x681   : > { %v1298_v9 = vpop.permute.xlu1 %1297 }
 0x682   : > { %1800 = vpow2.f32 %v1283_v8  ;;  %1717 = vmatprep.subr.msk.mxu1 %vm1107_vm5, %v1298_v9 }
 0x683   : > { %1718 = vmatpush3.msk.msra.mxu1 %vm1107_vm5, %v1298_v9  ;;  %1802 = vpow2.f32 %v1285_v7 }
 0x68c   : > { %v1801_v10 = vpop.eup %1800 }
 0x68d   : > { %v1287_v13 = vsel %vm1078_vm6, %v1801_v10, 0.0  ;;  %v1803_v14 = vpop.eup %1802 }
 0x68e   : > { %1288 = vadd.xlane.f32.xlu0 %v1287_v13  ;;  %v1290_v15 = vsel %vm1078_vm6, %v1803_v14, 0.0 }
 0x692   : > { %1291 = vadd.xlane.f32.xlu0 %v1290_v15 }
 0x71b   : > { %v1289_v16 = vpop.xlane.xlu0 %1288 }
 0x71c   : > { %1804 = vrcp.f32 %v1289_v16 }
 0x71f   : > { %v1292_v17 = vpop.xlane.xlu0 %1291 }
 0x720   : > { %1806 = vrcp.f32 %v1292_v17 }
 0x726   : > { %v1805_v3 = vpop.eup %1804 }
 0x727   : > { %v1295_v18 = vmul.f32 %v1805_v3, %v1801_v10 }
 0x729   : > { %1719 = vmatprep.mubr.msk.f32.mxu1 %vm1078_vm6, %v1295_v18 }
 0x72a   : > { %v1807_v19 = vpop.eup %1806 }
 0x72b   : > { %v1296_v20 = vmul.f32 %v1807_v19, %v1803_v14 }
 0x72d   : > { %1720 = vmatmul.mubr.msk.f32.vlgmr.msra.gmra.mrb[10].mxu1 %vm1078_vm6, %v1296_v20 }
 0x800   : > { %v1721_v27 = vpop.f32.mrb[10].mxu1 }
 0x801   : > { %1386 = vrot.lane.b32.xlu1 %v1721_v27, %s1820_s28  ;;  %v1373_v28 = vpop.f32.mrb[11].mxu1 }
 0x802   : > { %1384 = vrot.lane.b32.xlu0 %v1373_v28, %s1820_s28 }
 0x873   : > { %v1387_v29 = vpop.permute.xlu1 %1386 }
 0x874   : > { %v1385_v30 = vpop.permute.xlu0 %1384  ;;  %v1391_v32 = vsel %vm991_vm4, %v1711_v58, %v1387_v29 }
 0x875   : > { %v1390_v31 = vsel %vm991_vm4, %v1177_v59, %v1385_v30 }
 0x876   : > { %1730 = vmatprep.mubr.msk.f32.mxu0 %vm660_vm1, %v1390_v31 }
 0x877   : > { %1731 = vmatmul.mubr.msk.f32.vlgmr.msra.gmra.mrb[4].mxu0 %vm660_vm1, %v1391_v32 }
 0x94a   : > { %v1732_v34 = vpop.f32.mrb[4].mxu0 }
 0x94b   : > { %v1481_v36 = vadd.f32 %v1732_v34, %v1599_v33  ;;  %v1475_v37 = vpop.f32.mrb[5].mxu0 }
 0x94c   : > { %v1476_v38 = vadd.f32 %v1599_v33, %v1475_v37 }
 0x94d   : > { %v1492_v39 = vmul.f32 %v1602_v35, %v1481_v36 }
 0x94e   : > { %v1491_v40 = vmul.f32 %v1602_v35, %v1476_v38 }
 0x94f   : > { %v1494_v41 = vadd.f32 %v1492_v39, %v1951_v12 }
 0x950   : > { %v1493_v42 = vadd.f32 %v1491_v40, %v1949_v11 }
 0x951   : > { %1496 = vst.msk [vmem:[%s565_s20 + $0x8] sm:$0xff] %vm660_vm1, %v1494_v41 }
 0x952   : > { %1495 = vst.msk [vmem:[%s565_s20] sm:$0xff] %vm660_vm1, %v1493_v42 }
 0x953 PF: > { %s27_s24 = sadd.s32 1, %s1814_s24  }
 0x954   : > { %p24_p4 = scmp.ge.s32.totalorder %s27_s24, 4  }
 0x956   :  { %26 = sbr.rel (!%p24_p4) target bundleno = 3 (0x3), region = 121 }

// kernel: piip_forward.27
= control target key start
LH: loop header
LB: loop body
LE: loop exit
PB: predicated region body
PF: predicated region fallthrough
CT: control target
= control target key end

     0   :  { %s591_s15 = smov 0   ;;  %s650_s0 = inlined_call_operand.vmem [shape: f32[2,4,64], index: 0, kind: input, shape index: {}]   ;;  %s651_s1 = inlined_call_operand.vmem [shape: f32[64,64], index: 1, kind: input, shape index: {}]   ;;  %s652_s2 = inlined_call_operand.vmem [shape: f32[1,64], index: 2, kind: input, shape index: {}]   ;;  %s653_s3 = inlined_call_operand.vmem [shape: f32[1,64], index: 3, kind: input, shape index: {}]   ;;  %s654_s4 = inlined_call_operand.vmem [shape: f32[2,4,64], index: 4, kind: output, shape index: {}]  }
   0x1 LB: > { %s449_s16 = sadd.s32 4294967295, %s561_s15   ;;  %p453_p0 = scmp.ge.s32.totalorder %s561_s15, 1  ;;  %s561_s15 = sphi %s591_s15, %s14_s15  }
   0x2   : > { %p161_p1 = scmp.lt.s32.totalorder %s561_s15, 3 }
   0x4   : > { %p162_p2 = pnand %p453_p0, %p161_p1 }
   0x5   : > { %v196_v0 = vld [vmem:[%s651_s1] sm:$0xff] (!%p162_p2)  ;;  %v197_v1 = vld [vmem:[%s651_s1 + $0x8] sm:$0xff] (!%p162_p2)  ;;  %v198_v2 = vld [vmem:[%s651_s1 + $0x10] sm:$0xff] (!%p162_p2)  ;;  %v563_v3 = vmov (!%p162_p2), 0.0|0.0   ;;  %vm564_vm0 = vmmov (!%p162_p2), 0   ;;  %v565_v6 = vmov (!%p162_p2), 0.0   ;;  %v288_v23 = vlaneseq (!%p162_p2) }
   0x6   : > { %165 = sbr.rel (%p162_p2) target bundleno = 499 (0x1f3), region = 36  ;;  %518 = vmatprep.subr.bf16.mxu0 (!%p162_p2), %v563_v3  ;;  %v519_v4 = vpack.c.bf16 (!%p162_p2), %v197_v1, %v196_v0  ;;  %v199_v5 = vld [vmem:[%s651_s1 + $0x18] sm:$0xff] (!%p162_p2)  ;;  %496 = vmatprep.mubr.msk.f32.mxu0 (!%p162_p2), %vm564_vm0, %v565_v6  ;;  %p185_p3 = scmp.lt.s32.totalorder (!%p162_p2), %s449_s16, 1  ;;  %v200_v8 = vld [vmem:[%s651_s1 + $0x20] sm:$0xff] (!%p162_p2)  ;;  %v201_v9 = vld [vmem:[%s651_s1 + $0x28] sm:$0xff] (!%p162_p2)  ;;  %vm204_vm1 = vcmask (!%p162_p2), 519168  }
   0x7   : > { %530 = vmatprep.subr.bf16.mxu1 (!%p162_p2), %v563_v3  ;;  %515 = vmatprep.mubr.msk.f32.mxu1 (!%p162_p2), %vm564_vm0, %v565_v6  ;;  %v522_v7 = vpack.c.bf16 (!%p162_p2), %v199_v5, %v198_v2  ;;  %v525_v10 = vpack.c.bf16 (!%p162_p2), %v201_v9, %v200_v8  ;;  %v202_v12 = vld [vmem:[%s651_s1 + $0x30] sm:$0xff] (!%p162_p2)  ;;  %v203_v13 = vld [vmem:[%s651_s1 + $0x38] sm:$0xff] (!%p162_p2)  ;;  %vm214_vm2 = vcmask (!%p162_p2), 523264   ;;  %v289_v24 = vshrl.u32 (!%p162_p2), %v288_v23, 7  ;;  %v458_v44 = vld [vmem:[%s652_s2] ss:$0 sm:$0xff] (!%p162_p2) }
   0x8   : > { %520 = vmatpush3.bf16.msra.mxu0 (!%p162_p2), %v519_v4  ;;  %532 = vmatpush3.bf16.msra.mxu1 (!%p162_p2), %v519_v4  ;;  %v528_v16 = vpack.c.bf16 (!%p162_p2), %v203_v13, %v202_v12  ;;  %v459_v46 = vld [vmem:[%s653_s3] ss:$0 sm:$0xff] (!%p162_p2) }
   0x9   : > { %521 = vmatprep.subr.bf16.mxu0 (!%p162_p2), %v563_v3  ;;  %533 = vmatprep.subr.bf16.mxu1 (!%p162_p2), %v563_v3  ;;  %v290_v25 = vsub.s32 (!%p162_p2), 0, %v289_v24 }
   0xc   : > { %523 = vmatpush3.bf16.msra.mxu0 (!%p162_p2), %v522_v7  ;;  %535 = vmatpush3.bf16.msra.mxu1 (!%p162_p2), %v522_v7 }
   0xd   : > { %s656_s16 = smov (!%p185_p3, %s449_s16), 1  ;;  %524 = vmatprep.subr.bf16.mxu0 %v563_v3  ;;  %536 = vmatprep.subr.bf16.mxu1 %v563_v3 }
   0xe   : > { %s454_s29 = sshll.u32 %s656_s16, 2 }
   0xf   : > { %s188_s6 = scalar_lea.vmem %s650_s0, %s454_s29  ;;  %s192_s19 = scalar_lea.vmem %s654_s4, %s454_s29 }
  0x10   : > { %v193_v11 = vld [vmem:[%s188_s6] sm:$0xf]  ;;  %526 = vmatpush3.bf16.msra.mxu0 %v525_v10  ;;  %538 = vmatpush3.bf16.msra.mxu1 %v525_v10 }
  0x11   : > { %v205_v14 = vsel %vm204_vm1, %v193_v11, 0.0  ;;  %527 = vmatprep.subr.bf16.mxu0 %v563_v3  ;;  %539 = vmatprep.subr.bf16.mxu1 %v563_v3 }
  0x12   : > { %v206_v15 = vrot.slane %v205_v14, 4 }
  0x14   : > { %v207_v17 = vadd.f32 %v206_v15, %v205_v14  ;;  %529 = vmatpush3.bf16.msra.mxu0 %v528_v16  ;;  %541 = vmatpush3.bf16.msra.mxu1 %v528_v16 }
  0x16   : > { %v208_v18 = vrot.slane %v207_v17, 2 }
  0x18   : > { %v209_v19 = vadd.f32 %v208_v18, %v207_v17 }
  0x1a   : > { %v210_v20 = vrot.slane %v209_v19, 1 }
  0x1c   : > { %v211_v21 = vadd.f32 %v210_v20, %v209_v19 }
  0x1e   : > { %v213_v22 = vmul.f32 0.25, %v211_v21 }
  0x20   : > { %497 = vmatmul.mubr.msk.f32.vlgmr.msra.gmra.mrb[0].mxu0 %vm214_vm2, %v213_v22 }
  0xf3   : > { %v284_v26 = vpop.f32.mrb[0].mxu0 }
  0xf4   : > { %v291_v27 = vrot.slane %v284_v26, %v290_v25  ;;  %v498_v28 = vpop.f32.mrb[1].mxu0 }
  0xf6   : > { %v292_v29 = vsub.f32 %v193_v11, %v291_v27 }
  0xf8   : > { %v293_v30 = vmul.f32 %v292_v29, %v292_v29 }
  0xfa   : > { %v294_v31 = vsel %vm204_vm1, %v293_v30, 0.0 }
  0xfb   : > { %v295_v32 = vrot.slane %v294_v31, 4 }
  0xfd   : > { %v296_v33 = vadd.f32 %v295_v32, %v294_v31 }
  0xff   : > { %v297_v34 = vrot.slane %v296_v33, 2 }
 0x101   : > { %v298_v35 = vadd.f32 %v297_v34, %v296_v33 }
 0x103   : > { %v299_v36 = vrot.slane %v298_v35, 1 }
 0x105   : > { %v300_v37 = vadd.f32 %v299_v36, %v298_v35 }
 0x107   : > { %v301_v38 = vmul.f32 0.25, %v300_v37 }
 0x109   : > { %516 = vmatmul.mubr.msk.f32.vlgmr.msra.gmra.mrb[0].mxu1 %vm214_vm2, %v301_v38 }
 0x1dc   : > { %v371_v39 = vpop.f32.mrb[0].mxu1 }
 0x1dd   : > { %v372_v40 = vadd.f32 1e-05, %v371_v39  ;;  %v517_v41 = vpop.f32.mrb[1].mxu1 }
 0x1df   : > { %553 = vrsqrt.f32 %v372_v40 }
 0x1e9   : > { %v554_v42 = vpop.eup %553 }
 0x1ea   : > { %v379_v43 = vrot.slane %v554_v42, %v290_v25 }
 0x1ec   : > { %v380_v45 = vmul.f32 %v379_v43, %v292_v29 }
 0x1ee   : > { %v387_v47 = vmul.f32 %v458_v44, %v380_v45 }
 0x1f0   : > { %v394_v48 = vadd.f32 %v459_v46, %v387_v47 }
 0x1f2   : > { %395 = vst.msk [vmem:[%s192_s19] sm:$0xf] %vm204_vm1, %v394_v48 }
 0x1f3 PF: > { %s14_s15 = sadd.s32 1, %s561_s15  }
 0x1f4   : > { %p11_p4 = scmp.ge.s32.totalorder %s14_s15, 4  }
 0x1f6   :  { %13 = sbr.rel (!%p11_p4) target bundleno = 1 (0x1), region = 66 }

// kernel: piip_forward.29
= control target key start
LH: loop header
LB: loop body
LE: loop exit
PB: predicated region body
PF: predicated region fallthrough
CT: control target
= control target key end

     0   :  { %vm61_vm0 = vcmask 523264   ;;  %s573_s0 = inlined_call_operand.vmem [shape: f32[32,64], index: 0, kind: input, shape index: {}]   ;;  %s574_s1 = inlined_call_operand.vmem [shape: f32[32,64], index: 1, kind: input, shape index: {}]   ;;  %s575_s2 = inlined_call_operand.<no memory space> [shape: f32[1], index: 2, kind: input, shape index: {}]   ;;  %s576_s3 = inlined_call_operand.<no memory space> [shape: f32[1], index: 3, kind: input, shape index: {}]   ;;  %s577_s4 = inlined_call_operand.vmem [shape: f32[1,64], index: 4, kind: input, shape index: {}]   ;;  %s578_s5 = inlined_call_operand.vmem [shape: f32[1,64], index: 5, kind: input, shape index: {}]   ;;  %s579_s6 = inlined_call_operand.vmem [shape: f32[2,32], index: 6, kind: input, shape index: {}]   ;;  %s580_s7 = inlined_call_operand.vmem [shape: f32[64,10], index: 7, kind: input, shape index: {}]   ;;  %s581_s8 = inlined_call_operand.vmem [shape: f32[1,10], index: 8, kind: input, shape index: {}]   ;;  %s582_s9 = inlined_call_operand.hbm [shape: f32[2,10], index: 9, kind: output, shape index: {}]  }
   0x1   :  { %v37_v0 = vld [vmem:[%s573_s0] sm:$0xff]  ;;  %v41_v1 = vstv %s575_s2  ;;  %v50_v3 = vstv %s576_s3  ;;  %v39_v6 = vld [vmem:[%s573_s0 + $0x10] sm:$0xff] }
   0x2   :  { %v46_v2 = vld [vmem:[%s574_s1] sm:$0xff]  ;;  %v42_v4 = vmul.f32 %v41_v1, %v37_v0  ;;  %v48_v7 = vld [vmem:[%s574_s1 + $0x10] sm:$0xff]  ;;  %v38_v8 = vld [vmem:[%s573_s0 + $0x8] sm:$0xff]  ;;  %v44_v9 = vmul.f32 %v41_v1, %v39_v6 }
   0x3   :  { %v51_v5 = vmul.f32 %v50_v3, %v46_v2  ;;  %v53_v10 = vmul.f32 %v50_v3, %v48_v7  ;;  %v43_v11 = vmul.f32 %v41_v1, %v38_v8  ;;  %v47_v12 = vld [vmem:[%s574_s1 + $0x8] sm:$0xff]  ;;  %v40_v13 = vld [vmem:[%s573_s0 + $0x18] sm:$0xff] }
   0x4   :  { %v49_v14 = vld [vmem:[%s574_s1 + $0x18] sm:$0xff]  ;;  %v52_v16 = vmul.f32 %v50_v3, %v47_v12  ;;  %v45_v17 = vmul.f32 %v41_v1, %v40_v13 }
   0x5   :  { %v55_v15 = vadd.f32 %v51_v5, %v42_v4  ;;  %v54_v18 = vmul.f32 %v50_v3, %v49_v14 }
   0x6   :  { %16 = vsyncpa [#allocation5], 0  ;;  %v57_v19 = vadd.f32 %v53_v10, %v44_v9  ;;  %v56_v21 = vadd.f32 %v52_v16, %v43_v11  ;;  %v417_v46 = vmov 0.0|0.0   ;;  %vm418_vm1 = vmmov 0   ;;  %v210_v48 = vld [vmem:[%s580_s7] sm:$0xff]  ;;  %v211_v49 = vld [vmem:[%s580_s7 + $0x8] sm:$0xff] }
   0x7   :  { %v62_v20 = vsel %vm61_vm0, %v55_v15, 0.0  ;;  %v58_v22 = vadd.f32 %v54_v18, %v45_v17  ;;  %363 = vmatprep.subr.bf16.mxu0 %v417_v46  ;;  %369 = vmatprep.subr.bf16.mxu1 %v417_v46  ;;  %v419_v47 = vmov 0.0   ;;  %v212_v50 = vld [vmem:[%s580_s7 + $0x10] sm:$0xff]  ;;  %v370_v51 = vpack.c.bf16 %v211_v49, %v210_v48  ;;  %v213_v52 = vld [vmem:[%s580_s7 + $0x18] sm:$0xff]  ;;  %v214_v54 = vld [vmem:[%s580_s7 + $0x20] sm:$0xff]  ;;  %s420_s23 = smov [#allocation4]  }
   0x8   :  { %63 = vadd.xlane.f32.xlu0 %v62_v20  ;;  %v68_v23 = vsel %vm61_vm0, %v57_v19, 0.0  ;;  %v65_v24 = vsel %vm61_vm0, %v56_v21, 0.0  ;;  %341 = vmatprep.mubr.msk.f32.mxu0 %vm418_vm1, %v419_v47  ;;  %v373_v53 = vpack.c.bf16 %v213_v52, %v212_v50  ;;  %v215_v55 = vld [vmem:[%s580_s7 + $0x28] sm:$0xff]  ;;  %v216_v57 = vld [vmem:[%s580_s7 + $0x30] sm:$0xff]  ;;  %v217_v58 = vld [vmem:[%s580_s7 + $0x38] sm:$0xff]  ;;  %vm136_vm2 = vcmask 261120  }
   0x9   :  { %69 = vadd.xlane.f32.xlu1 %v68_v23  ;;  %v71_v25 = vsel %vm61_vm0, %v58_v22, 0.0  ;;  %360 = vmatprep.mubr.msk.f32.mxu1 %vm418_vm1, %v419_v47  ;;  %v376_v56 = vpack.c.bf16 %v215_v55, %v214_v54  ;;  %v379_v59 = vpack.c.bf16 %v217_v58, %v216_v57  ;;  %v314_v10 = vld [vmem:[%s577_s4] ss:$0 sm:$0xff]  ;;  %s306_s24 = sshll.u32 %s420_s23, 4  ;;  %vm298_vm3 = vcmask 74752   ;;  %s307_s24 = int_to_ptr.vmem [resolvable:$true] %s306_s24 }
   0xa   :  { %371 = vmatpush3.bf16.msra.mxu1 %v370_v51  ;;  %s393_s25 = scalar_lea.vmem %s307_s24, 32  ;;  %p398_p1 = scmp.lt.s32.totalorder %s307_s24, %s307_s24 }
   0xb   :  { %372 = vmatprep.subr.bf16.mxu1 %v417_v46  ;;  %p394_p0 = scmp.ne.s32.totalorder %s307_s24, %s393_s25  ;;  %p399_p2 = scmp.lt.s32.totalorder %s393_s25, %s393_s25 }
   0xc   :  { %66 = vadd.xlane.f32.xlu0 %v65_v24 }
   0xd   :  { %72 = vadd.xlane.f32.xlu1 %v71_v25  ;;  %p400_p3 = por %p399_p2, %p398_p1 }
   0xe   :  { %374 = vmatpush3.bf16.msra.mxu1 %v373_v53 }
   0xf   :  { %375 = vmatprep.subr.bf16.mxu1 %v417_v46  ;;  %p401_p4 = pnand %p400_p3, %p394_p0 }
  0x12   :  { %377 = vmatpush3.bf16.msra.mxu1 %v376_v56 }
  0x13   :  { %378 = vmatprep.subr.bf16.mxu1 %v417_v46 }
  0x16   :  { %380 = vmatpush3.bf16.msra.mxu1 %v379_v59 }
  0x95   :  { %v64_v26 = vpop.xlane.xlu0 %63 }
  0x96   :  { %v75_v27 = vmul.f32 0.015625, %v64_v26  ;;  %v70_v28 = vpop.xlane.xlu1 %69 }
  0x97   :  { %v77_v29 = vmul.f32 0.015625, %v70_v28  ;;  %v135_v28 = vld [vmem:[%s579_s6] sm:$0x3] }
  0x98   :  { %v505_v30 = vsub.f32 %v55_v15, %v75_v27  ;;  %v315_v15 = vld [vmem:[%s578_s5] ss:$0 sm:$0xff] }
  0x99   :  { %v507_v31 = vsub.f32 %v57_v19, %v77_v29  ;;  %v67_v32 = vpop.xlane.xlu0 %66 }
  0x9a   :  { %v76_v33 = vmul.f32 0.015625, %v67_v32  ;;  %v73_v34 = vpop.xlane.xlu1 %72  ;;  %v83_v35 = vmul.f32 %v505_v30, %v505_v30 }
  0x9b   :  { %v78_v36 = vmul.f32 0.015625, %v73_v34  ;;  %v85_v37 = vmul.f32 %v507_v31, %v507_v31 }
  0x9c   :  { %v80_v38 = vsub.f32 %v56_v21, %v76_v33  ;;  %v87_v39 = vsel %vm61_vm0, %v83_v35, 0.0 }
  0x9d   :  { %v514_v40 = vsub.f32 %v58_v22, %v78_v36  ;;  %88 = vadd.xlane.f32.xlu0 %v87_v39  ;;  %v93_v41 = vsel %vm61_vm0, %v85_v37, 0.0 }
  0x9e   :  { %v84_v42 = vmul.f32 %v80_v38, %v80_v38 }
  0x9f   :  { %v86_v43 = vmul.f32 %v514_v40, %v514_v40 }
  0xa0   :  { %v90_v44 = vsel %vm61_vm0, %v84_v42, 0.0 }
  0xa1   :  { %94 = vadd.xlane.f32.xlu0 %v93_v41  ;;  %91 = vadd.xlane.f32.xlu1 %v90_v44  ;;  %v96_v45 = vsel %vm61_vm0, %v86_v43, 0.0 }
  0xa5   :  { %97 = vadd.xlane.f32.xlu1 %v96_v45 }
 0x12a   :  { %v89_v60 = vpop.xlane.xlu0 %88 }
 0x12b   :  { %v99_v61 = vmul.f32 0.015625, %v89_v60 }
 0x12d   :  { %v103_v62 = vadd.f32 1e-06, %v99_v61 }
 0x12e   :  { %v92_v63 = vpop.xlane.xlu1 %91  ;;  %v95_v0 = vpop.xlane.xlu0 %94 }
 0x12f   :  { %385 = vrsqrt.f32 %v103_v62  ;;  %v100_v1 = vmul.f32 0.015625, %v92_v63  ;;  %v101_v2 = vmul.f32 0.015625, %v95_v0 }
 0x131   :  { %v104_v3 = vadd.f32 1e-06, %v100_v1  ;;  %v105_v4 = vadd.f32 1e-06, %v101_v2 }
 0x132   :  { %v98_v5 = vpop.xlane.xlu1 %97 }
 0x133   :  { %387 = vrsqrt.f32 %v104_v3  ;;  %v102_v6 = vmul.f32 0.015625, %v98_v5 }
 0x134   :  { %389 = vrsqrt.f32 %v105_v4 }
 0x135   :  { %v106_v7 = vadd.f32 1e-06, %v102_v6 }
 0x137   :  { %391 = vrsqrt.f32 %v106_v7 }
 0x139   :  { %v386_v8 = vpop.eup %385 }
 0x13a   :  { %v111_v9 = vmul.f32 %v386_v8, %v505_v30 }
 0x13c   :  { %v121_v14 = vmul.f32 %v314_v10, %v111_v9 }
 0x13d   :  { %v388_v11 = vpop.eup %387 }
 0x13e   :  { %v390_v12 = vpop.eup %389  ;;  %v112_v13 = vmul.f32 %v388_v11, %v80_v38  ;;  %v131_v19 = vadd.f32 %v315_v15, %v121_v14 }
 0x13f   :  { %v113_v16 = vmul.f32 %v390_v12, %v507_v31  ;;  %v317_v31 = vld [vmem:[%s581_s8] ss:$0 sm:$0xff] }
 0x140   :  { %v122_v17 = vmul.f32 %v314_v10, %v112_v13 }
 0x141   :  { %v392_v18 = vpop.eup %391  ;;  %v123_v22 = vmul.f32 %v314_v10, %v113_v16 }
 0x142   :  { %v132_v20 = vadd.f32 %v315_v15, %v122_v17  ;;  %v114_v21 = vmul.f32 %v392_v18, %v514_v40 }
 0x143   :  { %v133_v25 = vadd.f32 %v315_v15, %v123_v22 }
 0x144   :  { %v364_v23 = vpack.c.bf16 %v132_v20, %v131_v19  ;;  %v124_v24 = vmul.f32 %v314_v10, %v114_v21 }
 0x146   :  { %365 = vmatpush3.bf16.msra.mxu0 %v364_v23  ;;  %v134_v26 = vadd.f32 %v315_v15, %v124_v24 }
 0x147   :  { %366 = vmatprep.subr.bf16.mxu0 %v417_v46 }
 0x148   :  { %v367_v27 = vpack.c.bf16 %v134_v26, %v133_v25 }
 0x14a   :  { %368 = vmatpush3.bf16.msra.mxu0 %v367_v27 }
 0x14d   :  { %342 = vmatmul.mubr.msk.f32.vlgmr.msra.gmra.mrb[0].mxu0 %vm136_vm2, %v135_v28 }
 0x220   :  { %v206_v29 = vpop.f32.mrb[0].mxu0 }
 0x221   :  { %v343_v30 = vpop.f32.mrb[1].mxu0  ;;  %361 = vmatmul.mubr.msk.f32.vlgmr.msra.gmra.mrb[0].mxu1 %vm61_vm0, %v206_v29 }
 0x2f4   :  { %v294_v32 = vpop.f32.mrb[0].mxu1 }
 0x2f5   :  { %v295_v33 = vadd.f32 %v317_v31, %v294_v32  ;;  %v362_v34 = vpop.f32.mrb[1].mxu1 }
 0x2f7   :  { %299 = vst.msk [vmem:[#allocation4] sm:$0x3] %vm298_vm3, %v295_v33 }
 0x2f8   :  { %404 = shalt.err (!%p401_p4)
}
 0x2f9   :  { %s405_s0 = scalar_lea.hbm %s582_s9, 32 }
 0x2fa   :  { %p406_p5 = scmp.ne.s32.totalorder %s582_s9, %s405_s0  ;;  %p409_p6 = scmp.lt.u32.totalorder %s405_s0, %s582_s9 }
 0x2fc   :  { %p411_p7 = pnand %p409_p6, %p406_p5 }
 0x2fe   :  { %414 = shalt.err (!%p411_p7)
}
 0x2ff   :  { %309 = dma.vmem_to_hbm [thread:$0]  %s307_s24, 32, %s582_s9, [#allocation5]  }
 0x300   :  { %415 = dma.done.wait [#allocation5], 32  }
 0x301   :  { %416 = vsyncadd [#allocation5], 4294967264 }
 0x302   :  { %313 = vsyncpa [#allocation5], 1 }

</bundles_post_ra>
